<compile_context>
chip_gen: v7x
topology: tpu7x:2x2x1
jax: 0.10.0
libtpu: 0.0.40
codegen_flags: <defaults>
</compile_context>

<pallas_src>
import jax
import jax.numpy as jnp
from jax import lax
from jax.experimental import pallas as pl
from jax.experimental.pallas import tpu as pltpu


def _vmem_limit_bytes():
    """Generation-aware scoped-VMEM budget: ~3/4 of physical, capped at 96 MiB
    (v5e/v6e have 128 MiB/TC, v7x only 64 MiB/TC)."""
    try:
        cap = int(pltpu.get_tpu_info().vmem_capacity_bytes)
    except Exception:
        cap = 64 * 1024 * 1024
    return min((cap * 3) // 4, 96 * 1024 * 1024)


_VMEM_LIMIT = _vmem_limit_bytes()


def _fit(dim, target):
    """Pick a tile size: `target` if it divides dim, else the full dim.

    At production sizes (multiples of 128/256/512) this yields real tiles; at
    the toy shapes in __main__ it falls back to whole-dimension blocks, which
    is always legal (block == full dim)."""
    return target if (dim >= target and dim % target == 0) else dim


# ----------------------------------------------------------------------------
# Kernel 1: tiled matmul + bias (+ optional GELU epilogue)
#   bf16 MXU operands, f32 accumulation in a VMEM scratch tile.
# ----------------------------------------------------------------------------
def matmul_bias(a, w, bias, *, out_dtype=jnp.float32, act=None,
                tm=512, tn=512, tk=None):
    M, K = a.shape
    K2, N = w.shape
    assert K == K2
    if tk is None:
        tk = 1024 if K % 1024 == 0 else 512
    tm, tn, tk = _fit(M, tm), _fit(N, tn), _fit(K, tk)
    grid = (M // tm, N // tn, K // tk)

    def kern(a_ref, w_ref, b_ref, o_ref, acc_ref):
        @pl.when(pl.program_id(2) == 0)
        def _init():
            acc_ref[...] = jnp.zeros_like(acc_ref)

        acc_ref[...] += jnp.dot(a_ref[...], w_ref[...],
                                preferred_element_type=jnp.float32)

        @pl.when(pl.program_id(2) == pl.num_programs(2) - 1)
        def _fin():
            y = acc_ref[...] + b_ref[...]
            if act == "gelu":
                y = jax.nn.gelu(y, approximate=True)
            o_ref[...] = y.astype(o_ref.dtype)

    # TODO(synk): on v5e/v6e (128 MiB VMEM) pipeline_mode=pl.Buffered(3) on the
    # weight spec would hide more K-axis DMA latency; kept 2-deep for v7x.
    return pl.pallas_call(
        kern,
        grid=grid,
        in_specs=[
            pl.BlockSpec((tm, tk), lambda i, j, k: (i, k)),
            pl.BlockSpec((tk, tn), lambda i, j, k: (k, j)),
            pl.BlockSpec((1, tn), lambda i, j, k: (0, j)),
        ],
        out_specs=pl.BlockSpec((tm, tn), lambda i, j, k: (i, j)),
        out_shape=jax.ShapeDtypeStruct((M, N), out_dtype),
        scratch_shapes=[pltpu.VMEM((tm, tn), jnp.float32)],
        compiler_params=pltpu.CompilerParams(
            dimension_semantics=("parallel", "parallel", "arbitrary"),
            vmem_limit_bytes=_VMEM_LIMIT),
    )(a.astype(jnp.bfloat16), w.astype(jnp.bfloat16),
      bias.reshape(1, N).astype(jnp.float32))


# ----------------------------------------------------------------------------
# Kernel 2: fused (residual add + LayerNorm) -> matmul + bias (+ GELU)
#   Emits BOTH the post-LN activations (bf16) and the projection output.
#   The LN result is computed ONCE per M tile (at j == 0), cached in a bf16
#   VMEM scratch, and reused for every N tile (j > 0) of that row block.
# ----------------------------------------------------------------------------
def addln_matmul(x, res, gamma, beta, w, bias, *, act=None,
                 out_dtype=jnp.float32, ln_out_dtype=jnp.bfloat16,
                 eps=1e-12, tm=256, tn=256):
    M, K = x.shape
    K2, N = w.shape
    assert K == K2
    tm, tn = _fit(M, tm), _fit(N, tn)
    grid = (M // tm, N // tn)

    def kern(x_ref, r_ref, g_ref, bt_ref, w_ref, b_ref, hln_ref, y_ref, hln_sc):
        @pl.when(pl.program_id(1) == 0)            # LN once per M tile
        def _ln():
            s = x_ref[...].astype(jnp.float32) + r_ref[...].astype(jnp.float32)
            mu = jnp.mean(s, axis=-1, keepdims=True)
            var = jnp.mean(jnp.square(s - mu), axis=-1, keepdims=True)
            hln = (s - mu) * lax.rsqrt(var + eps) * g_ref[...] + bt_ref[...]
            hln_sc[...] = hln.astype(hln_sc.dtype)
            hln_ref[...] = hln.astype(hln_ref.dtype)

        y = (jnp.dot(hln_sc[...], w_ref[...],
                     preferred_element_type=jnp.float32) + b_ref[...])
        if act == "gelu":
            y = jax.nn.gelu(y, approximate=True)
        y_ref[...] = y.astype(y_ref.dtype)

    hln_out, y_out = pl.pallas_call(
        kern,
        grid=grid,
        in_specs=[
            pl.BlockSpec((tm, K), lambda i, j: (i, 0)),
            pl.BlockSpec((tm, K), lambda i, j: (i, 0)),
            pl.BlockSpec((1, K), lambda i, j: (0, 0)),
            pl.BlockSpec((1, K), lambda i, j: (0, 0)),
            pl.BlockSpec((K, tn), lambda i, j: (0, j)),
            pl.BlockSpec((1, tn), lambda i, j: (0, j)),
        ],
        out_specs=[
            pl.BlockSpec((tm, K), lambda i, j: (i, 0)),
            pl.BlockSpec((tm, tn), lambda i, j: (i, j)),
        ],
        out_shape=[
            jax.ShapeDtypeStruct((M, K), ln_out_dtype),
            jax.ShapeDtypeStruct((M, N), out_dtype),
        ],
        scratch_shapes=[pltpu.VMEM((tm, K), jnp.bfloat16)],
        compiler_params=pltpu.CompilerParams(
            # N axis is "arbitrary": LN output/scratch revisited across it.
            dimension_semantics=("parallel", "arbitrary"),
            vmem_limit_bytes=_VMEM_LIMIT),
    )(x, res,
      gamma.reshape(1, K).astype(jnp.float32),
      beta.reshape(1, K).astype(jnp.float32),
      w.astype(jnp.bfloat16), bias.reshape(1, N).astype(jnp.float32))
    return hln_out, y_out


# ----------------------------------------------------------------------------
# Kernel 3: self-attention with a query-tile grid axis.
#   Packed projection slab is in [K | V | Q] column order so the (T, 2D) K|V
#   window and the (tq, D) Q window come from the SAME array via two
#   BlockSpecs (no slicing passes) when D % 128 == 0.  Scale folded into q,
#   mask broadcast hoisted, per-head bf16 stores straight into o_ref.
# ----------------------------------------------------------------------------
def attention(kvq, mask_add, *, nH, D, tq=256):
    B, T, threeD = kvq.shape
    assert threeD == 3 * D
    dh = D // nH
    scale = 1.0 / float(dh) ** 0.5
    lane_split = (D % 128 == 0)            # production head dims (D=768, ...)
    tq = _fit(T, tq) if lane_split else T
    grid = (B, T // tq)

    def kern(kv_ref, q_ref, m_ref, o_ref):
        kv = kv_ref[0]                                   # (T, 2D)  bf16
        q = q_ref[0]                                     # (tq, D)  bf16
        mb = jnp.broadcast_to(m_ref[0], (tq, T))         # hoisted mask broadcast
        step_h = 2 if nH % 2 == 0 else 1                 # head pairs -> 2*dh lanes
        for h0 in range(0, nH, step_h):
            outs = []
            for hh in range(h0, h0 + step_h):
                qh = q[:, hh * dh:(hh + 1) * dh] * scale          # scale on (tq,dh)
                kh = kv[:, hh * dh:(hh + 1) * dh]
                vh = kv[:, D + hh * dh:D + (hh + 1) * dh]
                s = lax.dot_general(qh, kh, (((1,), (1,)), ((), ())),
                                    preferred_element_type=jnp.float32)
                s = s + mb
                s = s - jnp.max(s, axis=-1, keepdims=True)
                p = jnp.exp(s)
                p = p * pl.reciprocal(jnp.sum(p, axis=-1, keepdims=True),
                                      approx=True)
                outs.append(jnp.dot(p.astype(vh.dtype), vh,
                                    preferred_element_type=jnp.float32
                                    ).astype(o_ref.dtype))
            o_ref[0, :, h0 * dh:(h0 + step_h) * dh] = (
                outs[0] if step_h == 1 else jnp.concatenate(outs, axis=-1))

    if lane_split:
        kv_in, q_in = kvq, kvq
        kv_spec = pl.BlockSpec((1, T, 2 * D), lambda b, qi: (b, 0, 0))  # cols 0:2D
        q_spec = pl.BlockSpec((1, tq, D), lambda b, qi: (b, qi, 2))     # cols 2D:3D
    else:
        # Fallback for lane-misaligned D (toy/debug only): split with XLA slices
        # so every block equals its full array dims.
        kv_in = kvq[:, :, :2 * D]
        q_in = kvq[:, :, 2 * D:]
        kv_spec = pl.BlockSpec((1, T, 2 * D), lambda b, qi: (b, 0, 0))
        q_spec = pl.BlockSpec((1, tq, D), lambda b, qi: (b, qi, 0))

    return pl.pallas_call(
        kern,
        grid=grid,
        in_specs=[kv_spec, q_spec,
                  pl.BlockSpec((1, 1, T), lambda b, qi: (b, 0, 0))],
        out_specs=pl.BlockSpec((1, tq, D), lambda b, qi: (b, qi, 0)),
        out_shape=jax.ShapeDtypeStruct((B, T, D), jnp.bfloat16),
        compiler_params=pltpu.CompilerParams(
            dimension_semantics=("parallel", "parallel"),
            vmem_limit_bytes=_VMEM_LIMIT),
    )(kv_in, q_in, mask_add)


# ----------------------------------------------------------------------------
# Kernel 4: BiLSTM recurrence + classifier head, fused & time-streamed.
#   Forward direction: full recurrence over bf16 time chunks (grid axis,
#   auto-pipelined BlockSpec DMA, h/c in persistent VMEM scratch).
#   Backward direction: ONLY its t = T-1 output is needed (the classifier
#   consumes lstm_out[:, -1, :]), i.e. a single cell step from zeros whose
#   gate inputs are projected in-kernel from hidden_states[:, T-1, :].
#   PyTorch gate order [i, f, g, o].  fc(2H -> C) applied in-kernel.
# ----------------------------------------------------------------------------
def bilstm_head(xpf_tm, h_last, wib_t, bib, whh_f_t, whh_b_t, wfc_t, bfc,
                *, H, C, tc=128):
    T, B, G = xpf_tm.shape
    assert G == 4 * H
    D = h_last.shape[1]
    tc = _fit(T, tc)
    grid = (T // tc,)
    unroll = True if tc <= 8 else 8          # partial unroll at production T

    def cell(xg, h, c, whh):
        gates = xg + jnp.dot(h.astype(whh.dtype), whh,
                             preferred_element_type=jnp.float32)
        i = jax.nn.sigmoid(gates[:, 0 * H:1 * H])
        f = jax.nn.sigmoid(gates[:, 1 * H:2 * H])
        g = jnp.tanh(gates[:, 2 * H:3 * H])
        o = jax.nn.sigmoid(gates[:, 3 * H:4 * H])
        c_new = f * c + i * g
        h_new = o * jnp.tanh(c_new)
        return h_new, c_new

    def kern(xf_ref, hl_ref, wib_ref, bib_ref, whf_ref, whb_ref,
             wfc_ref, bfc_ref, o_ref, h_sc, c_sc):
        tb = pl.program_id(0)

        @pl.when(tb == 0)
        def _init():
            h_sc[...] = jnp.zeros_like(h_sc)
            c_sc[...] = jnp.zeros_like(c_sc)

        whf = whf_ref[...]

        def body(t, carry):
            h, c = carry
            xg = xf_ref[t].astype(jnp.float32)           # (B, 4H) leading-axis view
            return cell(xg, h, c, whf)

        h_f, c_f = lax.fori_loop(0, tc, body, (h_sc[...], c_sc[...]),
                                 unroll=unroll)
        h_sc[...] = h_f
        c_sc[...] = c_f

        @pl.when(tb == pl.num_programs(0) - 1)
        def _fin():
            zeros = jnp.zeros((B, H), jnp.float32)
            xb = (jnp.dot(hl_ref[...], wib_ref[...],
                          preferred_element_type=jnp.float32) + bib_ref[...])
            h_b, _ = cell(xb, zeros, zeros, whb_ref[...])
            hh = jnp.concatenate([h_f, h_b], axis=-1)    # (B, 2H)
            o_ref[...] = (jnp.dot(hh, wfc_ref[...],
                                  preferred_element_type=jnp.float32)
                          + bfc_ref[...])

    return pl.pallas_call(
        kern,
        grid=grid,
        in_specs=[
            pl.BlockSpec((tc, B, 4 * H), lambda tb: (tb, 0, 0)),   # streamed bf16
            pl.BlockSpec((B, D), lambda tb: (0, 0)),
            pl.BlockSpec((D, 4 * H), lambda tb: (0, 0)),
            pl.BlockSpec((1, 4 * H), lambda tb: (0, 0)),
            pl.BlockSpec((H, 4 * H), lambda tb: (0, 0)),
            pl.BlockSpec((H, 4 * H), lambda tb: (0, 0)),
            pl.BlockSpec((2 * H, C), lambda tb: (0, 0)),
            pl.BlockSpec((1, C), lambda tb: (0, 0)),
        ],
        out_specs=pl.BlockSpec((B, C), lambda tb: (0, 0)),
        out_shape=jax.ShapeDtypeStruct((B, C), jnp.float32),
        scratch_shapes=[pltpu.VMEM((B, H), jnp.float32),
                        pltpu.VMEM((B, H), jnp.float32)],
        compiler_params=pltpu.CompilerParams(
            dimension_semantics=("arbitrary",),
            vmem_limit_bytes=_VMEM_LIMIT),
    )(xpf_tm.astype(jnp.bfloat16), h_last.astype(jnp.bfloat16),
      wib_t.astype(jnp.bfloat16), bib.reshape(1, 4 * H).astype(jnp.float32),
      whh_f_t.astype(jnp.bfloat16), whh_b_t.astype(jnp.bfloat16),
      wfc_t.astype(jnp.float32), bfc.reshape(1, C).astype(jnp.float32))


# ----------------------------------------------------------------------------
# Parameter construction (deterministic, pre-packed & pre-cast once)
# ----------------------------------------------------------------------------
def make_params(key, vocab, max_pos, D, nH, FF, H, C):
    ks = jax.random.split(key, 20)
    n = lambda i, shape, s=0.02: s * jax.random.normal(ks[i], shape, jnp.float32)
    Wq, Wk, Wv = n(2, (D, D)), n(3, (D, D)), n(4, (D, D))
    return dict(
        word_emb=n(0, (vocab, D)),
        pos_emb=n(1, (max_pos, D)),
        ln_emb_g=jnp.ones((D,), jnp.float32), ln_emb_b=jnp.zeros((D,), jnp.float32),
        # Packed [K | V | Q] projection, pre-cast to bf16 (one-time cost).
        Wkvq=jnp.concatenate([Wk, Wv, Wq], axis=1).astype(jnp.bfloat16),
        bkvq=jnp.zeros((3 * D,), jnp.float32),
        Wo=n(5, (D, D)).astype(jnp.bfloat16), bo=jnp.zeros((D,), jnp.float32),
        ln1_g=jnp.ones((D,), jnp.float32), ln1_b=jnp.zeros((D,), jnp.float32),
        W1=n(6, (D, FF)).astype(jnp.bfloat16), b1=jnp.zeros((FF,), jnp.float32),
        W2=n(7, (FF, D)).astype(jnp.bfloat16), b2=jnp.zeros((D,), jnp.float32),
        ln2_g=jnp.ones((D,), jnp.float32), ln2_b=jnp.zeros((D,), jnp.float32),
        # BiLSTM (PyTorch layout W_ih (4H, D), W_hh (4H, H); stored transposed,
        # b_ih + b_hh folded, bf16 pre-cast).
        Wih_f_t=n(8, (D, 4 * H), 0.1).astype(jnp.bfloat16),
        Whh_f_t=n(9, (H, 4 * H), 0.1).astype(jnp.bfloat16),
        bif=n(10, (4 * H,), 0.1) + n(11, (4 * H,), 0.1),
        Wih_b_t=n(12, (D, 4 * H), 0.1).astype(jnp.bfloat16),
        Whh_b_t=n(13, (H, 4 * H), 0.1).astype(jnp.bfloat16),
        bib=n(14, (4 * H,), 0.1) + n(15, (4 * H,), 0.1),
        # Final head: nn.Linear(2H, C)
        Wfc_t=n(16, (2 * H, C), 0.1), bfc=jnp.zeros((C,), jnp.float32),
    )


# ----------------------------------------------------------------------------
# Full forward pass  (mirrors BERTBiLSTMClassifier.forward)
# ----------------------------------------------------------------------------
def bert_bilstm_classifier_forward(p, input_ids, attention_mask, *, nH, H):
    B, T = input_ids.shape
    D = p["word_emb"].shape[1]
    C = p["bfc"].shape[0]

    # ---- synthetic BERT encoder (single layer): hidden_states[-1] ----------
    # TODO(synk): token/position embedding gather stays in XLA glue; a
    # scalar-prefetch DMA-gather kernel would be needed for a pure-Pallas path.
    we = p["word_emb"][input_ids].reshape(B * T, D)
    pe = jnp.broadcast_to(p["pos_emb"][None, :T, :], (B, T, D)).reshape(B * T, D)

    # Fused: LayerNorm(word + pos) + packed [K|V|Q] projection (one launch).
    h, kvq = addln_matmul(we, pe, p["ln_emb_g"], p["ln_emb_b"],
                          p["Wkvq"], p["bkvq"], out_dtype=jnp.bfloat16)

    mask_add = ((1.0 - attention_mask.astype(jnp.float32)) * (-1e9)).reshape(B, 1, T)
    ctx = attention(kvq.reshape(B, T, 3 * D), mask_add, nH=nH, D=D)   # (B,T,D) bf16

    attn_out = matmul_bias(ctx.reshape(B * T, D), p["Wo"], p["bo"],
                           out_dtype=jnp.bfloat16)                    # (B*T,D) bf16

    # Fused: LayerNorm(h + attn_out) + FFN first matmul + GELU.
    h1, inter = addln_matmul(h, attn_out, p["ln1_g"], p["ln1_b"],
                             p["W1"], p["b1"], act="gelu",
                             out_dtype=jnp.bfloat16)                  # (B*T,FF) bf16

    ffn_out = matmul_bias(inter, p["W2"], p["b2"],
                          out_dtype=jnp.bfloat16)                     # (B*T,D) bf16

    # Fused: LayerNorm(h1 + ffn_out) + FORWARD-direction LSTM input projection
    # (b_ih + b_hh folded).  Backward direction only needs t = T-1, projected
    # inside bilstm_head from hidden_states[:, T-1, :].
    hid, xpf = addln_matmul(h1, ffn_out, p["ln2_g"], p["ln2_b"],
                            p["Wih_f_t"], p["bif"],
                            out_dtype=jnp.bfloat16)                   # (B*T,4H) bf16

    # ---- BiLSTM recurrence + fc head (single streamed kernel) ---------------
    # TODO(synk): bf16 XLA time-major transpose; a strided-DMA kernel could
    # read the (B, T, 4H) layout directly instead.
    xpf_tm = xpf.reshape(B, T, 4 * H).transpose(1, 0, 2)              # (T,B,4H) bf16
    h_last = hid.reshape(B, T, D)[:, T - 1, :]                        # (B, D) bf16
    logits = bilstm_head(xpf_tm, h_last, p["Wih_b_t"], p["bib"],
                         p["Whh_f_t"], p["Whh_b_t"], p["Wfc_t"], p["bfc"],
                         H=H, C=C)                                    # (B, C) f32
    return logits


# ----------------------------------------------------------------------------
if __name__ == "__main__":
    # Small, module-consistent shapes (D kept a multiple of 128 so the toy run
    # exercises the production lane-split attention path).
    B, T = 2, 8              # batch, sequence length
    vocab, max_pos = 100, 64
    D, nH, FF = 128, 4, 256  # BERT hidden size, heads, FFN dim
    H, C = 32, 3             # LSTM hidden_dim, num_classes

    key = jax.random.PRNGKey(0)
    pkey, ikey = jax.random.split(key)
    params = make_params(pkey, vocab, max_pos, D, nH, FF, H, C)

    input_ids = jax.random.randint(ikey, (B, T), 0, vocab, dtype=jnp.int32)
    attention_mask = jnp.ones((B, T), jnp.int32).at[:, -2:].set(0)  # pad last 2

    fwd = jax.jit(lambda p, ids, am: bert_bilstm_classifier_forward(
        p, ids, am, nH=nH, H=H))

    logits = fwd(params, input_ids, attention_mask)
    logits = jax.block_until_ready(logits)

    assert logits.shape == (B, C)
    assert bool(jnp.all(jnp.isfinite(logits)))
    print("KERNEL_OK")
</pallas_src>

<mosaic_0001>
module attributes {stable_mosaic.version = 11 : i64} {
  func.func @kern(%arg0: i32, %arg1: i32, %arg2: memref<16x128xf32, #tpu.memory_space<vmem>>, %arg3: memref<16x128xf32, #tpu.memory_space<vmem>>, %arg4: memref<1x128xf32, #tpu.memory_space<vmem>>, %arg5: memref<1x128xf32, #tpu.memory_space<vmem>>, %arg6: memref<128x384xbf16, #tpu.memory_space<vmem>>, %arg7: memref<1x384xf32, #tpu.memory_space<vmem>>, %arg8: memref<16x128xbf16, #tpu.memory_space<vmem>>, %arg9: memref<16x384xbf16, #tpu.memory_space<vmem>>, %arg10: memref<16x128xbf16, #tpu.memory_space<vmem>>) attributes {dimension_semantics = [#tpu.dimension_semantics<parallel>, #tpu.dimension_semantics<arbitrary>], iteration_bounds = array<i64: 1, 1>, scalar_prefetch = 0 : i64, scratch_operands = 1 : i64, tpu.core_type = #tpu.core_type<tc>, window_params = [{transform_indices = @transform_0, window_bounds = array<i64: 16, 128>}, {transform_indices = @transform_1, window_bounds = array<i64: 16, 128>}, {pipeline_mode = #tpu.pipeline_mode<synchronous>, transform_indices = @transform_2, window_bounds = array<i64: 1, 128>}, {pipeline_mode = #tpu.pipeline_mode<synchronous>, transform_indices = @transform_3, window_bounds = array<i64: 1, 128>}, {transform_indices = @transform_4, window_bounds = array<i64: 128, 384>}, {transform_indices = @transform_5, window_bounds = array<i64: 1, 384>}, {transform_indices = @transform_6, window_bounds = array<i64: 16, 128>}, {transform_indices = @transform_7, window_bounds = array<i64: 16, 384>}]} {
    %c0_i32 = arith.constant 0 : i32
    %0 = arith.cmpi eq, %arg1, %c0_i32 : i32
    %1 = arith.extui %0 : i1 to i32
    %c0_i32_0 = arith.constant 0 : i32
    %2 = arith.cmpi ne, %1, %c0_i32_0 : i32
    scf.if %2 {
      %c0_8 = arith.constant 0 : index
      %c0_9 = arith.constant 0 : index
      %11 = vector.load %arg2[%c0_8, %c0_9] : memref<16x128xf32, #tpu.memory_space<vmem>>, vector<16x128xf32>
      %c0_10 = arith.constant 0 : index
      %c0_11 = arith.constant 0 : index
      %12 = vector.load %arg3[%c0_10, %c0_11] : memref<16x128xf32, #tpu.memory_space<vmem>>, vector<16x128xf32>
      %13 = arith.addf %11, %12 : vector<16x128xf32>
      %cst_12 = arith.constant dense<0.000000e+00> : vector<16xf32>
      %14 = vector.multi_reduction <add>, %13, %cst_12 [1] : vector<16x128xf32> to vector<16xf32>
      %15 = vector.shape_cast %14 : vector<16xf32> to vector<16x1xf32>
      %cst_13 = arith.constant 1.280000e+02 : f32
      %16 = vector.broadcast %cst_13 : f32 to vector<16x1xf32>
      %17 = arith.divf %15, %16 : vector<16x1xf32>
      %18 = vector.broadcast %17 : vector<16x1xf32> to vector<16x128xf32>
      %19 = arith.subf %13, %18 : vector<16x128xf32>
      %20 = arith.mulf %19, %19 : vector<16x128xf32>
      %cst_14 = arith.constant dense<0.000000e+00> : vector<16xf32>
      %21 = vector.multi_reduction <add>, %20, %cst_14 [1] : vector<16x128xf32> to vector<16xf32>
      %22 = vector.shape_cast %21 : vector<16xf32> to vector<16x1xf32>
      %cst_15 = arith.constant 1.280000e+02 : f32
      %23 = vector.broadcast %cst_15 : f32 to vector<16x1xf32>
      %24 = arith.divf %22, %23 : vector<16x1xf32>
      %25 = vector.broadcast %17 : vector<16x1xf32> to vector<16x128xf32>
      %26 = arith.subf %13, %25 : vector<16x128xf32>
      %cst_16 = arith.constant 9.99999996E-13 : f32
      %27 = vector.broadcast %cst_16 : f32 to vector<16x1xf32>
      %28 = arith.addf %24, %27 : vector<16x1xf32>
      %29 = math.rsqrt %28 : vector<16x1xf32>
      %30 = vector.broadcast %29 : vector<16x1xf32> to vector<16x128xf32>
      %31 = arith.mulf %26, %30 : vector<16x128xf32>
      %c0_17 = arith.constant 0 : index
      %c0_18 = arith.constant 0 : index
      %32 = vector.load %arg4[%c0_17, %c0_18] : memref<1x128xf32, #tpu.memory_space<vmem>>, vector<1x128xf32>
      %33 = vector.broadcast %32 : vector<1x128xf32> to vector<16x128xf32>
      %34 = arith.mulf %31, %33 : vector<16x128xf32>
      %c0_19 = arith.constant 0 : index
      %c0_20 = arith.constant 0 : index
      %35 = vector.load %arg5[%c0_19, %c0_20] : memref<1x128xf32, #tpu.memory_space<vmem>>, vector<1x128xf32>
      %36 = vector.broadcast %35 : vector<1x128xf32> to vector<16x128xf32>
      %37 = arith.addf %34, %36 : vector<16x128xf32>
      %38 = arith.truncf %37 : vector<16x128xf32> to vector<16x128xbf16>
      %c0_21 = arith.constant 0 : index
      %c0_22 = arith.constant 0 : index
      %39 = vector.load %arg10[%c0_21, %c0_22] : memref<16x128xbf16, #tpu.memory_space<vmem>>, vector<16x128xbf16>
      tpu.vector_store %arg10[%c0_21, %c0_22], %38 {strides = array<i32>} : memref<16x128xbf16, #tpu.memory_space<vmem>>, vector<16x128xbf16>,
      %40 = arith.truncf %37 : vector<16x128xf32> to vector<16x128xbf16>
      %c0_23 = arith.constant 0 : index
      %c0_24 = arith.constant 0 : index
      %41 = vector.load %arg8[%c0_23, %c0_24] : memref<16x128xbf16, #tpu.memory_space<vmem>>, vector<16x128xbf16>
      tpu.vector_store %arg8[%c0_23, %c0_24], %40 {strides = array<i32>} : memref<16x128xbf16, #tpu.memory_space<vmem>>, vector<16x128xbf16>,
    } else {
    }
    %c0 = arith.constant 0 : index
    %c0_1 = arith.constant 0 : index
    %3 = vector.load %arg10[%c0, %c0_1] : memref<16x128xbf16, #tpu.memory_space<vmem>>, vector<16x128xbf16>
    %c0_2 = arith.constant 0 : index
    %c0_3 = arith.constant 0 : index
    %4 = vector.load %arg6[%c0_2, %c0_3] : memref<128x384xbf16, #tpu.memory_space<vmem>>, vector<128x384xbf16>
    %cst = arith.constant dense<0.000000e+00> : vector<16x384xf32>
    %5 = tpu.matmul %3, %4, %cst {dimension_numbers = #tpu.dot_dimension_numbers<[1], [0], [0], [1], [0, 0, 1, 1], [], []>} : vector<16x128xbf16>, vector<128x384xbf16>, vector<16x384xf32> -> vector<16x384xf32>
    %c0_4 = arith.constant 0 : index
    %c0_5 = arith.constant 0 : index
    %6 = vector.load %arg7[%c0_4, %c0_5] : memref<1x384xf32, #tpu.memory_space<vmem>>, vector<1x384xf32>
    %7 = vector.broadcast %6 : vector<1x384xf32> to vector<16x384xf32>
    %8 = arith.addf %5, %7 : vector<16x384xf32>
    %9 = arith.truncf %8 : vector<16x384xf32> to vector<16x384xbf16>
    %c0_6 = arith.constant 0 : index
    %c0_7 = arith.constant 0 : index
    %10 = vector.load %arg9[%c0_6, %c0_7] : memref<16x384xbf16, #tpu.memory_space<vmem>>, vector<16x384xbf16>
    tpu.vector_store %arg9[%c0_6, %c0_7], %9 {strides = array<i32>} : memref<16x384xbf16, #tpu.memory_space<vmem>>, vector<16x384xbf16>,
    return
  }
  func.func @transform_0(%arg0: i32, %arg1: i32) -> (i32, i32) {
    %c0_i32 = arith.constant 0 : i32
    %c0_i32_0 = arith.constant 0 : i32
    return %arg0, %c0_i32 : i32, i32
  }
  func.func @transform_1(%arg0: i32, %arg1: i32) -> (i32, i32) {
    %c0_i32 = arith.constant 0 : i32
    %c0_i32_0 = arith.constant 0 : i32
    return %arg0, %c0_i32 : i32, i32
  }
  func.func @transform_2(%arg0: i32, %arg1: i32) -> (i32, i32) {
    %c0_i32 = arith.constant 0 : i32
    %c0_i32_0 = arith.constant 0 : i32
    %c0_i32_1 = arith.constant 0 : i32
    return %c0_i32, %c0_i32_0 : i32, i32
  }
  func.func @transform_3(%arg0: i32, %arg1: i32) -> (i32, i32) {
    %c0_i32 = arith.constant 0 : i32
    %c0_i32_0 = arith.constant 0 : i32
    %c0_i32_1 = arith.constant 0 : i32
    return %c0_i32, %c0_i32_0 : i32, i32
  }
  func.func @transform_4(%arg0: i32, %arg1: i32) -> (i32, i32) {
    %c0_i32 = arith.constant 0 : i32
    %c0_i32_0 = arith.constant 0 : i32
    return %c0_i32, %arg1 : i32, i32
  }
  func.func @transform_5(%arg0: i32, %arg1: i32) -> (i32, i32) {
    %c0_i32 = arith.constant 0 : i32
    %c0_i32_0 = arith.constant 0 : i32
    return %c0_i32, %arg1 : i32, i32
  }
  func.func @transform_6(%arg0: i32, %arg1: i32) -> (i32, i32) {
    %c0_i32 = arith.constant 0 : i32
    %c0_i32_0 = arith.constant 0 : i32
    return %arg0, %c0_i32 : i32, i32
  }
  func.func @transform_7(%arg0: i32, %arg1: i32) -> (i32, i32) {
    %c0_i32 = arith.constant 0 : i32
    return %arg0, %arg1 : i32, i32
  }
}

module attributes {stable_mosaic.version = 11 : i64} {
  func.func @kern(%arg0: i32, %arg1: i32, %arg2: i32, %arg3: memref<16x128xbf16, #tpu.memory_space<vmem>>, %arg4: memref<128x128xbf16, #tpu.memory_space<vmem>>, %arg5: memref<1x128xf32, #tpu.memory_space<vmem>>, %arg6: memref<16x128xbf16, #tpu.memory_space<vmem>>, %arg7: memref<16x128xf32, #tpu.memory_space<vmem>>) attributes {dimension_semantics = [#tpu.dimension_semantics<parallel>, #tpu.dimension_semantics<parallel>, #tpu.dimension_semantics<arbitrary>], iteration_bounds = array<i64: 1, 1, 1>, scalar_prefetch = 0 : i64, scratch_operands = 1 : i64, tpu.core_type = #tpu.core_type<tc>, window_params = [{transform_indices = @transform_0, window_bounds = array<i64: 16, 128>}, {transform_indices = @transform_1, window_bounds = array<i64: 128, 128>}, {transform_indices = @transform_2, window_bounds = array<i64: 1, 128>}, {transform_indices = @transform_3, window_bounds = array<i64: 16, 128>}]} {
    %c0_i32 = arith.constant 0 : i32
    %0 = arith.cmpi eq, %arg2, %c0_i32 : i32
    %1 = arith.extui %0 : i1 to i32
    %c0_i32_0 = arith.constant 0 : i32
    %2 = arith.cmpi ne, %1, %c0_i32_0 : i32
    scf.if %2 {
      %cst_10 = arith.constant 0.000000e+00 : f32
      %12 = vector.broadcast %cst_10 : f32 to vector<16x128xf32>
      %c0_11 = arith.constant 0 : index
      %c0_12 = arith.constant 0 : index
      %13 = vector.load %arg7[%c0_11, %c0_12] : memref<16x128xf32, #tpu.memory_space<vmem>>, vector<16x128xf32>
      tpu.vector_store %arg7[%c0_11, %c0_12], %12 {strides = array<i32>} : memref<16x128xf32, #tpu.memory_space<vmem>>, vector<16x128xf32>,
    } else {
    }
    %c0 = arith.constant 0 : index
    %c0_1 = arith.constant 0 : index
    %3 = vector.load %arg7[%c0, %c0_1] : memref<16x128xf32, #tpu.memory_space<vmem>>, vector<16x128xf32>
    %c0_2 = arith.constant 0 : index
    %c0_3 = arith.constant 0 : index
    %4 = vector.load %arg3[%c0_2, %c0_3] : memref<16x128xbf16, #tpu.memory_space<vmem>>, vector<16x128xbf16>
    %c0_4 = arith.constant 0 : index
    %c0_5 = arith.constant 0 : index
    %5 = vector.load %arg4[%c0_4, %c0_5] : memref<128x128xbf16, #tpu.memory_space<vmem>>, vector<128x128xbf16>
    %cst = arith.constant dense<0.000000e+00> : vector<16x128xf32>
    %6 = tpu.matmul %4, %5, %cst {dimension_numbers = #tpu.dot_dimension_numbers<[1], [0], [0], [1], [0, 0, 1, 1], [], []>} : vector<16x128xbf16>, vector<128x128xbf16>, vector<16x128xf32> -> vector<16x128xf32>
    %7 = arith.addf %3, %6 : vector<16x128xf32>
    %c0_6 = arith.constant 0 : index
    %c0_7 = arith.constant 0 : index
    %8 = vector.load %arg7[%c0_6, %c0_7] : memref<16x128xf32, #tpu.memory_space<vmem>>, vector<16x128xf32>
    tpu.vector_store %arg7[%c0_6, %c0_7], %7 {strides = array<i32>} : memref<16x128xf32, #tpu.memory_space<vmem>>, vector<16x128xf32>,
    %c0_i32_8 = arith.constant 0 : i32
    %9 = arith.cmpi eq, %arg2, %c0_i32_8 : i32
    %10 = arith.extui %9 : i1 to i32
    %c0_i32_9 = arith.constant 0 : i32
    %11 = arith.cmpi ne, %10, %c0_i32_9 : i32
    scf.if %11 {
      %c0_10 = arith.constant 0 : index
      %c0_11 = arith.constant 0 : index
      %12 = vector.load %arg7[%c0_10, %c0_11] : memref<16x128xf32, #tpu.memory_space<vmem>>, vector<16x128xf32>
      %c0_12 = arith.constant 0 : index
      %c0_13 = arith.constant 0 : index
      %13 = vector.load %arg5[%c0_12, %c0_13] : memref<1x128xf32, #tpu.memory_space<vmem>>, vector<1x128xf32>
      %14 = vector.broadcast %13 : vector<1x128xf32> to vector<16x128xf32>
      %15 = arith.addf %12, %14 : vector<16x128xf32>
      %16 = arith.truncf %15 : vector<16x128xf32> to vector<16x128xbf16>
      %c0_14 = arith.constant 0 : index
      %c0_15 = arith.constant 0 : index
      %17 = vector.load %arg6[%c0_14, %c0_15] : memref<16x128xbf16, #tpu.memory_space<vmem>>, vector<16x128xbf16>
      tpu.vector_store %arg6[%c0_14, %c0_15], %16 {strides = array<i32>} : memref<16x128xbf16, #tpu.memory_space<vmem>>, vector<16x128xbf16>,
    } else {
    }
    return
  }
  func.func @transform_0(%arg0: i32, %arg1: i32, %arg2: i32) -> (i32, i32) {
    %c0_i32 = arith.constant 0 : i32
    return %arg0, %arg2 : i32, i32
  }
  func.func @transform_1(%arg0: i32, %arg1: i32, %arg2: i32) -> (i32, i32) {
    %c0_i32 = arith.constant 0 : i32
    return %arg2, %arg1 : i32, i32
  }
  func.func @transform_2(%arg0: i32, %arg1: i32, %arg2: i32) -> (i32, i32) {
    %c0_i32 = arith.constant 0 : i32
    %c0_i32_0 = arith.constant 0 : i32
    return %c0_i32, %arg1 : i32, i32
  }
  func.func @transform_3(%arg0: i32, %arg1: i32, %arg2: i32) -> (i32, i32) {
    %c0_i32 = arith.constant 0 : i32
    return %arg0, %arg1 : i32, i32
  }
}

module attributes {stable_mosaic.version = 11 : i64} {
  func.func @kern(%arg0: i32, %arg1: i32, %arg2: memref<1x8x256xbf16, #tpu.memory_space<vmem>>, %arg3: memref<1x8x128xbf16, #tpu.memory_space<vmem>>, %arg4: memref<1x1x8xf32, #tpu.memory_space<vmem>>, %arg5: memref<1x8x128xbf16, #tpu.memory_space<vmem>>) attributes {dimension_semantics = [#tpu.dimension_semantics<parallel>, #tpu.dimension_semantics<parallel>], iteration_bounds = array<i64: 2, 1>, scalar_prefetch = 0 : i64, scratch_operands = 0 : i64, tpu.core_type = #tpu.core_type<tc>, window_params = [{transform_indices = @transform_0, window_bounds = array<i64: 1, 8, 256>}, {transform_indices = @transform_1, window_bounds = array<i64: 1, 8, 128>}, {transform_indices = @transform_2, window_bounds = array<i64: 1, 1, 8>}, {transform_indices = @transform_3, window_bounds = array<i64: 1, 8, 128>}]} {
    %c0 = arith.constant 0 : index
    %c0_0 = arith.constant 0 : index
    %c0_1 = arith.constant 0 : index
    %0 = vector.load %arg2[%c0, %c0_0, %c0_1] : memref<1x8x256xbf16, #tpu.memory_space<vmem>>, vector<1x8x256xbf16>
    %1 = vector.shape_cast %0 : vector<1x8x256xbf16> to vector<8x256xbf16>
    %c0_2 = arith.constant 0 : index
    %c0_3 = arith.constant 0 : index
    %c0_4 = arith.constant 0 : index
    %2 = vector.load %arg3[%c0_2, %c0_3, %c0_4] : memref<1x8x128xbf16, #tpu.memory_space<vmem>>, vector<1x8x128xbf16>
    %3 = vector.shape_cast %2 : vector<1x8x128xbf16> to vector<8x128xbf16>
    %c0_5 = arith.constant 0 : index
    %c0_6 = arith.constant 0 : index
    %c0_7 = arith.constant 0 : index
    %4 = vector.load %arg4[%c0_5, %c0_6, %c0_7] : memref<1x1x8xf32, #tpu.memory_space<vmem>>, vector<1x1x8xf32>
    %5 = vector.shape_cast %4 : vector<1x1x8xf32> to vector<1x8xf32>
    %6 = vector.shape_cast %5 : vector<1x8xf32> to vector<1x8xf32>
    %7 = vector.broadcast %6 : vector<1x8xf32> to vector<8x8xf32>
    %8 = vector.extract_strided_slice %3 {offsets = [0, 0], sizes = [8, 32], strides = [1, 1]} : vector<8x128xbf16> to vector<8x32xbf16>
    %cst = arith.constant 1.767580e-01 : bf16
    %9 = vector.broadcast %cst : bf16 to vector<8x32xbf16>
    %10 = arith.mulf %8, %9 : vector<8x32xbf16>
    %11 = vector.extract_strided_slice %1 {offsets = [0, 0], sizes = [8, 32], strides = [1, 1]} : vector<8x256xbf16> to vector<8x32xbf16>
    %12 = vector.extract_strided_slice %1 {offsets = [0, 128], sizes = [8, 32], strides = [1, 1]} : vector<8x256xbf16> to vector<8x32xbf16>
    %cst_8 = arith.constant dense<0.000000e+00> : vector<8x8xf32>
    %13 = tpu.matmul %10, %11, %cst_8 {dimension_numbers = #tpu.dot_dimension_numbers<[1], [1], [0], [0], [0, 0, 1, 0], [], []>} : vector<8x32xbf16>, vector<8x32xbf16>, vector<8x8xf32> -> vector<8x8xf32>
    %14 = arith.addf %13, %7 : vector<8x8xf32>
    %cst_9 = arith.constant dense<0xFF800000> : vector<8xf32>
    %15 = vector.multi_reduction <maximumf>, %14, %cst_9 [1] : vector<8x8xf32> to vector<8xf32>
    %16 = vector.shape_cast %15 : vector<8xf32> to vector<8x1xf32>
    %17 = vector.broadcast %16 : vector<8x1xf32> to vector<8x8xf32>
    %18 = arith.subf %14, %17 : vector<8x8xf32>
    %19 = math.exp %18 : vector<8x8xf32>
    %cst_10 = arith.constant dense<0.000000e+00> : vector<8xf32>
    %20 = vector.multi_reduction <add>, %19, %cst_10 [1] : vector<8x8xf32> to vector<8xf32>
    %21 = vector.shape_cast %20 : vector<8xf32> to vector<8x1xf32>
    %22 = tpu.reciprocal %21 {approx = true} : vector<8x1xf32> -> vector<8x1xf32>
    %23 = vector.broadcast %22 : vector<8x1xf32> to vector<8x8xf32>
    %24 = arith.mulf %19, %23 : vector<8x8xf32>
    %25 = arith.truncf %24 : vector<8x8xf32> to vector<8x8xbf16>
    %cst_11 = arith.constant dense<0.000000e+00> : vector<8x32xf32>
    %26 = tpu.matmul %25, %12, %cst_11 {dimension_numbers = #tpu.dot_dimension_numbers<[1], [0], [0], [1], [0, 0, 1, 1], [], []>} : vector<8x8xbf16>, vector<8x32xbf16>, vector<8x32xf32> -> vector<8x32xf32>
    %27 = arith.truncf %26 : vector<8x32xf32> to vector<8x32xbf16>
    %28 = vector.extract_strided_slice %3 {offsets = [0, 32], sizes = [8, 32], strides = [1, 1]} : vector<8x128xbf16> to vector<8x32xbf16>
    %cst_12 = arith.constant 1.767580e-01 : bf16
    %29 = vector.broadcast %cst_12 : bf16 to vector<8x32xbf16>
    %30 = arith.mulf %28, %29 : vector<8x32xbf16>
    %31 = vector.extract_strided_slice %1 {offsets = [0, 32], sizes = [8, 32], strides = [1, 1]} : vector<8x256xbf16> to vector<8x32xbf16>
    %32 = vector.extract_strided_slice %1 {offsets = [0, 160], sizes = [8, 32], strides = [1, 1]} : vector<8x256xbf16> to vector<8x32xbf16>
    %cst_13 = arith.constant dense<0.000000e+00> : vector<8x8xf32>
    %33 = tpu.matmul %30, %31, %cst_13 {dimension_numbers = #tpu.dot_dimension_numbers<[1], [1], [0], [0], [0, 0, 1, 0], [], []>} : vector<8x32xbf16>, vector<8x32xbf16>, vector<8x8xf32> -> vector<8x8xf32>
    %34 = arith.addf %33, %7 : vector<8x8xf32>
    %cst_14 = arith.constant dense<0xFF800000> : vector<8xf32>
    %35 = vector.multi_reduction <maximumf>, %34, %cst_14 [1] : vector<8x8xf32> to vector<8xf32>
    %36 = vector.shape_cast %35 : vector<8xf32> to vector<8x1xf32>
    %37 = vector.broadcast %36 : vector<8x1xf32> to vector<8x8xf32>
    %38 = arith.subf %34, %37 : vector<8x8xf32>
    %39 = math.exp %38 : vector<8x8xf32>
    %cst_15 = arith.constant dense<0.000000e+00> : vector<8xf32>
    %40 = vector.multi_reduction <add>, %39, %cst_15 [1] : vector<8x8xf32> to vector<8xf32>
    %41 = vector.shape_cast %40 : vector<8xf32> to vector<8x1xf32>
    %42 = tpu.reciprocal %41 {approx = true} : vector<8x1xf32> -> vector<8x1xf32>
    %43 = vector.broadcast %42 : vector<8x1xf32> to vector<8x8xf32>
    %44 = arith.mulf %39, %43 : vector<8x8xf32>
    %45 = arith.truncf %44 : vector<8x8xf32> to vector<8x8xbf16>
    %cst_16 = arith.constant dense<0.000000e+00> : vector<8x32xf32>
    %46 = tpu.matmul %45, %32, %cst_16 {dimension_numbers = #tpu.dot_dimension_numbers<[1], [0], [0], [1], [0, 0, 1, 1], [], []>} : vector<8x8xbf16>, vector<8x32xbf16>, vector<8x32xf32> -> vector<8x32xf32>
    %47 = arith.truncf %46 : vector<8x32xf32> to vector<8x32xbf16>
    %48 = tpu.concatenate %27, %47 in 1 : vector<8x32xbf16>, vector<8x32xbf16> -> vector<8x64xbf16>
    %c0_17 = arith.constant 0 : index
    %c0_18 = arith.constant 0 : index
    %c0_19 = arith.constant 0 : index
    %49 = vector.load %arg5[%c0_17, %c0_18, %c0_19] : memref<1x8x128xbf16, #tpu.memory_space<vmem>>, vector<1x8x64xbf16>
    %50 = vector.shape_cast %49 : vector<1x8x64xbf16> to vector<8x64xbf16>
    %51 = vector.shape_cast %48 : vector<8x64xbf16> to vector<1x8x64xbf16>
    tpu.vector_store %arg5[%c0_17, %c0_18, %c0_19], %51 {strides = array<i32>} : memref<1x8x128xbf16, #tpu.memory_space<vmem>>, vector<1x8x64xbf16>,
    %52 = vector.extract_strided_slice %3 {offsets = [0, 64], sizes = [8, 32], strides = [1, 1]} : vector<8x128xbf16> to vector<8x32xbf16>
    %cst_20 = arith.constant 1.767580e-01 : bf16
    %53 = vector.broadcast %cst_20 : bf16 to vector<8x32xbf16>
    %54 = arith.mulf %52, %53 : vector<8x32xbf16>
    %55 = vector.extract_strided_slice %1 {offsets = [0, 64], sizes = [8, 32], strides = [1, 1]} : vector<8x256xbf16> to vector<8x32xbf16>
    %56 = vector.extract_strided_slice %1 {offsets = [0, 192], sizes = [8, 32], strides = [1, 1]} : vector<8x256xbf16> to vector<8x32xbf16>
    %cst_21 = arith.constant dense<0.000000e+00> : vector<8x8xf32>
    %57 = tpu.matmul %54, %55, %cst_21 {dimension_numbers = #tpu.dot_dimension_numbers<[1], [1], [0], [0], [0, 0, 1, 0], [], []>} : vector<8x32xbf16>, vector<8x32xbf16>, vector<8x8xf32> -> vector<8x8xf32>
    %58 = arith.addf %57, %7 : vector<8x8xf32>
    %cst_22 = arith.constant dense<0xFF800000> : vector<8xf32>
    %59 = vector.multi_reduction <maximumf>, %58, %cst_22 [1] : vector<8x8xf32> to vector<8xf32>
    %60 = vector.shape_cast %59 : vector<8xf32> to vector<8x1xf32>
    %61 = vector.broadcast %60 : vector<8x1xf32> to vector<8x8xf32>
    %62 = arith.subf %58, %61 : vector<8x8xf32>
    %63 = math.exp %62 : vector<8x8xf32>
    %cst_23 = arith.constant dense<0.000000e+00> : vector<8xf32>
    %64 = vector.multi_reduction <add>, %63, %cst_23 [1] : vector<8x8xf32> to vector<8xf32>
    %65 = vector.shape_cast %64 : vector<8xf32> to vector<8x1xf32>
    %66 = tpu.reciprocal %65 {approx = true} : vector<8x1xf32> -> vector<8x1xf32>
    %67 = vector.broadcast %66 : vector<8x1xf32> to vector<8x8xf32>
    %68 = arith.mulf %63, %67 : vector<8x8xf32>
    %69 = arith.truncf %68 : vector<8x8xf32> to vector<8x8xbf16>
    %cst_24 = arith.constant dense<0.000000e+00> : vector<8x32xf32>
    %70 = tpu.matmul %69, %56, %cst_24 {dimension_numbers = #tpu.dot_dimension_numbers<[1], [0], [0], [1], [0, 0, 1, 1], [], []>} : vector<8x8xbf16>, vector<8x32xbf16>, vector<8x32xf32> -> vector<8x32xf32>
    %71 = arith.truncf %70 : vector<8x32xf32> to vector<8x32xbf16>
    %72 = vector.extract_strided_slice %3 {offsets = [0, 96], sizes = [8, 32], strides = [1, 1]} : vector<8x128xbf16> to vector<8x32xbf16>
    %cst_25 = arith.constant 1.767580e-01 : bf16
    %73 = vector.broadcast %cst_25 : bf16 to vector<8x32xbf16>
    %74 = arith.mulf %72, %73 : vector<8x32xbf16>
    %75 = vector.extract_strided_slice %1 {offsets = [0, 96], sizes = [8, 32], strides = [1, 1]} : vector<8x256xbf16> to vector<8x32xbf16>
    %76 = vector.extract_strided_slice %1 {offsets = [0, 224], sizes = [8, 32], strides = [1, 1]} : vector<8x256xbf16> to vector<8x32xbf16>
    %cst_26 = arith.constant dense<0.000000e+00> : vector<8x8xf32>
    %77 = tpu.matmul %74, %75, %cst_26 {dimension_numbers = #tpu.dot_dimension_numbers<[1], [1], [0], [0], [0, 0, 1, 0], [], []>} : vector<8x32xbf16>, vector<8x32xbf16>, vector<8x8xf32> -> vector<8x8xf32>
    %78 = arith.addf %77, %7 : vector<8x8xf32>
    %cst_27 = arith.constant dense<0xFF800000> : vector<8xf32>
    %79 = vector.multi_reduction <maximumf>, %78, %cst_27 [1] : vector<8x8xf32> to vector<8xf32>
    %80 = vector.shape_cast %79 : vector<8xf32> to vector<8x1xf32>
    %81 = vector.broadcast %80 : vector<8x1xf32> to vector<8x8xf32>
    %82 = arith.subf %78, %81 : vector<8x8xf32>
    %83 = math.exp %82 : vector<8x8xf32>
    %cst_28 = arith.constant dense<0.000000e+00> : vector<8xf32>
    %84 = vector.multi_reduction <add>, %83, %cst_28 [1] : vector<8x8xf32> to vector<8xf32>
    %85 = vector.shape_cast %84 : vector<8xf32> to vector<8x1xf32>
    %86 = tpu.reciprocal %85 {approx = true} : vector<8x1xf32> -> vector<8x1xf32>
    %87 = vector.broadcast %86 : vector<8x1xf32> to vector<8x8xf32>
    %88 = arith.mulf %83, %87 : vector<8x8xf32>
    %89 = arith.truncf %88 : vector<8x8xf32> to vector<8x8xbf16>
    %cst_29 = arith.constant dense<0.000000e+00> : vector<8x32xf32>
    %90 = tpu.matmul %89, %76, %cst_29 {dimension_numbers = #tpu.dot_dimension_numbers<[1], [0], [0], [1], [0, 0, 1, 1], [], []>} : vector<8x8xbf16>, vector<8x32xbf16>, vector<8x32xf32> -> vector<8x32xf32>
    %91 = arith.truncf %90 : vector<8x32xf32> to vector<8x32xbf16>
    %92 = tpu.concatenate %71, %91 in 1 : vector<8x32xbf16>, vector<8x32xbf16> -> vector<8x64xbf16>
    %c0_30 = arith.constant 0 : index
    %c0_31 = arith.constant 0 : index
    %c64 = arith.constant 64 : index
    %93 = vector.load %arg5[%c0_30, %c0_31, %c64] : memref<1x8x128xbf16, #tpu.memory_space<vmem>>, vector<1x8x64xbf16>
    %94 = vector.shape_cast %93 : vector<1x8x64xbf16> to vector<8x64xbf16>
    %95 = vector.shape_cast %92 : vector<8x64xbf16> to vector<1x8x64xbf16>
    tpu.vector_store %arg5[%c0_30, %c0_31, %c64], %95 {strides = array<i32>} : memref<1x8x128xbf16, #tpu.memory_space<vmem>>, vector<1x8x64xbf16>,
    return
  }
  func.func @transform_0(%arg0: i32, %arg1: i32) -> (i32, i32, i32) {
    %c0_i32 = arith.constant 0 : i32
    %c0_i32_0 = arith.constant 0 : i32
    %c0_i32_1 = arith.constant 0 : i32
    return %arg0, %c0_i32, %c0_i32_0 : i32, i32, i32
  }
  func.func @transform_1(%arg0: i32, %arg1: i32) -> (i32, i32, i32) {
    %c2_i32 = arith.constant 2 : i32
    %c0_i32 = arith.constant 0 : i32
    return %arg0, %arg1, %c2_i32 : i32, i32, i32
  }
  func.func @transform_2(%arg0: i32, %arg1: i32) -> (i32, i32, i32) {
    %c0_i32 = arith.constant 0 : i32
    %c0_i32_0 = arith.constant 0 : i32
    %c0_i32_1 = arith.constant 0 : i32
    return %arg0, %c0_i32, %c0_i32_0 : i32, i32, i32
  }
  func.func @transform_3(%arg0: i32, %arg1: i32) -> (i32, i32, i32) {
    %c0_i32 = arith.constant 0 : i32
    %c0_i32_0 = arith.constant 0 : i32
    return %arg0, %arg1, %c0_i32 : i32, i32, i32
  }
}

module attributes {stable_mosaic.version = 11 : i64} {
  func.func @kern(%arg0: i32, %arg1: i32, %arg2: memref<16x128xbf16, #tpu.memory_space<vmem>>, %arg3: memref<16x128xbf16, #tpu.memory_space<vmem>>, %arg4: memref<1x128xf32, #tpu.memory_space<vmem>>, %arg5: memref<1x128xf32, #tpu.memory_space<vmem>>, %arg6: memref<128x256xbf16, #tpu.memory_space<vmem>>, %arg7: memref<1x256xf32, #tpu.memory_space<vmem>>, %arg8: memref<16x128xbf16, #tpu.memory_space<vmem>>, %arg9: memref<16x256xbf16, #tpu.memory_space<vmem>>, %arg10: memref<16x128xbf16, #tpu.memory_space<vmem>>) attributes {dimension_semantics = [#tpu.dimension_semantics<parallel>, #tpu.dimension_semantics<arbitrary>], iteration_bounds = array<i64: 1, 1>, scalar_prefetch = 0 : i64, scratch_operands = 1 : i64, tpu.core_type = #tpu.core_type<tc>, window_params = [{transform_indices = @transform_0, window_bounds = array<i64: 16, 128>}, {transform_indices = @transform_1, window_bounds = array<i64: 16, 128>}, {pipeline_mode = #tpu.pipeline_mode<synchronous>, transform_indices = @transform_2, window_bounds = array<i64: 1, 128>}, {pipeline_mode = #tpu.pipeline_mode<synchronous>, transform_indices = @transform_3, window_bounds = array<i64: 1, 128>}, {transform_indices = @transform_4, window_bounds = array<i64: 128, 256>}, {transform_indices = @transform_5, window_bounds = array<i64: 1, 256>}, {transform_indices = @transform_6, window_bounds = array<i64: 16, 128>}, {transform_indices = @transform_7, window_bounds = array<i64: 16, 256>}]} {
    %c0_i32 = arith.constant 0 : i32
    %0 = arith.cmpi eq, %arg1, %c0_i32 : i32
    %1 = arith.extui %0 : i1 to i32
    %c0_i32_0 = arith.constant 0 : i32
    %2 = arith.cmpi ne, %1, %c0_i32_0 : i32
    scf.if %2 {
      %c0_12 = arith.constant 0 : index
      %c0_13 = arith.constant 0 : index
      %24 = vector.load %arg2[%c0_12, %c0_13] : memref<16x128xbf16, #tpu.memory_space<vmem>>, vector<16x128xbf16>
      %25 = arith.extf %24 : vector<16x128xbf16> to vector<16x128xf32>
      %c0_14 = arith.constant 0 : index
      %c0_15 = arith.constant 0 : index
      %26 = vector.load %arg3[%c0_14, %c0_15] : memref<16x128xbf16, #tpu.memory_space<vmem>>, vector<16x128xbf16>
      %27 = arith.extf %26 : vector<16x128xbf16> to vector<16x128xf32>
      %28 = arith.addf %25, %27 : vector<16x128xf32>
      %cst_16 = arith.constant dense<0.000000e+00> : vector<16xf32>
      %29 = vector.multi_reduction <add>, %28, %cst_16 [1] : vector<16x128xf32> to vector<16xf32>
      %30 = vector.shape_cast %29 : vector<16xf32> to vector<16x1xf32>
      %cst_17 = arith.constant 1.280000e+02 : f32
      %31 = vector.broadcast %cst_17 : f32 to vector<16x1xf32>
      %32 = arith.divf %30, %31 : vector<16x1xf32>
      %33 = vector.broadcast %32 : vector<16x1xf32> to vector<16x128xf32>
      %34 = arith.subf %28, %33 : vector<16x128xf32>
      %35 = arith.mulf %34, %34 : vector<16x128xf32>
      %cst_18 = arith.constant dense<0.000000e+00> : vector<16xf32>
      %36 = vector.multi_reduction <add>, %35, %cst_18 [1] : vector<16x128xf32> to vector<16xf32>
      %37 = vector.shape_cast %36 : vector<16xf32> to vector<16x1xf32>
      %cst_19 = arith.constant 1.280000e+02 : f32
      %38 = vector.broadcast %cst_19 : f32 to vector<16x1xf32>
      %39 = arith.divf %37, %38 : vector<16x1xf32>
      %40 = vector.broadcast %32 : vector<16x1xf32> to vector<16x128xf32>
      %41 = arith.subf %28, %40 : vector<16x128xf32>
      %cst_20 = arith.constant 9.99999996E-13 : f32
      %42 = vector.broadcast %cst_20 : f32 to vector<16x1xf32>
      %43 = arith.addf %39, %42 : vector<16x1xf32>
      %44 = math.rsqrt %43 : vector<16x1xf32>
      %45 = vector.broadcast %44 : vector<16x1xf32> to vector<16x128xf32>
      %46 = arith.mulf %41, %45 : vector<16x128xf32>
      %c0_21 = arith.constant 0 : index
      %c0_22 = arith.constant 0 : index
      %47 = vector.load %arg4[%c0_21, %c0_22] : memref<1x128xf32, #tpu.memory_space<vmem>>, vector<1x128xf32>
      %48 = vector.broadcast %47 : vector<1x128xf32> to vector<16x128xf32>
      %49 = arith.mulf %46, %48 : vector<16x128xf32>
      %c0_23 = arith.constant 0 : index
      %c0_24 = arith.constant 0 : index
      %50 = vector.load %arg5[%c0_23, %c0_24] : memref<1x128xf32, #tpu.memory_space<vmem>>, vector<1x128xf32>
      %51 = vector.broadcast %50 : vector<1x128xf32> to vector<16x128xf32>
      %52 = arith.addf %49, %51 : vector<16x128xf32>
      %53 = arith.truncf %52 : vector<16x128xf32> to vector<16x128xbf16>
      %c0_25 = arith.constant 0 : index
      %c0_26 = arith.constant 0 : index
      %54 = vector.load %arg10[%c0_25, %c0_26] : memref<16x128xbf16, #tpu.memory_space<vmem>>, vector<16x128xbf16>
      tpu.vector_store %arg10[%c0_25, %c0_26], %53 {strides = array<i32>} : memref<16x128xbf16, #tpu.memory_space<vmem>>, vector<16x128xbf16>,
      %55 = arith.truncf %52 : vector<16x128xf32> to vector<16x128xbf16>
      %c0_27 = arith.constant 0 : index
      %c0_28 = arith.constant 0 : index
      %56 = vector.load %arg8[%c0_27, %c0_28] : memref<16x128xbf16, #tpu.memory_space<vmem>>, vector<16x128xbf16>
      tpu.vector_store %arg8[%c0_27, %c0_28], %55 {strides = array<i32>} : memref<16x128xbf16, #tpu.memory_space<vmem>>, vector<16x128xbf16>,
    } else {
    }
    %c0 = arith.constant 0 : index
    %c0_1 = arith.constant 0 : index
    %3 = vector.load %arg10[%c0, %c0_1] : memref<16x128xbf16, #tpu.memory_space<vmem>>, vector<16x128xbf16>
    %c0_2 = arith.constant 0 : index
    %c0_3 = arith.constant 0 : index
    %4 = vector.load %arg6[%c0_2, %c0_3] : memref<128x256xbf16, #tpu.memory_space<vmem>>, vector<128x256xbf16>
    %cst = arith.constant dense<0.000000e+00> : vector<16x256xf32>
    %5 = tpu.matmul %3, %4, %cst {dimension_numbers = #tpu.dot_dimension_numbers<[1], [0], [0], [1], [0, 0, 1, 1], [], []>} : vector<16x128xbf16>, vector<128x256xbf16>, vector<16x256xf32> -> vector<16x256xf32>
    %c0_4 = arith.constant 0 : index
    %c0_5 = arith.constant 0 : index
    %6 = vector.load %arg7[%c0_4, %c0_5] : memref<1x256xf32, #tpu.memory_space<vmem>>, vector<1x256xf32>
    %7 = vector.broadcast %6 : vector<1x256xf32> to vector<16x256xf32>
    %8 = arith.addf %5, %7 : vector<16x256xf32>
    %9 = arith.mulf %8, %8 : vector<16x256xf32>
    %10 = arith.mulf %8, %9 : vector<16x256xf32>
    %cst_6 = arith.constant 4.471500e-02 : f32
    %11 = vector.broadcast %cst_6 : f32 to vector<16x256xf32>
    %12 = arith.mulf %11, %10 : vector<16x256xf32>
    %13 = arith.addf %8, %12 : vector<16x256xf32>
    %cst_7 = arith.constant 0.797884583 : f32
    %14 = vector.broadcast %cst_7 : f32 to vector<16x256xf32>
    %15 = arith.mulf %14, %13 : vector<16x256xf32>
    %16 = math.tanh %15 : vector<16x256xf32>
    %cst_8 = arith.constant 1.000000e+00 : f32
    %17 = vector.broadcast %cst_8 : f32 to vector<16x256xf32>
    %18 = arith.addf %17, %16 : vector<16x256xf32>
    %cst_9 = arith.constant 5.000000e-01 : f32
    %19 = vector.broadcast %cst_9 : f32 to vector<16x256xf32>
    %20 = arith.mulf %19, %18 : vector<16x256xf32>
    %21 = arith.mulf %8, %20 : vector<16x256xf32>
    %22 = arith.truncf %21 : vector<16x256xf32> to vector<16x256xbf16>
    %c0_10 = arith.constant 0 : index
    %c0_11 = arith.constant 0 : index
    %23 = vector.load %arg9[%c0_10, %c0_11] : memref<16x256xbf16, #tpu.memory_space<vmem>>, vector<16x256xbf16>
    tpu.vector_store %arg9[%c0_10, %c0_11], %22 {strides = array<i32>} : memref<16x256xbf16, #tpu.memory_space<vmem>>, vector<16x256xbf16>,
    return
  }
  func.func @transform_0(%arg0: i32, %arg1: i32) -> (i32, i32) {
    %c0_i32 = arith.constant 0 : i32
    %c0_i32_0 = arith.constant 0 : i32
    return %arg0, %c0_i32 : i32, i32
  }
  func.func @transform_1(%arg0: i32, %arg1: i32) -> (i32, i32) {
    %c0_i32 = arith.constant 0 : i32
    %c0_i32_0 = arith.constant 0 : i32
    return %arg0, %c0_i32 : i32, i32
  }
  func.func @transform_2(%arg0: i32, %arg1: i32) -> (i32, i32) {
    %c0_i32 = arith.constant 0 : i32
    %c0_i32_0 = arith.constant 0 : i32
    %c0_i32_1 = arith.constant 0 : i32
    return %c0_i32, %c0_i32_0 : i32, i32
  }
  func.func @transform_3(%arg0: i32, %arg1: i32) -> (i32, i32) {
    %c0_i32 = arith.constant 0 : i32
    %c0_i32_0 = arith.constant 0 : i32
    %c0_i32_1 = arith.constant 0 : i32
    return %c0_i32, %c0_i32_0 : i32, i32
  }
  func.func @transform_4(%arg0: i32, %arg1: i32) -> (i32, i32) {
    %c0_i32 = arith.constant 0 : i32
    %c0_i32_0 = arith.constant 0 : i32
    return %c0_i32, %arg1 : i32, i32
  }
  func.func @transform_5(%arg0: i32, %arg1: i32) -> (i32, i32) {
    %c0_i32 = arith.constant 0 : i32
    %c0_i32_0 = arith.constant 0 : i32
    return %c0_i32, %arg1 : i32, i32
  }
  func.func @transform_6(%arg0: i32, %arg1: i32) -> (i32, i32) {
    %c0_i32 = arith.constant 0 : i32
    %c0_i32_0 = arith.constant 0 : i32
    return %arg0, %c0_i32 : i32, i32
  }
  func.func @transform_7(%arg0: i32, %arg1: i32) -> (i32, i32) {
    %c0_i32 = arith.constant 0 : i32
    return %arg0, %arg1 : i32, i32
  }
}

module attributes {stable_mosaic.version = 11 : i64} {
  func.func @kern(%arg0: i32, %arg1: i32, %arg2: memref<16x128xbf16, #tpu.memory_space<vmem>>, %arg3: memref<16x128xbf16, #tpu.memory_space<vmem>>, %arg4: memref<1x128xf32, #tpu.memory_space<vmem>>, %arg5: memref<1x128xf32, #tpu.memory_space<vmem>>, %arg6: memref<128x128xbf16, #tpu.memory_space<vmem>>, %arg7: memref<1x128xf32, #tpu.memory_space<vmem>>, %arg8: memref<16x128xbf16, #tpu.memory_space<vmem>>, %arg9: memref<16x128xbf16, #tpu.memory_space<vmem>>, %arg10: memref<16x128xbf16, #tpu.memory_space<vmem>>) attributes {dimension_semantics = [#tpu.dimension_semantics<parallel>, #tpu.dimension_semantics<arbitrary>], iteration_bounds = array<i64: 1, 1>, scalar_prefetch = 0 : i64, scratch_operands = 1 : i64, tpu.core_type = #tpu.core_type<tc>, window_params = [{transform_indices = @transform_0, window_bounds = array<i64: 16, 128>}, {transform_indices = @transform_1, window_bounds = array<i64: 16, 128>}, {pipeline_mode = #tpu.pipeline_mode<synchronous>, transform_indices = @transform_2, window_bounds = array<i64: 1, 128>}, {pipeline_mode = #tpu.pipeline_mode<synchronous>, transform_indices = @transform_3, window_bounds = array<i64: 1, 128>}, {transform_indices = @transform_4, window_bounds = array<i64: 128, 128>}, {transform_indices = @transform_5, window_bounds = array<i64: 1, 128>}, {transform_indices = @transform_6, window_bounds = array<i64: 16, 128>}, {transform_indices = @transform_7, window_bounds = array<i64: 16, 128>}]} {
    %c0_i32 = arith.constant 0 : i32
    %0 = arith.cmpi eq, %arg1, %c0_i32 : i32
    %1 = arith.extui %0 : i1 to i32
    %c0_i32_0 = arith.constant 0 : i32
    %2 = arith.cmpi ne, %1, %c0_i32_0 : i32
    scf.if %2 {
      %c0_8 = arith.constant 0 : index
      %c0_9 = arith.constant 0 : index
      %11 = vector.load %arg2[%c0_8, %c0_9] : memref<16x128xbf16, #tpu.memory_space<vmem>>, vector<16x128xbf16>
      %12 = arith.extf %11 : vector<16x128xbf16> to vector<16x128xf32>
      %c0_10 = arith.constant 0 : index
      %c0_11 = arith.constant 0 : index
      %13 = vector.load %arg3[%c0_10, %c0_11] : memref<16x128xbf16, #tpu.memory_space<vmem>>, vector<16x128xbf16>
      %14 = arith.extf %13 : vector<16x128xbf16> to vector<16x128xf32>
      %15 = arith.addf %12, %14 : vector<16x128xf32>
      %cst_12 = arith.constant dense<0.000000e+00> : vector<16xf32>
      %16 = vector.multi_reduction <add>, %15, %cst_12 [1] : vector<16x128xf32> to vector<16xf32>
      %17 = vector.shape_cast %16 : vector<16xf32> to vector<16x1xf32>
      %cst_13 = arith.constant 1.280000e+02 : f32
      %18 = vector.broadcast %cst_13 : f32 to vector<16x1xf32>
      %19 = arith.divf %17, %18 : vector<16x1xf32>
      %20 = vector.broadcast %19 : vector<16x1xf32> to vector<16x128xf32>
      %21 = arith.subf %15, %20 : vector<16x128xf32>
      %22 = arith.mulf %21, %21 : vector<16x128xf32>
      %cst_14 = arith.constant dense<0.000000e+00> : vector<16xf32>
      %23 = vector.multi_reduction <add>, %22, %cst_14 [1] : vector<16x128xf32> to vector<16xf32>
      %24 = vector.shape_cast %23 : vector<16xf32> to vector<16x1xf32>
      %cst_15 = arith.constant 1.280000e+02 : f32
      %25 = vector.broadcast %cst_15 : f32 to vector<16x1xf32>
      %26 = arith.divf %24, %25 : vector<16x1xf32>
      %27 = vector.broadcast %19 : vector<16x1xf32> to vector<16x128xf32>
      %28 = arith.subf %15, %27 : vector<16x128xf32>
      %cst_16 = arith.constant 9.99999996E-13 : f32
      %29 = vector.broadcast %cst_16 : f32 to vector<16x1xf32>
      %30 = arith.addf %26, %29 : vector<16x1xf32>
      %31 = math.rsqrt %30 : vector<16x1xf32>
      %32 = vector.broadcast %31 : vector<16x1xf32> to vector<16x128xf32>
      %33 = arith.mulf %28, %32 : vector<16x128xf32>
      %c0_17 = arith.constant 0 : index
      %c0_18 = arith.constant 0 : index
      %34 = vector.load %arg4[%c0_17, %c0_18] : memref<1x128xf32, #tpu.memory_space<vmem>>, vector<1x128xf32>
      %35 = vector.broadcast %34 : vector<1x128xf32> to vector<16x128xf32>
      %36 = arith.mulf %33, %35 : vector<16x128xf32>
      %c0_19 = arith.constant 0 : index
      %c0_20 = arith.constant 0 : index
      %37 = vector.load %arg5[%c0_19, %c0_20] : memref<1x128xf32, #tpu.memory_space<vmem>>, vector<1x128xf32>
      %38 = vector.broadcast %37 : vector<1x128xf32> to vector<16x128xf32>
      %39 = arith.addf %36, %38 : vector<16x128xf32>
      %40 = arith.truncf %39 : vector<16x128xf32> to vector<16x128xbf16>
      %c0_21 = arith.constant 0 : index
      %c0_22 = arith.constant 0 : index
      %41 = vector.load %arg10[%c0_21, %c0_22] : memref<16x128xbf16, #tpu.memory_space<vmem>>, vector<16x128xbf16>
      tpu.vector_store %arg10[%c0_21, %c0_22], %40 {strides = array<i32>} : memref<16x128xbf16, #tpu.memory_space<vmem>>, vector<16x128xbf16>,
      %42 = arith.truncf %39 : vector<16x128xf32> to vector<16x128xbf16>
      %c0_23 = arith.constant 0 : index
      %c0_24 = arith.constant 0 : index
      %43 = vector.load %arg8[%c0_23, %c0_24] : memref<16x128xbf16, #tpu.memory_space<vmem>>, vector<16x128xbf16>
      tpu.vector_store %arg8[%c0_23, %c0_24], %42 {strides = array<i32>} : memref<16x128xbf16, #tpu.memory_space<vmem>>, vector<16x128xbf16>,
    } else {
    }
    %c0 = arith.constant 0 : index
    %c0_1 = arith.constant 0 : index
    %3 = vector.load %arg10[%c0, %c0_1] : memref<16x128xbf16, #tpu.memory_space<vmem>>, vector<16x128xbf16>
    %c0_2 = arith.constant 0 : index
    %c0_3 = arith.constant 0 : index
    %4 = vector.load %arg6[%c0_2, %c0_3] : memref<128x128xbf16, #tpu.memory_space<vmem>>, vector<128x128xbf16>
    %cst = arith.constant dense<0.000000e+00> : vector<16x128xf32>
    %5 = tpu.matmul %3, %4, %cst {dimension_numbers = #tpu.dot_dimension_numbers<[1], [0], [0], [1], [0, 0, 1, 1], [], []>} : vector<16x128xbf16>, vector<128x128xbf16>, vector<16x128xf32> -> vector<16x128xf32>
    %c0_4 = arith.constant 0 : index
    %c0_5 = arith.constant 0 : index
    %6 = vector.load %arg7[%c0_4, %c0_5] : memref<1x128xf32, #tpu.memory_space<vmem>>, vector<1x128xf32>
    %7 = vector.broadcast %6 : vector<1x128xf32> to vector<16x128xf32>
    %8 = arith.addf %5, %7 : vector<16x128xf32>
    %9 = arith.truncf %8 : vector<16x128xf32> to vector<16x128xbf16>
    %c0_6 = arith.constant 0 : index
    %c0_7 = arith.constant 0 : index
    %10 = vector.load %arg9[%c0_6, %c0_7] : memref<16x128xbf16, #tpu.memory_space<vmem>>, vector<16x128xbf16>
    tpu.vector_store %arg9[%c0_6, %c0_7], %9 {strides = array<i32>} : memref<16x128xbf16, #tpu.memory_space<vmem>>, vector<16x128xbf16>,
    return
  }
  func.func @transform_0(%arg0: i32, %arg1: i32) -> (i32, i32) {
    %c0_i32 = arith.constant 0 : i32
    %c0_i32_0 = arith.constant 0 : i32
    return %arg0, %c0_i32 : i32, i32
  }
  func.func @transform_1(%arg0: i32, %arg1: i32) -> (i32, i32) {
    %c0_i32 = arith.constant 0 : i32
    %c0_i32_0 = arith.constant 0 : i32
    return %arg0, %c0_i32 : i32, i32
  }
  func.func @transform_2(%arg0: i32, %arg1: i32) -> (i32, i32) {
    %c0_i32 = arith.constant 0 : i32
    %c0_i32_0 = arith.constant 0 : i32
    %c0_i32_1 = arith.constant 0 : i32
    return %c0_i32, %c0_i32_0 : i32, i32
  }
  func.func @transform_3(%arg0: i32, %arg1: i32) -> (i32, i32) {
    %c0_i32 = arith.constant 0 : i32
    %c0_i32_0 = arith.constant 0 : i32
    %c0_i32_1 = arith.constant 0 : i32
    return %c0_i32, %c0_i32_0 : i32, i32
  }
  func.func @transform_4(%arg0: i32, %arg1: i32) -> (i32, i32) {
    %c0_i32 = arith.constant 0 : i32
    %c0_i32_0 = arith.constant 0 : i32
    return %c0_i32, %arg1 : i32, i32
  }
  func.func @transform_5(%arg0: i32, %arg1: i32) -> (i32, i32) {
    %c0_i32 = arith.constant 0 : i32
    %c0_i32_0 = arith.constant 0 : i32
    return %c0_i32, %arg1 : i32, i32
  }
  func.func @transform_6(%arg0: i32, %arg1: i32) -> (i32, i32) {
    %c0_i32 = arith.constant 0 : i32
    %c0_i32_0 = arith.constant 0 : i32
    return %arg0, %c0_i32 : i32, i32
  }
  func.func @transform_7(%arg0: i32, %arg1: i32) -> (i32, i32) {
    %c0_i32 = arith.constant 0 : i32
    return %arg0, %arg1 : i32, i32
  }
}

module attributes {stable_mosaic.version = 11 : i64} {
  func.func @kern(%arg0: i32, %arg1: i32, %arg2: i32, %arg3: memref<16x256xbf16, #tpu.memory_space<vmem>>, %arg4: memref<256x128xbf16, #tpu.memory_space<vmem>>, %arg5: memref<1x128xf32, #tpu.memory_space<vmem>>, %arg6: memref<16x128xbf16, #tpu.memory_space<vmem>>, %arg7: memref<16x128xf32, #tpu.memory_space<vmem>>) attributes {dimension_semantics = [#tpu.dimension_semantics<parallel>, #tpu.dimension_semantics<parallel>, #tpu.dimension_semantics<arbitrary>], iteration_bounds = array<i64: 1, 1, 1>, scalar_prefetch = 0 : i64, scratch_operands = 1 : i64, tpu.core_type = #tpu.core_type<tc>, window_params = [{transform_indices = @transform_0, window_bounds = array<i64: 16, 256>}, {transform_indices = @transform_1, window_bounds = array<i64: 256, 128>}, {transform_indices = @transform_2, window_bounds = array<i64: 1, 128>}, {transform_indices = @transform_3, window_bounds = array<i64: 16, 128>}]} {
    %c0_i32 = arith.constant 0 : i32
    %0 = arith.cmpi eq, %arg2, %c0_i32 : i32
    %1 = arith.extui %0 : i1 to i32
    %c0_i32_0 = arith.constant 0 : i32
    %2 = arith.cmpi ne, %1, %c0_i32_0 : i32
    scf.if %2 {
      %cst_10 = arith.constant 0.000000e+00 : f32
      %12 = vector.broadcast %cst_10 : f32 to vector<16x128xf32>
      %c0_11 = arith.constant 0 : index
      %c0_12 = arith.constant 0 : index
      %13 = vector.load %arg7[%c0_11, %c0_12] : memref<16x128xf32, #tpu.memory_space<vmem>>, vector<16x128xf32>
      tpu.vector_store %arg7[%c0_11, %c0_12], %12 {strides = array<i32>} : memref<16x128xf32, #tpu.memory_space<vmem>>, vector<16x128xf32>,
    } else {
    }
    %c0 = arith.constant 0 : index
    %c0_1 = arith.constant 0 : index
    %3 = vector.load %arg7[%c0, %c0_1] : memref<16x128xf32, #tpu.memory_space<vmem>>, vector<16x128xf32>
    %c0_2 = arith.constant 0 : index
    %c0_3 = arith.constant 0 : index
    %4 = vector.load %arg3[%c0_2, %c0_3] : memref<16x256xbf16, #tpu.memory_space<vmem>>, vector<16x256xbf16>
    %c0_4 = arith.constant 0 : index
    %c0_5 = arith.constant 0 : index
    %5 = vector.load %arg4[%c0_4, %c0_5] : memref<256x128xbf16, #tpu.memory_space<vmem>>, vector<256x128xbf16>
    %cst = arith.constant dense<0.000000e+00> : vector<16x128xf32>
    %6 = tpu.matmul %4, %5, %cst {dimension_numbers = #tpu.dot_dimension_numbers<[1], [0], [0], [1], [0, 0, 1, 1], [], []>} : vector<16x256xbf16>, vector<256x128xbf16>, vector<16x128xf32> -> vector<16x128xf32>
    %7 = arith.addf %3, %6 : vector<16x128xf32>
    %c0_6 = arith.constant 0 : index
    %c0_7 = arith.constant 0 : index
    %8 = vector.load %arg7[%c0_6, %c0_7] : memref<16x128xf32, #tpu.memory_space<vmem>>, vector<16x128xf32>
    tpu.vector_store %arg7[%c0_6, %c0_7], %7 {strides = array<i32>} : memref<16x128xf32, #tpu.memory_space<vmem>>, vector<16x128xf32>,
    %c0_i32_8 = arith.constant 0 : i32
    %9 = arith.cmpi eq, %arg2, %c0_i32_8 : i32
    %10 = arith.extui %9 : i1 to i32
    %c0_i32_9 = arith.constant 0 : i32
    %11 = arith.cmpi ne, %10, %c0_i32_9 : i32
    scf.if %11 {
      %c0_10 = arith.constant 0 : index
      %c0_11 = arith.constant 0 : index
      %12 = vector.load %arg7[%c0_10, %c0_11] : memref<16x128xf32, #tpu.memory_space<vmem>>, vector<16x128xf32>
      %c0_12 = arith.constant 0 : index
      %c0_13 = arith.constant 0 : index
      %13 = vector.load %arg5[%c0_12, %c0_13] : memref<1x128xf32, #tpu.memory_space<vmem>>, vector<1x128xf32>
      %14 = vector.broadcast %13 : vector<1x128xf32> to vector<16x128xf32>
      %15 = arith.addf %12, %14 : vector<16x128xf32>
      %16 = arith.truncf %15 : vector<16x128xf32> to vector<16x128xbf16>
      %c0_14 = arith.constant 0 : index
      %c0_15 = arith.constant 0 : index
      %17 = vector.load %arg6[%c0_14, %c0_15] : memref<16x128xbf16, #tpu.memory_space<vmem>>, vector<16x128xbf16>
      tpu.vector_store %arg6[%c0_14, %c0_15], %16 {strides = array<i32>} : memref<16x128xbf16, #tpu.memory_space<vmem>>, vector<16x128xbf16>,
    } else {
    }
    return
  }
  func.func @transform_0(%arg0: i32, %arg1: i32, %arg2: i32) -> (i32, i32) {
    %c0_i32 = arith.constant 0 : i32
    return %arg0, %arg2 : i32, i32
  }
  func.func @transform_1(%arg0: i32, %arg1: i32, %arg2: i32) -> (i32, i32) {
    %c0_i32 = arith.constant 0 : i32
    return %arg2, %arg1 : i32, i32
  }
  func.func @transform_2(%arg0: i32, %arg1: i32, %arg2: i32) -> (i32, i32) {
    %c0_i32 = arith.constant 0 : i32
    %c0_i32_0 = arith.constant 0 : i32
    return %c0_i32, %arg1 : i32, i32
  }
  func.func @transform_3(%arg0: i32, %arg1: i32, %arg2: i32) -> (i32, i32) {
    %c0_i32 = arith.constant 0 : i32
    return %arg0, %arg1 : i32, i32
  }
}

module attributes {stable_mosaic.version = 11 : i64} {
  func.func @kern(%arg0: i32, %arg1: memref<8x2x128xbf16, #tpu.memory_space<vmem>>, %arg2: memref<2x128xbf16, #tpu.memory_space<vmem>>, %arg3: memref<128x128xbf16, #tpu.memory_space<vmem>>, %arg4: memref<1x128xf32, #tpu.memory_space<vmem>>, %arg5: memref<32x128xbf16, #tpu.memory_space<vmem>>, %arg6: memref<32x128xbf16, #tpu.memory_space<vmem>>, %arg7: memref<64x3xf32, #tpu.memory_space<vmem>>, %arg8: memref<1x3xf32, #tpu.memory_space<vmem>>, %arg9: memref<2x3xf32, #tpu.memory_space<vmem>>, %arg10: memref<2x32xf32, #tpu.memory_space<vmem>>, %arg11: memref<2x32xf32, #tpu.memory_space<vmem>>) attributes {dimension_semantics = [#tpu.dimension_semantics<arbitrary>], iteration_bounds = array<i64: 1>, scalar_prefetch = 0 : i64, scratch_operands = 2 : i64, tpu.core_type = #tpu.core_type<tc>, window_params = [{transform_indices = @transform_0, window_bounds = array<i64: 8, 2, 128>}, {pipeline_mode = #tpu.pipeline_mode<synchronous>, transform_indices = @transform_1, window_bounds = array<i64: 2, 128>}, {pipeline_mode = #tpu.pipeline_mode<synchronous>, transform_indices = @transform_2, window_bounds = array<i64: 128, 128>}, {pipeline_mode = #tpu.pipeline_mode<synchronous>, transform_indices = @transform_3, window_bounds = array<i64: 1, 128>}, {pipeline_mode = #tpu.pipeline_mode<synchronous>, transform_indices = @transform_4, window_bounds = array<i64: 32, 128>}, {pipeline_mode = #tpu.pipeline_mode<synchronous>, transform_indices = @transform_5, window_bounds = array<i64: 32, 128>}, {pipeline_mode = #tpu.pipeline_mode<synchronous>, transform_indices = @transform_6, window_bounds = array<i64: 64, 3>}, {pipeline_mode = #tpu.pipeline_mode<synchronous>, transform_indices = @transform_7, window_bounds = array<i64: 1, 3>}, {pipeline_mode = #tpu.pipeline_mode<synchronous>, transform_indices = @transform_8, window_bounds = array<i64: 2, 3>}]} {
    %c0_i32 = arith.constant 0 : i32
    %0 = arith.cmpi eq, %arg0, %c0_i32 : i32
    %1 = arith.extui %0 : i1 to i32
    %c0_i32_0 = arith.constant 0 : i32
    %2 = arith.cmpi ne, %1, %c0_i32_0 : i32
    scf.if %2 {
      %cst_60 = arith.constant 0.000000e+00 : f32
      %267 = vector.broadcast %cst_60 : f32 to vector<2x32xf32>
      %c0_61 = arith.constant 0 : index
      %c0_62 = arith.constant 0 : index
      %268 = vector.load %arg10[%c0_61, %c0_62] : memref<2x32xf32, #tpu.memory_space<vmem>>, vector<2x32xf32>
      tpu.vector_store %arg10[%c0_61, %c0_62], %267 {strides = array<i32>} : memref<2x32xf32, #tpu.memory_space<vmem>>, vector<2x32xf32>,
      %cst_63 = arith.constant 0.000000e+00 : f32
      %269 = vector.broadcast %cst_63 : f32 to vector<2x32xf32>
      %c0_64 = arith.constant 0 : index
      %c0_65 = arith.constant 0 : index
      %270 = vector.load %arg11[%c0_64, %c0_65] : memref<2x32xf32, #tpu.memory_space<vmem>>, vector<2x32xf32>
      tpu.vector_store %arg11[%c0_64, %c0_65], %269 {strides = array<i32>} : memref<2x32xf32, #tpu.memory_space<vmem>>, vector<2x32xf32>,
    } else {
    }
    %c0 = arith.constant 0 : index
    %c0_1 = arith.constant 0 : index
    %3 = vector.load %arg5[%c0, %c0_1] : memref<32x128xbf16, #tpu.memory_space<vmem>>, vector<32x128xbf16>
    %c0_2 = arith.constant 0 : index
    %c0_3 = arith.constant 0 : index
    %4 = vector.load %arg10[%c0_2, %c0_3] : memref<2x32xf32, #tpu.memory_space<vmem>>, vector<2x32xf32>
    %c0_4 = arith.constant 0 : index
    %c0_5 = arith.constant 0 : index
    %5 = vector.load %arg11[%c0_4, %c0_5] : memref<2x32xf32, #tpu.memory_space<vmem>>, vector<2x32xf32>
    %c0_i32_6 = arith.constant 0 : i32
    %6 = arith.index_cast %c0_i32_6 : i32 to index
    %c0_7 = arith.constant 0 : index
    %c0_8 = arith.constant 0 : index
    %7 = vector.load %arg1[%6, %c0_7, %c0_8] : memref<8x2x128xbf16, #tpu.memory_space<vmem>>, vector<1x2x128xbf16>
    %8 = vector.shape_cast %7 : vector<1x2x128xbf16> to vector<2x128xbf16>
    %9 = arith.extf %8 : vector<2x128xbf16> to vector<2x128xf32>
    %10 = arith.truncf %4 : vector<2x32xf32> to vector<2x32xbf16>
    %cst = arith.constant dense<0.000000e+00> : vector<2x128xf32>
    %11 = tpu.matmul %10, %3, %cst {dimension_numbers = #tpu.dot_dimension_numbers<[1], [0], [0], [1], [0, 0, 1, 1], [], []>} : vector<2x32xbf16>, vector<32x128xbf16>, vector<2x128xf32> -> vector<2x128xf32>
    %12 = arith.addf %9, %11 : vector<2x128xf32>
    %13 = vector.extract_strided_slice %12 {offsets = [0, 0], sizes = [2, 32], strides = [1, 1]} : vector<2x128xf32> to vector<2x32xf32>
    %14 = arith.negf %13 : vector<2x32xf32>
    %15 = math.exp %14 : vector<2x32xf32>
    %cst_9 = arith.constant 1.000000e+00 : f32
    %16 = vector.broadcast %cst_9 : f32 to vector<2x32xf32>
    %17 = arith.addf %16, %15 : vector<2x32xf32>
    %18 = arith.divf %16, %17 : vector<2x32xf32>
    %19 = vector.extract_strided_slice %12 {offsets = [0, 32], sizes = [2, 32], strides = [1, 1]} : vector<2x128xf32> to vector<2x32xf32>
    %20 = arith.negf %19 : vector<2x32xf32>
    %21 = math.exp %20 : vector<2x32xf32>
    %cst_10 = arith.constant 1.000000e+00 : f32
    %22 = vector.broadcast %cst_10 : f32 to vector<2x32xf32>
    %23 = arith.addf %22, %21 : vector<2x32xf32>
    %24 = arith.divf %22, %23 : vector<2x32xf32>
    %25 = vector.extract_strided_slice %12 {offsets = [0, 64], sizes = [2, 32], strides = [1, 1]} : vector<2x128xf32> to vector<2x32xf32>
    %26 = math.tanh %25 : vector<2x32xf32>
    %27 = vector.extract_strided_slice %12 {offsets = [0, 96], sizes = [2, 32], strides = [1, 1]} : vector<2x128xf32> to vector<2x32xf32>
    %28 = arith.negf %27 : vector<2x32xf32>
    %29 = math.exp %28 : vector<2x32xf32>
    %cst_11 = arith.constant 1.000000e+00 : f32
    %30 = vector.broadcast %cst_11 : f32 to vector<2x32xf32>
    %31 = arith.addf %30, %29 : vector<2x32xf32>
    %32 = arith.divf %30, %31 : vector<2x32xf32>
    %33 = arith.mulf %24, %5 : vector<2x32xf32>
    %34 = arith.mulf %18, %26 : vector<2x32xf32>
    %35 = arith.addf %33, %34 : vector<2x32xf32>
    %36 = math.tanh %35 : vector<2x32xf32>
    %37 = arith.mulf %32, %36 : vector<2x32xf32>
    %c1_i32 = arith.constant 1 : i32
    %38 = arith.index_cast %c1_i32 : i32 to index
    %c0_12 = arith.constant 0 : index
    %c0_13 = arith.constant 0 : index
    %39 = vector.load %arg1[%38, %c0_12, %c0_13] : memref<8x2x128xbf16, #tpu.memory_space<vmem>>, vector<1x2x128xbf16>
    %40 = vector.shape_cast %39 : vector<1x2x128xbf16> to vector<2x128xbf16>
    %41 = arith.extf %40 : vector<2x128xbf16> to vector<2x128xf32>
    %42 = arith.truncf %37 : vector<2x32xf32> to vector<2x32xbf16>
    %cst_14 = arith.constant dense<0.000000e+00> : vector<2x128xf32>
    %43 = tpu.matmul %42, %3, %cst_14 {dimension_numbers = #tpu.dot_dimension_numbers<[1], [0], [0], [1], [0, 0, 1, 1], [], []>} : vector<2x32xbf16>, vector<32x128xbf16>, vector<2x128xf32> -> vector<2x128xf32>
    %44 = arith.addf %41, %43 : vector<2x128xf32>
    %45 = vector.extract_strided_slice %44 {offsets = [0, 0], sizes = [2, 32], strides = [1, 1]} : vector<2x128xf32> to vector<2x32xf32>
    %46 = arith.negf %45 : vector<2x32xf32>
    %47 = math.exp %46 : vector<2x32xf32>
    %cst_15 = arith.constant 1.000000e+00 : f32
    %48 = vector.broadcast %cst_15 : f32 to vector<2x32xf32>
    %49 = arith.addf %48, %47 : vector<2x32xf32>
    %50 = arith.divf %48, %49 : vector<2x32xf32>
    %51 = vector.extract_strided_slice %44 {offsets = [0, 32], sizes = [2, 32], strides = [1, 1]} : vector<2x128xf32> to vector<2x32xf32>
    %52 = arith.negf %51 : vector<2x32xf32>
    %53 = math.exp %52 : vector<2x32xf32>
    %cst_16 = arith.constant 1.000000e+00 : f32
    %54 = vector.broadcast %cst_16 : f32 to vector<2x32xf32>
    %55 = arith.addf %54, %53 : vector<2x32xf32>
    %56 = arith.divf %54, %55 : vector<2x32xf32>
    %57 = vector.extract_strided_slice %44 {offsets = [0, 64], sizes = [2, 32], strides = [1, 1]} : vector<2x128xf32> to vector<2x32xf32>
    %58 = math.tanh %57 : vector<2x32xf32>
    %59 = vector.extract_strided_slice %44 {offsets = [0, 96], sizes = [2, 32], strides = [1, 1]} : vector<2x128xf32> to vector<2x32xf32>
    %60 = arith.negf %59 : vector<2x32xf32>
    %61 = math.exp %60 : vector<2x32xf32>
    %cst_17 = arith.constant 1.000000e+00 : f32
    %62 = vector.broadcast %cst_17 : f32 to vector<2x32xf32>
    %63 = arith.addf %62, %61 : vector<2x32xf32>
    %64 = arith.divf %62, %63 : vector<2x32xf32>
    %65 = arith.mulf %56, %35 : vector<2x32xf32>
    %66 = arith.mulf %50, %58 : vector<2x32xf32>
    %67 = arith.addf %65, %66 : vector<2x32xf32>
    %68 = math.tanh %67 : vector<2x32xf32>
    %69 = arith.mulf %64, %68 : vector<2x32xf32>
    %c2_i32 = arith.constant 2 : i32
    %70 = arith.index_cast %c2_i32 : i32 to index
    %c0_18 = arith.constant 0 : index
    %c0_19 = arith.constant 0 : index
    %71 = vector.load %arg1[%70, %c0_18, %c0_19] : memref<8x2x128xbf16, #tpu.memory_space<vmem>>, vector<1x2x128xbf16>
    %72 = vector.shape_cast %71 : vector<1x2x128xbf16> to vector<2x128xbf16>
    %73 = arith.extf %72 : vector<2x128xbf16> to vector<2x128xf32>
    %74 = arith.truncf %69 : vector<2x32xf32> to vector<2x32xbf16>
    %cst_20 = arith.constant dense<0.000000e+00> : vector<2x128xf32>
    %75 = tpu.matmul %74, %3, %cst_20 {dimension_numbers = #tpu.dot_dimension_numbers<[1], [0], [0], [1], [0, 0, 1, 1], [], []>} : vector<2x32xbf16>, vector<32x128xbf16>, vector<2x128xf32> -> vector<2x128xf32>
    %76 = arith.addf %73, %75 : vector<2x128xf32>
    %77 = vector.extract_strided_slice %76 {offsets = [0, 0], sizes = [2, 32], strides = [1, 1]} : vector<2x128xf32> to vector<2x32xf32>
    %78 = arith.negf %77 : vector<2x32xf32>
    %79 = math.exp %78 : vector<2x32xf32>
    %cst_21 = arith.constant 1.000000e+00 : f32
    %80 = vector.broadcast %cst_21 : f32 to vector<2x32xf32>
    %81 = arith.addf %80, %79 : vector<2x32xf32>
    %82 = arith.divf %80, %81 : vector<2x32xf32>
    %83 = vector.extract_strided_slice %76 {offsets = [0, 32], sizes = [2, 32], strides = [1, 1]} : vector<2x128xf32> to vector<2x32xf32>
    %84 = arith.negf %83 : vector<2x32xf32>
    %85 = math.exp %84 : vector<2x32xf32>
    %cst_22 = arith.constant 1.000000e+00 : f32
    %86 = vector.broadcast %cst_22 : f32 to vector<2x32xf32>
    %87 = arith.addf %86, %85 : vector<2x32xf32>
    %88 = arith.divf %86, %87 : vector<2x32xf32>
    %89 = vector.extract_strided_slice %76 {offsets = [0, 64], sizes = [2, 32], strides = [1, 1]} : vector<2x128xf32> to vector<2x32xf32>
    %90 = math.tanh %89 : vector<2x32xf32>
    %91 = vector.extract_strided_slice %76 {offsets = [0, 96], sizes = [2, 32], strides = [1, 1]} : vector<2x128xf32> to vector<2x32xf32>
    %92 = arith.negf %91 : vector<2x32xf32>
    %93 = math.exp %92 : vector<2x32xf32>
    %cst_23 = arith.constant 1.000000e+00 : f32
    %94 = vector.broadcast %cst_23 : f32 to vector<2x32xf32>
    %95 = arith.addf %94, %93 : vector<2x32xf32>
    %96 = arith.divf %94, %95 : vector<2x32xf32>
    %97 = arith.mulf %88, %67 : vector<2x32xf32>
    %98 = arith.mulf %82, %90 : vector<2x32xf32>
    %99 = arith.addf %97, %98 : vector<2x32xf32>
    %100 = math.tanh %99 : vector<2x32xf32>
    %101 = arith.mulf %96, %100 : vector<2x32xf32>
    %c3_i32 = arith.constant 3 : i32
    %102 = arith.index_cast %c3_i32 : i32 to index
    %c0_24 = arith.constant 0 : index
    %c0_25 = arith.constant 0 : index
    %103 = vector.load %arg1[%102, %c0_24, %c0_25] : memref<8x2x128xbf16, #tpu.memory_space<vmem>>, vector<1x2x128xbf16>
    %104 = vector.shape_cast %103 : vector<1x2x128xbf16> to vector<2x128xbf16>
    %105 = arith.extf %104 : vector<2x128xbf16> to vector<2x128xf32>
    %106 = arith.truncf %101 : vector<2x32xf32> to vector<2x32xbf16>
    %cst_26 = arith.constant dense<0.000000e+00> : vector<2x128xf32>
    %107 = tpu.matmul %106, %3, %cst_26 {dimension_numbers = #tpu.dot_dimension_numbers<[1], [0], [0], [1], [0, 0, 1, 1], [], []>} : vector<2x32xbf16>, vector<32x128xbf16>, vector<2x128xf32> -> vector<2x128xf32>
    %108 = arith.addf %105, %107 : vector<2x128xf32>
    %109 = vector.extract_strided_slice %108 {offsets = [0, 0], sizes = [2, 32], strides = [1, 1]} : vector<2x128xf32> to vector<2x32xf32>
    %110 = arith.negf %109 : vector<2x32xf32>
    %111 = math.exp %110 : vector<2x32xf32>
    %cst_27 = arith.constant 1.000000e+00 : f32
    %112 = vector.broadcast %cst_27 : f32 to vector<2x32xf32>
    %113 = arith.addf %112, %111 : vector<2x32xf32>
    %114 = arith.divf %112, %113 : vector<2x32xf32>
    %115 = vector.extract_strided_slice %108 {offsets = [0, 32], sizes = [2, 32], strides = [1, 1]} : vector<2x128xf32> to vector<2x32xf32>
    %116 = arith.negf %115 : vector<2x32xf32>
    %117 = math.exp %116 : vector<2x32xf32>
    %cst_28 = arith.constant 1.000000e+00 : f32
    %118 = vector.broadcast %cst_28 : f32 to vector<2x32xf32>
    %119 = arith.addf %118, %117 : vector<2x32xf32>
    %120 = arith.divf %118, %119 : vector<2x32xf32>
    %121 = vector.extract_strided_slice %108 {offsets = [0, 64], sizes = [2, 32], strides = [1, 1]} : vector<2x128xf32> to vector<2x32xf32>
    %122 = math.tanh %121 : vector<2x32xf32>
    %123 = vector.extract_strided_slice %108 {offsets = [0, 96], sizes = [2, 32], strides = [1, 1]} : vector<2x128xf32> to vector<2x32xf32>
    %124 = arith.negf %123 : vector<2x32xf32>
    %125 = math.exp %124 : vector<2x32xf32>
    %cst_29 = arith.constant 1.000000e+00 : f32
    %126 = vector.broadcast %cst_29 : f32 to vector<2x32xf32>
    %127 = arith.addf %126, %125 : vector<2x32xf32>
    %128 = arith.divf %126, %127 : vector<2x32xf32>
    %129 = arith.mulf %120, %99 : vector<2x32xf32>
    %130 = arith.mulf %114, %122 : vector<2x32xf32>
    %131 = arith.addf %129, %130 : vector<2x32xf32>
    %132 = math.tanh %131 : vector<2x32xf32>
    %133 = arith.mulf %128, %132 : vector<2x32xf32>
    %c4_i32 = arith.constant 4 : i32
    %134 = arith.index_cast %c4_i32 : i32 to index
    %c0_30 = arith.constant 0 : index
    %c0_31 = arith.constant 0 : index
    %135 = vector.load %arg1[%134, %c0_30, %c0_31] : memref<8x2x128xbf16, #tpu.memory_space<vmem>>, vector<1x2x128xbf16>
    %136 = vector.shape_cast %135 : vector<1x2x128xbf16> to vector<2x128xbf16>
    %137 = arith.extf %136 : vector<2x128xbf16> to vector<2x128xf32>
    %138 = arith.truncf %133 : vector<2x32xf32> to vector<2x32xbf16>
    %cst_32 = arith.constant dense<0.000000e+00> : vector<2x128xf32>
    %139 = tpu.matmul %138, %3, %cst_32 {dimension_numbers = #tpu.dot_dimension_numbers<[1], [0], [0], [1], [0, 0, 1, 1], [], []>} : vector<2x32xbf16>, vector<32x128xbf16>, vector<2x128xf32> -> vector<2x128xf32>
    %140 = arith.addf %137, %139 : vector<2x128xf32>
    %141 = vector.extract_strided_slice %140 {offsets = [0, 0], sizes = [2, 32], strides = [1, 1]} : vector<2x128xf32> to vector<2x32xf32>
    %142 = arith.negf %141 : vector<2x32xf32>
    %143 = math.exp %142 : vector<2x32xf32>
    %cst_33 = arith.constant 1.000000e+00 : f32
    %144 = vector.broadcast %cst_33 : f32 to vector<2x32xf32>
    %145 = arith.addf %144, %143 : vector<2x32xf32>
    %146 = arith.divf %144, %145 : vector<2x32xf32>
    %147 = vector.extract_strided_slice %140 {offsets = [0, 32], sizes = [2, 32], strides = [1, 1]} : vector<2x128xf32> to vector<2x32xf32>
    %148 = arith.negf %147 : vector<2x32xf32>
    %149 = math.exp %148 : vector<2x32xf32>
    %cst_34 = arith.constant 1.000000e+00 : f32
    %150 = vector.broadcast %cst_34 : f32 to vector<2x32xf32>
    %151 = arith.addf %150, %149 : vector<2x32xf32>
    %152 = arith.divf %150, %151 : vector<2x32xf32>
    %153 = vector.extract_strided_slice %140 {offsets = [0, 64], sizes = [2, 32], strides = [1, 1]} : vector<2x128xf32> to vector<2x32xf32>
    %154 = math.tanh %153 : vector<2x32xf32>
    %155 = vector.extract_strided_slice %140 {offsets = [0, 96], sizes = [2, 32], strides = [1, 1]} : vector<2x128xf32> to vector<2x32xf32>
    %156 = arith.negf %155 : vector<2x32xf32>
    %157 = math.exp %156 : vector<2x32xf32>
    %cst_35 = arith.constant 1.000000e+00 : f32
    %158 = vector.broadcast %cst_35 : f32 to vector<2x32xf32>
    %159 = arith.addf %158, %157 : vector<2x32xf32>
    %160 = arith.divf %158, %159 : vector<2x32xf32>
    %161 = arith.mulf %152, %131 : vector<2x32xf32>
    %162 = arith.mulf %146, %154 : vector<2x32xf32>
    %163 = arith.addf %161, %162 : vector<2x32xf32>
    %164 = math.tanh %163 : vector<2x32xf32>
    %165 = arith.mulf %160, %164 : vector<2x32xf32>
    %c5_i32 = arith.constant 5 : i32
    %166 = arith.index_cast %c5_i32 : i32 to index
    %c0_36 = arith.constant 0 : index
    %c0_37 = arith.constant 0 : index
    %167 = vector.load %arg1[%166, %c0_36, %c0_37] : memref<8x2x128xbf16, #tpu.memory_space<vmem>>, vector<1x2x128xbf16>
    %168 = vector.shape_cast %167 : vector<1x2x128xbf16> to vector<2x128xbf16>
    %169 = arith.extf %168 : vector<2x128xbf16> to vector<2x128xf32>
    %170 = arith.truncf %165 : vector<2x32xf32> to vector<2x32xbf16>
    %cst_38 = arith.constant dense<0.000000e+00> : vector<2x128xf32>
    %171 = tpu.matmul %170, %3, %cst_38 {dimension_numbers = #tpu.dot_dimension_numbers<[1], [0], [0], [1], [0, 0, 1, 1], [], []>} : vector<2x32xbf16>, vector<32x128xbf16>, vector<2x128xf32> -> vector<2x128xf32>
    %172 = arith.addf %169, %171 : vector<2x128xf32>
    %173 = vector.extract_strided_slice %172 {offsets = [0, 0], sizes = [2, 32], strides = [1, 1]} : vector<2x128xf32> to vector<2x32xf32>
    %174 = arith.negf %173 : vector<2x32xf32>
    %175 = math.exp %174 : vector<2x32xf32>
    %cst_39 = arith.constant 1.000000e+00 : f32
    %176 = vector.broadcast %cst_39 : f32 to vector<2x32xf32>
    %177 = arith.addf %176, %175 : vector<2x32xf32>
    %178 = arith.divf %176, %177 : vector<2x32xf32>
    %179 = vector.extract_strided_slice %172 {offsets = [0, 32], sizes = [2, 32], strides = [1, 1]} : vector<2x128xf32> to vector<2x32xf32>
    %180 = arith.negf %179 : vector<2x32xf32>
    %181 = math.exp %180 : vector<2x32xf32>
    %cst_40 = arith.constant 1.000000e+00 : f32
    %182 = vector.broadcast %cst_40 : f32 to vector<2x32xf32>
    %183 = arith.addf %182, %181 : vector<2x32xf32>
    %184 = arith.divf %182, %183 : vector<2x32xf32>
    %185 = vector.extract_strided_slice %172 {offsets = [0, 64], sizes = [2, 32], strides = [1, 1]} : vector<2x128xf32> to vector<2x32xf32>
    %186 = math.tanh %185 : vector<2x32xf32>
    %187 = vector.extract_strided_slice %172 {offsets = [0, 96], sizes = [2, 32], strides = [1, 1]} : vector<2x128xf32> to vector<2x32xf32>
    %188 = arith.negf %187 : vector<2x32xf32>
    %189 = math.exp %188 : vector<2x32xf32>
    %cst_41 = arith.constant 1.000000e+00 : f32
    %190 = vector.broadcast %cst_41 : f32 to vector<2x32xf32>
    %191 = arith.addf %190, %189 : vector<2x32xf32>
    %192 = arith.divf %190, %191 : vector<2x32xf32>
    %193 = arith.mulf %184, %163 : vector<2x32xf32>
    %194 = arith.mulf %178, %186 : vector<2x32xf32>
    %195 = arith.addf %193, %194 : vector<2x32xf32>
    %196 = math.tanh %195 : vector<2x32xf32>
    %197 = arith.mulf %192, %196 : vector<2x32xf32>
    %c6_i32 = arith.constant 6 : i32
    %198 = arith.index_cast %c6_i32 : i32 to index
    %c0_42 = arith.constant 0 : index
    %c0_43 = arith.constant 0 : index
    %199 = vector.load %arg1[%198, %c0_42, %c0_43] : memref<8x2x128xbf16, #tpu.memory_space<vmem>>, vector<1x2x128xbf16>
    %200 = vector.shape_cast %199 : vector<1x2x128xbf16> to vector<2x128xbf16>
    %201 = arith.extf %200 : vector<2x128xbf16> to vector<2x128xf32>
    %202 = arith.truncf %197 : vector<2x32xf32> to vector<2x32xbf16>
    %cst_44 = arith.constant dense<0.000000e+00> : vector<2x128xf32>
    %203 = tpu.matmul %202, %3, %cst_44 {dimension_numbers = #tpu.dot_dimension_numbers<[1], [0], [0], [1], [0, 0, 1, 1], [], []>} : vector<2x32xbf16>, vector<32x128xbf16>, vector<2x128xf32> -> vector<2x128xf32>
    %204 = arith.addf %201, %203 : vector<2x128xf32>
    %205 = vector.extract_strided_slice %204 {offsets = [0, 0], sizes = [2, 32], strides = [1, 1]} : vector<2x128xf32> to vector<2x32xf32>
    %206 = arith.negf %205 : vector<2x32xf32>
    %207 = math.exp %206 : vector<2x32xf32>
    %cst_45 = arith.constant 1.000000e+00 : f32
    %208 = vector.broadcast %cst_45 : f32 to vector<2x32xf32>
    %209 = arith.addf %208, %207 : vector<2x32xf32>
    %210 = arith.divf %208, %209 : vector<2x32xf32>
    %211 = vector.extract_strided_slice %204 {offsets = [0, 32], sizes = [2, 32], strides = [1, 1]} : vector<2x128xf32> to vector<2x32xf32>
    %212 = arith.negf %211 : vector<2x32xf32>
    %213 = math.exp %212 : vector<2x32xf32>
    %cst_46 = arith.constant 1.000000e+00 : f32
    %214 = vector.broadcast %cst_46 : f32 to vector<2x32xf32>
    %215 = arith.addf %214, %213 : vector<2x32xf32>
    %216 = arith.divf %214, %215 : vector<2x32xf32>
    %217 = vector.extract_strided_slice %204 {offsets = [0, 64], sizes = [2, 32], strides = [1, 1]} : vector<2x128xf32> to vector<2x32xf32>
    %218 = math.tanh %217 : vector<2x32xf32>
    %219 = vector.extract_strided_slice %204 {offsets = [0, 96], sizes = [2, 32], strides = [1, 1]} : vector<2x128xf32> to vector<2x32xf32>
    %220 = arith.negf %219 : vector<2x32xf32>
    %221 = math.exp %220 : vector<2x32xf32>
    %cst_47 = arith.constant 1.000000e+00 : f32
    %222 = vector.broadcast %cst_47 : f32 to vector<2x32xf32>
    %223 = arith.addf %222, %221 : vector<2x32xf32>
    %224 = arith.divf %222, %223 : vector<2x32xf32>
    %225 = arith.mulf %216, %195 : vector<2x32xf32>
    %226 = arith.mulf %210, %218 : vector<2x32xf32>
    %227 = arith.addf %225, %226 : vector<2x32xf32>
    %228 = math.tanh %227 : vector<2x32xf32>
    %229 = arith.mulf %224, %228 : vector<2x32xf32>
    %c7_i32 = arith.constant 7 : i32
    %230 = arith.index_cast %c7_i32 : i32 to index
    %c0_48 = arith.constant 0 : index
    %c0_49 = arith.constant 0 : index
    %231 = vector.load %arg1[%230, %c0_48, %c0_49] : memref<8x2x128xbf16, #tpu.memory_space<vmem>>, vector<1x2x128xbf16>
    %232 = vector.shape_cast %231 : vector<1x2x128xbf16> to vector<2x128xbf16>
    %233 = arith.extf %232 : vector<2x128xbf16> to vector<2x128xf32>
    %234 = arith.truncf %229 : vector<2x32xf32> to vector<2x32xbf16>
    %cst_50 = arith.constant dense<0.000000e+00> : vector<2x128xf32>
    %235 = tpu.matmul %234, %3, %cst_50 {dimension_numbers = #tpu.dot_dimension_numbers<[1], [0], [0], [1], [0, 0, 1, 1], [], []>} : vector<2x32xbf16>, vector<32x128xbf16>, vector<2x128xf32> -> vector<2x128xf32>
    %236 = arith.addf %233, %235 : vector<2x128xf32>
    %237 = vector.extract_strided_slice %236 {offsets = [0, 0], sizes = [2, 32], strides = [1, 1]} : vector<2x128xf32> to vector<2x32xf32>
    %238 = arith.negf %237 : vector<2x32xf32>
    %239 = math.exp %238 : vector<2x32xf32>
    %cst_51 = arith.constant 1.000000e+00 : f32
    %240 = vector.broadcast %cst_51 : f32 to vector<2x32xf32>
    %241 = arith.addf %240, %239 : vector<2x32xf32>
    %242 = arith.divf %240, %241 : vector<2x32xf32>
    %243 = vector.extract_strided_slice %236 {offsets = [0, 32], sizes = [2, 32], strides = [1, 1]} : vector<2x128xf32> to vector<2x32xf32>
    %244 = arith.negf %243 : vector<2x32xf32>
    %245 = math.exp %244 : vector<2x32xf32>
    %cst_52 = arith.constant 1.000000e+00 : f32
    %246 = vector.broadcast %cst_52 : f32 to vector<2x32xf32>
    %247 = arith.addf %246, %245 : vector<2x32xf32>
    %248 = arith.divf %246, %247 : vector<2x32xf32>
    %249 = vector.extract_strided_slice %236 {offsets = [0, 64], sizes = [2, 32], strides = [1, 1]} : vector<2x128xf32> to vector<2x32xf32>
    %250 = math.tanh %249 : vector<2x32xf32>
    %251 = vector.extract_strided_slice %236 {offsets = [0, 96], sizes = [2, 32], strides = [1, 1]} : vector<2x128xf32> to vector<2x32xf32>
    %252 = arith.negf %251 : vector<2x32xf32>
    %253 = math.exp %252 : vector<2x32xf32>
    %cst_53 = arith.constant 1.000000e+00 : f32
    %254 = vector.broadcast %cst_53 : f32 to vector<2x32xf32>
    %255 = arith.addf %254, %253 : vector<2x32xf32>
    %256 = arith.divf %254, %255 : vector<2x32xf32>
    %257 = arith.mulf %248, %227 : vector<2x32xf32>
    %258 = arith.mulf %242, %250 : vector<2x32xf32>
    %259 = arith.addf %257, %258 : vector<2x32xf32>
    %260 = math.tanh %259 : vector<2x32xf32>
    %261 = arith.mulf %256, %260 : vector<2x32xf32>
    %c8_i32 = arith.constant 8 : i32
    %c0_54 = arith.constant 0 : index
    %c0_55 = arith.constant 0 : index
    %262 = vector.load %arg10[%c0_54, %c0_55] : memref<2x32xf32, #tpu.memory_space<vmem>>, vector<2x32xf32>
    tpu.vector_store %arg10[%c0_54, %c0_55], %261 {strides = array<i32>} : memref<2x32xf32, #tpu.memory_space<vmem>>, vector<2x32xf32>,
    %c0_56 = arith.constant 0 : index
    %c0_57 = arith.constant 0 : index
    %263 = vector.load %arg11[%c0_56, %c0_57] : memref<2x32xf32, #tpu.memory_space<vmem>>, vector<2x32xf32>
    tpu.vector_store %arg11[%c0_56, %c0_57], %259 {strides = array<i32>} : memref<2x32xf32, #tpu.memory_space<vmem>>, vector<2x32xf32>,
    %c0_i32_58 = arith.constant 0 : i32
    %264 = arith.cmpi eq, %arg0, %c0_i32_58 : i32
    %265 = arith.extui %264 : i1 to i32
    %c0_i32_59 = arith.constant 0 : i32
    %266 = arith.cmpi ne, %265, %c0_i32_59 : i32
    scf.if %266 {
      %cst_60 = arith.constant 0.000000e+00 : f32
      %267 = vector.broadcast %cst_60 : f32 to vector<2x32xf32>
      %c0_61 = arith.constant 0 : index
      %c0_62 = arith.constant 0 : index
      %268 = vector.load %arg2[%c0_61, %c0_62] : memref<2x128xbf16, #tpu.memory_space<vmem>>, vector<2x128xbf16>
      %c0_63 = arith.constant 0 : index
      %c0_64 = arith.constant 0 : index
      %269 = vector.load %arg3[%c0_63, %c0_64] : memref<128x128xbf16, #tpu.memory_space<vmem>>, vector<128x128xbf16>
      %cst_65 = arith.constant dense<0.000000e+00> : vector<2x128xf32>
      %270 = tpu.matmul %268, %269, %cst_65 {dimension_numbers = #tpu.dot_dimension_numbers<[1], [0], [0], [1], [0, 0, 1, 1], [], []>} : vector<2x128xbf16>, vector<128x128xbf16>, vector<2x128xf32> -> vector<2x128xf32>
      %c0_66 = arith.constant 0 : index
      %c0_67 = arith.constant 0 : index
      %271 = vector.load %arg4[%c0_66, %c0_67] : memref<1x128xf32, #tpu.memory_space<vmem>>, vector<1x128xf32>
      %272 = vector.broadcast %271 : vector<1x128xf32> to vector<2x128xf32>
      %273 = arith.addf %270, %272 : vector<2x128xf32>
      %c0_68 = arith.constant 0 : index
      %c0_69 = arith.constant 0 : index
      %274 = vector.load %arg6[%c0_68, %c0_69] : memref<32x128xbf16, #tpu.memory_space<vmem>>, vector<32x128xbf16>
      %275 = arith.truncf %267 : vector<2x32xf32> to vector<2x32xbf16>
      %cst_70 = arith.constant dense<0.000000e+00> : vector<2x128xf32>
      %276 = tpu.matmul %275, %274, %cst_70 {dimension_numbers = #tpu.dot_dimension_numbers<[1], [0], [0], [1], [0, 0, 1, 1], [], []>} : vector<2x32xbf16>, vector<32x128xbf16>, vector<2x128xf32> -> vector<2x128xf32>
      %277 = arith.addf %273, %276 : vector<2x128xf32>
      %278 = vector.extract_strided_slice %277 {offsets = [0, 0], sizes = [2, 32], strides = [1, 1]} : vector<2x128xf32> to vector<2x32xf32>
      %279 = arith.negf %278 : vector<2x32xf32>
      %280 = math.exp %279 : vector<2x32xf32>
      %cst_71 = arith.constant 1.000000e+00 : f32
      %281 = vector.broadcast %cst_71 : f32 to vector<2x32xf32>
      %282 = arith.addf %281, %280 : vector<2x32xf32>
      %283 = arith.divf %281, %282 : vector<2x32xf32>
      %284 = vector.extract_strided_slice %277 {offsets = [0, 32], sizes = [2, 32], strides = [1, 1]} : vector<2x128xf32> to vector<2x32xf32>
      %285 = arith.negf %284 : vector<2x32xf32>
      %286 = math.exp %285 : vector<2x32xf32>
      %cst_72 = arith.constant 1.000000e+00 : f32
      %287 = vector.broadcast %cst_72 : f32 to vector<2x32xf32>
      %288 = arith.addf %287, %286 : vector<2x32xf32>
      %289 = arith.divf %287, %288 : vector<2x32xf32>
      %290 = vector.extract_strided_slice %277 {offsets = [0, 64], sizes = [2, 32], strides = [1, 1]} : vector<2x128xf32> to vector<2x32xf32>
      %291 = math.tanh %290 : vector<2x32xf32>
      %292 = vector.extract_strided_slice %277 {offsets = [0, 96], sizes = [2, 32], strides = [1, 1]} : vector<2x128xf32> to vector<2x32xf32>
      %293 = arith.negf %292 : vector<2x32xf32>
      %294 = math.exp %293 : vector<2x32xf32>
      %cst_73 = arith.constant 1.000000e+00 : f32
      %295 = vector.broadcast %cst_73 : f32 to vector<2x32xf32>
      %296 = arith.addf %295, %294 : vector<2x32xf32>
      %297 = arith.divf %295, %296 : vector<2x32xf32>
      %298 = arith.mulf %289, %267 : vector<2x32xf32>
      %299 = arith.mulf %283, %291 : vector<2x32xf32>
      %300 = arith.addf %298, %299 : vector<2x32xf32>
      %301 = math.tanh %300 : vector<2x32xf32>
      %302 = arith.mulf %297, %301 : vector<2x32xf32>
      %303 = tpu.concatenate %261, %302 in 1 : vector<2x32xf32>, vector<2x32xf32> -> vector<2x64xf32>
      %c0_74 = arith.constant 0 : index
      %c0_75 = arith.constant 0 : index
      %304 = vector.load %arg7[%c0_74, %c0_75] : memref<64x3xf32, #tpu.memory_space<vmem>>, vector<64x3xf32>
      %cst_76 = arith.constant dense<0.000000e+00> : vector<2x3xf32>
      %305 = tpu.matmul %303, %304, %cst_76 {dimension_numbers = #tpu.dot_dimension_numbers<[1], [0], [0], [1], [0, 0, 1, 1], [], []>} : vector<2x64xf32>, vector<64x3xf32>, vector<2x3xf32> -> vector<2x3xf32>
      %c0_77 = arith.constant 0 : index
      %c0_78 = arith.constant 0 : index
      %306 = vector.load %arg8[%c0_77, %c0_78] : memref<1x3xf32, #tpu.memory_space<vmem>>, vector<1x3xf32>
      %307 = vector.broadcast %306 : vector<1x3xf32> to vector<2x3xf32>
      %308 = arith.addf %305, %307 : vector<2x3xf32>
      %c0_79 = arith.constant 0 : index
      %c0_80 = arith.constant 0 : index
      %309 = vector.load %arg9[%c0_79, %c0_80] : memref<2x3xf32, #tpu.memory_space<vmem>>, vector<2x3xf32>
      tpu.vector_store %arg9[%c0_79, %c0_80], %308 {strides = array<i32>} : memref<2x3xf32, #tpu.memory_space<vmem>>, vector<2x3xf32>,
    } else {
    }
    return
  }
  func.func @transform_0(%arg0: i32) -> (i32, i32, i32) {
    %c0_i32 = arith.constant 0 : i32
    %c0_i32_0 = arith.constant 0 : i32
    %c0_i32_1 = arith.constant 0 : i32
    return %arg0, %c0_i32, %c0_i32_0 : i32, i32, i32
  }
  func.func @transform_1(%arg0: i32) -> (i32, i32) {
    %c0_i32 = arith.constant 0 : i32
    %c0_i32_0 = arith.constant 0 : i32
    %c0_i32_1 = arith.constant 0 : i32
    return %c0_i32, %c0_i32_0 : i32, i32
  }
  func.func @transform_2(%arg0: i32) -> (i32, i32) {
    %c0_i32 = arith.constant 0 : i32
    %c0_i32_0 = arith.constant 0 : i32
    %c0_i32_1 = arith.constant 0 : i32
    return %c0_i32, %c0_i32_0 : i32, i32
  }
  func.func @transform_3(%arg0: i32) -> (i32, i32) {
    %c0_i32 = arith.constant 0 : i32
    %c0_i32_0 = arith.constant 0 : i32
    %c0_i32_1 = arith.constant 0 : i32
    return %c0_i32, %c0_i32_0 : i32, i32
  }
  func.func @transform_4(%arg0: i32) -> (i32, i32) {
    %c0_i32 = arith.constant 0 : i32
    %c0_i32_0 = arith.constant 0 : i32
    %c0_i32_1 = arith.constant 0 : i32
    return %c0_i32, %c0_i32_0 : i32, i32
  }
  func.func @transform_5(%arg0: i32) -> (i32, i32) {
    %c0_i32 = arith.constant 0 : i32
    %c0_i32_0 = arith.constant 0 : i32
    %c0_i32_1 = arith.constant 0 : i32
    return %c0_i32, %c0_i32_0 : i32, i32
  }
  func.func @transform_6(%arg0: i32) -> (i32, i32) {
    %c0_i32 = arith.constant 0 : i32
    %c0_i32_0 = arith.constant 0 : i32
    %c0_i32_1 = arith.constant 0 : i32
    return %c0_i32, %c0_i32_0 : i32, i32
  }
  func.func @transform_7(%arg0: i32) -> (i32, i32) {
    %c0_i32 = arith.constant 0 : i32
    %c0_i32_0 = arith.constant 0 : i32
    %c0_i32_1 = arith.constant 0 : i32
    return %c0_i32, %c0_i32_0 : i32, i32
  }
  func.func @transform_8(%arg0: i32) -> (i32, i32) {
    %c0_i32 = arith.constant 0 : i32
    %c0_i32_0 = arith.constant 0 : i32
    %c0_i32_1 = arith.constant 0 : i32
    return %c0_i32, %c0_i32_0 : i32, i32
  }
}

</mosaic_0001>

<bundles_post_ra>
// kernel: _lambda_.9
= control target key start
LH: loop header
LB: loop body
LE: loop exit
PB: predicated region body
PF: predicated region fallthrough
CT: control target
= control target key end

     0   :  { %v227_v0 = vmov 0.0   ;;  %vm228_vm0 = vmmov 0   ;;  %s282_s1 = inlined_call_operand.vmem [shape: bf16[128,128], index: 1, kind: input, shape index: {}]   ;;  %s283_s0 = inlined_call_operand.vmem [shape: bf16[16,128], index: 0, kind: input, shape index: {}]   ;;  %s284_s2 = inlined_call_operand.vmem [shape: f32[1,128], index: 2, kind: input, shape index: {}]   ;;  %s285_s3 = inlined_call_operand.vmem [shape: bf16[16,128], index: 3, kind: output, shape index: {}]  }
   0x1   :  { %196 = vmatprep.subr.bf16.mxu0 %v227_v0  ;;  %v218_v1 = vld [vmem:[%s282_s1] sm:$0xff]   ;;  %212 = vmatprep.mubr.msk.bf16.mxu0 %vm228_vm0, %v227_v0  ;;  %v219_v2 = vld [vmem:[%s282_s1 + $0x8] sm:$0xff]   ;;  %v220_v3 = vld [vmem:[%s282_s1 + $0x10] sm:$0xff]  }
   0x2   :  { %197 = vmatpush3.bf16.msra.mxu0 %v218_v1  ;;  %v221_v4 = vld [vmem:[%s282_s1 + $0x18] sm:$0xff]   ;;  %v222_v5 = vld [vmem:[%s282_s1 + $0x20] sm:$0xff]   ;;  %v223_v6 = vld [vmem:[%s282_s1 + $0x28] sm:$0xff]  }
   0x3   :  { %198 = vmatprep.subr.bf16.mxu0 %v227_v0  ;;  %v224_v7 = vld [vmem:[%s282_s1 + $0x30] sm:$0xff]   ;;  %v225_v8 = vld [vmem:[%s282_s1 + $0x38] sm:$0xff]   ;;  %v226_v9 = vld [vmem:[%s283_s0] sm:$0xff]  }
   0x4   :  { %v177_v11 = vld [vmem:[%s284_s2] ss:$0 sm:$0xff] }
   0x6   :  { %199 = vmatpush3.bf16.msra.mxu0 %v219_v2 }
   0x7   :  { %200 = vmatprep.subr.bf16.mxu0 %v227_v0 }
   0xa   :  { %201 = vmatpush3.bf16.msra.mxu0 %v220_v3 }
   0xb   :  { %202 = vmatprep.subr.bf16.mxu0 %v227_v0 }
   0xe   :  { %203 = vmatpush3.bf16.msra.mxu0 %v221_v4 }
   0xf   :  { %204 = vmatprep.subr.bf16.mxu0 %v227_v0 }
  0x12   :  { %205 = vmatpush3.bf16.msra.mxu0 %v222_v5 }
  0x13   :  { %206 = vmatprep.subr.bf16.mxu0 %v227_v0 }
  0x16   :  { %207 = vmatpush3.bf16.msra.mxu0 %v223_v6 }
  0x17   :  { %208 = vmatprep.subr.bf16.mxu0 %v227_v0 }
  0x1a   :  { %209 = vmatpush3.bf16.msra.mxu0 %v224_v7 }
  0x1b   :  { %210 = vmatprep.subr.bf16.mxu0 %v227_v0 }
  0x1e   :  { %211 = vmatpush3.bf16.msra.mxu0 %v225_v8 }
  0x21   :  { %213 = vmatmul.mubr.bf16.vlgmr.msra.gmra.mrb[0].mxu0 %v226_v9 }
  0xf4   :  { %v129_v10 = vpop.f32.mrb[0].mxu0 }
  0xf5   :  { %v214_v12 = vpop.f32.mrb[1].mxu0  ;;  %v152_v14 = vadd.f32 %v177_v11, %v129_v10 }
  0xf6   :  { %v132_v13 = vpop.f32.mrb[2].mxu0 }
  0xf7   :  { %v153_v15 = vadd.f32 %v177_v11, %v132_v13  ;;  %v215_v16 = vpop.f32.mrb[3].mxu0 }
  0xf9   :  { %v185_v17 = vpack.c.bf16 %v153_v15, %v152_v14 }
  0xfb   :  { %186 = vst [vmem:[%s285_s3] sm:$0xff] %v185_v17  }

// kernel: _lambda_.10
= control target key start
LH: loop header
LB: loop body
LE: loop exit
PB: predicated region body
PF: predicated region fallthrough
CT: control target
= control target key end

     0   :  { %v378_v27 = vmov 0   ;;  %v111_v50 = vlaneseq  ;;  %s491_s0 = inlined_call_operand.vmem [shape: bf16[16,128], index: 0, kind: input, shape index: {}]   ;;  %s492_s1 = inlined_call_operand.vmem [shape: bf16[16,128], index: 1, kind: input, shape index: {}]   ;;  %s493_s4 = inlined_call_operand.vmem [shape: bf16[128,256], index: 4, kind: input, shape index: {}]   ;;  %s494_s2 = inlined_call_operand.vmem [shape: f32[1,128], index: 2, kind: input, shape index: {}]   ;;  %s495_s3 = inlined_call_operand.vmem [shape: f32[1,128], index: 3, kind: input, shape index: {}]   ;;  %s496_s6 = inlined_call_operand.vmem [shape: bf16[16,128], index: 6, kind: output, shape index: {0}]   ;;  %s497_s5 = inlined_call_operand.vmem [shape: f32[1,256], index: 5, kind: input, shape index: {}]   ;;  %s498_s7 = inlined_call_operand.vmem [shape: bf16[16,256], index: 7, kind: output, shape index: {1}]  }
   0x1   :  { %v329_v0 = vld [vmem:[%s491_s0] sm:$0xff]   ;;  %v345_v10 = vld [vmem:[%s493_s4 + $0x14] ss:$8 sps:$4 sm:$0xff]   ;;  %v347_v19 = vld [vmem:[%s493_s4 + $0x10] ss:$8 sps:$4 sm:$0xff]   ;;  %233 = vmatprep.mubr.bf16.mxu0 %v378_v27 }
   0x2   :  { %v333_v1 = vld [vmem:[%s492_s1] sm:$0xff]   ;;  %v330_v2 = vunpack.c.l.bf16 %v329_v0  ;;  %v331_v4 = vunpack.c.h.bf16 %v329_v0  ;;  %v351_v22 = vld [vmem:[%s493_s4 + $0x34] ss:$8 sps:$4 sm:$0xff]   ;;  %v353_v23 = vld [vmem:[%s493_s4 + $0x30] ss:$8 sps:$4 sm:$0xff]   ;;  %v112_v51 = vshrl.u32 %v111_v50, 7 }
   0x3   :  { %v334_v3 = vunpack.c.l.bf16 %v333_v1  ;;  %v335_v5 = vunpack.c.h.bf16 %v333_v1  ;;  %v342_v8 = vld [vmem:[%s493_s4 + $0x4] ss:$8 sps:$4 sm:$0xff]   ;;  %v344_v9 = vld [vmem:[%s493_s4] ss:$8 sps:$4 sm:$0xff]   ;;  %v357_v26 = vld [vmem:[%s493_s4 + $0x54] ss:$8 sps:$4 sm:$0xff]  }
   0x4   :  { %201 = vmatprep.subr.bf16.mxu0 %v342_v8  ;;  %v348_v20 = vld [vmem:[%s493_s4 + $0x24] ss:$8 sps:$4 sm:$0xff]   ;;  %v350_v21 = vld [vmem:[%s493_s4 + $0x20] ss:$8 sps:$4 sm:$0xff]   ;;  %v359_v28 = vld [vmem:[%s493_s4 + $0x50] ss:$8 sps:$4 sm:$0xff]  }
   0x5   :  { %v38_v6 = vadd.f32 %v334_v3, %v330_v2  ;;  %v39_v7 = vadd.f32 %v335_v5, %v331_v4  ;;  %202 = vmatpush1.bf16.msra.mxu0 %v344_v9  ;;  %v354_v24 = vld [vmem:[%s493_s4 + $0x44] ss:$8 sps:$4 sm:$0xff]   ;;  %v356_v25 = vld [vmem:[%s493_s4 + $0x40] ss:$8 sps:$4 sm:$0xff]   ;;  %v363_v31 = vld [vmem:[%s493_s4 + $0x74] ss:$8 sps:$4 sm:$0xff]  }
   0x6   :  { %203 = vmatprep.subr.bf16.mxu0 %v345_v10  ;;  %v360_v29 = vld [vmem:[%s493_s4 + $0x64] ss:$8 sps:$4 sm:$0xff]   ;;  %v362_v30 = vld [vmem:[%s493_s4 + $0x60] ss:$8 sps:$4 sm:$0xff]   ;;  %v365_v32 = vld [vmem:[%s493_s4 + $0x70] ss:$8 sps:$4 sm:$0xff]  }
   0x7   :  { %40 = vadd.xlane.f32.xlu0 %v38_v6  ;;  %v302_v41 = vld [vmem:[%s494_s2] ss:$0 sm:$0xff]  ;;  %v113_v52 = vsub.s32 0, %v112_v51  ;;  %v117_v54 = vsub.s32 1, %v112_v51 }
   0x8   :  { %v303_v45 = vld [vmem:[%s495_s3] ss:$0 sm:$0xff] }
   0x9   :  { %204 = vmatpush1.bf16.msra.mxu0 %v347_v19  ;;  %v109_v53 = vld [vmem:[%s497_s5] sm:$0x3] }
   0xa   :  { %205 = vmatprep.subr.bf16.mxu0 %v348_v20  ;;  %v114_v55 = vrot.slane %v109_v53, %v113_v52  ;;  %v118_v56 = vrot.slane %v109_v53, %v117_v54 }
   0xb   :  { %42 = vadd.xlane.f32.xlu0 %v39_v7 }
   0xd   :  { %206 = vmatpush1.bf16.msra.mxu0 %v350_v21 }
   0xe   :  { %207 = vmatprep.subr.bf16.mxu0 %v351_v22 }
  0x11   :  { %208 = vmatpush1.bf16.msra.mxu0 %v353_v23 }
  0x12   :  { %209 = vmatprep.subr.bf16.mxu0 %v354_v24 }
  0x15   :  { %210 = vmatpush1.bf16.msra.mxu0 %v356_v25 }
  0x16   :  { %211 = vmatprep.subr.bf16.mxu0 %v357_v26 }
  0x19   :  { %212 = vmatpush1.bf16.msra.mxu0 %v359_v28 }
  0x1a   :  { %213 = vmatprep.subr.bf16.mxu0 %v360_v29 }
  0x1d   :  { %214 = vmatpush1.bf16.msra.mxu0 %v362_v30 }
  0x1e   :  { %215 = vmatprep.subr.bf16.mxu0 %v363_v31 }
  0x21   :  { %216 = vmatpush1.bf16.msra.mxu0 %v365_v32 }
  0x94   :  { %v41_v11 = vpop.xlane.xlu0 %40 }
  0x95   :  { %v45_v12 = vmul.f32 0.0078125, %v41_v11 }
  0x97   :  { %v47_v13 = vsub.f32 %v38_v6, %v45_v12 }
  0x98   :  { %v43_v14 = vpop.xlane.xlu0 %42 }
  0x99   :  { %v46_v15 = vmul.f32 0.0078125, %v43_v14  ;;  %v49_v16 = vmul.f32 %v47_v13, %v47_v13 }
  0x9b   :  { %v48_v17 = vsub.f32 %v39_v7, %v46_v15  ;;  %51 = vadd.xlane.f32.xlu1 %v49_v16 }
  0x9d   :  { %v50_v18 = vmul.f32 %v48_v17, %v48_v17 }
  0x9f   :  { %53 = vadd.xlane.f32.xlu1 %v50_v18 }
 0x128   :  { %v52_v33 = vpop.xlane.xlu1 %51 }
 0x129   :  { %v55_v34 = vmul.f32 0.0078125, %v52_v33 }
 0x12b   :  { %v57_v35 = vadd.f32 1e-12, %v55_v34 }
 0x12c   :  { %v54_v36 = vpop.xlane.xlu1 %53 }
 0x12d   :  { %366 = vrsqrt.f32 %v57_v35  ;;  %v56_v37 = vmul.f32 0.0078125, %v54_v36 }
 0x12f   :  { %v58_v38 = vadd.f32 1e-12, %v56_v37 }
 0x131   :  { %368 = vrsqrt.f32 %v58_v38 }
 0x137   :  { %v367_v39 = vpop.eup %366 }
 0x138   :  { %v61_v40 = vmul.f32 %v367_v39, %v47_v13 }
 0x13a   :  { %v70_v44 = vmul.f32 %v302_v41, %v61_v40 }
 0x13b   :  { %v369_v42 = vpop.eup %368 }
 0x13c   :  { %v62_v43 = vmul.f32 %v369_v42, %v48_v17  ;;  %v79_v47 = vadd.f32 %v303_v45, %v70_v44 }
 0x13e   :  { %v71_v46 = vmul.f32 %v302_v41, %v62_v43 }
 0x140   :  { %v80_v48 = vadd.f32 %v303_v45, %v71_v46 }
 0x142   :  { %v81_v49 = vpack.c.bf16 %v80_v48, %v79_v47 }
 0x144   :  { %340 = vst [vmem:[%s496_s6] sm:$0xff] %v81_v49   ;;  %234 = vmatmul.mubr.bf16.vlgmr.msra.gmra.mrb[0].mxu0 %v81_v49 }
 0x217   :  { %v235_v57 = vpop.f32.mrb[0].mxu0 }
 0x218   :  { %v236_v58 = vadd.f32 %v235_v57, %v114_v55  ;;  %v237_v59 = vpop.f32.mrb[1].mxu0 }
 0x219   :  { %v238_v60 = vadd.f32 %v237_v59, %v118_v56  ;;  %v239_v61 = vpop.f32.mrb[2].mxu0 }
 0x21a   :  { %v244_v62 = vmul.f32 %v236_v58, %v236_v58  ;;  %v240_v63 = vadd.f32 %v239_v61, %v114_v55  ;;  %v241_v0 = vpop.f32.mrb[3].mxu0 }
 0x21b   :  { %v245_v1 = vmul.f32 %v238_v60, %v238_v60  ;;  %v242_v2 = vadd.f32 %v241_v0, %v118_v56 }
 0x21c   :  { %v248_v3 = vmul.f32 %v244_v62, %v236_v58  ;;  %v246_v4 = vmul.f32 %v240_v63, %v240_v63 }
 0x21d   :  { %v249_v5 = vmul.f32 %v245_v1, %v238_v60  ;;  %v247_v6 = vmul.f32 %v242_v2, %v242_v2 }
 0x21e   :  { %v252_v7 = vmul.f32 0.044715, %v248_v3  ;;  %v250_v8 = vmul.f32 %v246_v4, %v240_v63 }
 0x21f   :  { %v253_v9 = vmul.f32 0.044715, %v249_v5  ;;  %v251_v10 = vmul.f32 %v247_v6, %v242_v2 }
 0x220   :  { %v256_v11 = vadd.f32 %v252_v7, %v236_v58  ;;  %v254_v12 = vmul.f32 0.044715, %v250_v8 }
 0x221   :  { %v257_v13 = vadd.f32 %v253_v9, %v238_v60  ;;  %v255_v14 = vmul.f32 0.044715, %v251_v10 }
 0x222   :  { %v260_v15 = vmul.f32 0.7978846, %v256_v11  ;;  %v258_v16 = vadd.f32 %v254_v12, %v240_v63 }
 0x223   :  { %v261_v17 = vmul.f32 0.7978846, %v257_v13  ;;  %v259_v18 = vadd.f32 %v255_v14, %v242_v2 }
 0x224   :  { %370 = vtanh.f32 %v260_v15  ;;  %v262_v19 = vmul.f32 0.7978846, %v258_v16 }
 0x225   :  { %372 = vtanh.f32 %v261_v17  ;;  %v263_v20 = vmul.f32 0.7978846, %v259_v18 }
 0x226   :  { %374 = vtanh.f32 %v262_v19 }
 0x227   :  { %376 = vtanh.f32 %v263_v20 }
 0x22e   :  { %v371_v21 = vpop.eup %370 }
 0x22f   :  { %v373_v22 = vpop.eup %372  ;;  %v268_v23 = vadd.f32 1.0, %v371_v21 }
 0x230   :  { %v375_v24 = vpop.eup %374  ;;  %v269_v25 = vadd.f32 1.0, %v373_v22 }
 0x231   :  { %v377_v26 = vpop.eup %376  ;;  %v272_v27 = vmul.f32 0.5, %v268_v23  ;;  %v270_v28 = vadd.f32 1.0, %v375_v24 }
 0x232   :  { %v273_v29 = vmul.f32 0.5, %v269_v25  ;;  %v271_v30 = vadd.f32 1.0, %v377_v26 }
 0x233   :  { %v276_v31 = vmul.f32 %v272_v27, %v236_v58  ;;  %v274_v32 = vmul.f32 0.5, %v270_v28 }
 0x234   :  { %v277_v33 = vmul.f32 %v273_v29, %v238_v60  ;;  %v275_v34 = vmul.f32 0.5, %v271_v30 }
 0x235   :  { %v278_v35 = vmul.f32 %v274_v32, %v240_v63 }
 0x236   :  { %v326_v36 = vpack.c.bf16 %v277_v33, %v276_v31  ;;  %v279_v37 = vmul.f32 %v275_v34, %v242_v2 }
 0x238   :  { %292 = vst [vmem:[%s498_s7] sm:$0xff] %v326_v36  ;;  %v327_v38 = vpack.c.bf16 %v279_v37, %v278_v35 }
 0x23a   :  { %293 = vst [vmem:[%s498_s7 + $0x8] sm:$0xff] %v327_v38 }

// kernel: _lambda_.8
= control target key start
LH: loop header
LB: loop body
LE: loop exit
PB: predicated region body
PF: predicated region fallthrough
CT: control target
= control target key end

     0   :  { %s1013_s12 = smov 0   ;;  %s1015_s13 = smov 0   ;;  %s1135_s0 = inlined_call_operand.vmem [shape: bf16[2,8,384], index: 0, kind: input, shape index: {}, may-alias: {0,1}]   ;;  %s1136_s1 = inlined_call_operand.vmem [shape: bf16[2,8,384], index: 1, kind: input, shape index: {}, may-alias: {0,1}]   ;;  %s1137_s2 = inlined_call_operand.vmem [shape: f32[2,1,8], index: 2, kind: input, shape index: {}]   ;;  %s1138_s3 = inlined_call_operand.vmem [shape: bf16[2,8,128], index: 3, kind: output, shape index: {}]  }
   0x1   :  { %s1017_s14 = smov 0  }
   0x2 LB: > { %s25_s15 = sadd.s32 1, %s982_s13  ;;  %p832_p0 = scmp.ge.s32.totalorder %s986_s14, 1  ;;  %s986_s14 = sphi %s1017_s14, %s13_s14   ;;  %s982_s13 = sphi %s1015_s13, %s1140_s13   ;;  %s978_s12 = sphi %s1013_s12, %s1139_s12  }
   0x3   : > { %p27_p1 = scmp.ge.s32.totalorder %s25_s15, 2  ;;  %p176_p2 = scmp.lt.s32.totalorder %s986_s14, 3 }
   0x5   : > { %s1142_s15 = smov (%p27_p1, %s25_s15), 0  ;;  %p177_p3 = pnand %p832_p0, %p176_p2 }
   0x6   : > { %p215_p4 = scmp.lt.s32.totalorder (!%p177_p3), %s978_s12, 1  ;;  %v988_v0 = vmov (!%p177_p3), 0.0   ;;  %vm989_vm0 = vmmov (!%p177_p3), 0   ;;  %vm252_vm1 = vcmask (!%p177_p3), 261120   ;;  %vm299_vm2 = vcmask (!%p177_p3), 64512   ;;  %s990_s26 = smov (!%p177_p3), 96  }
   0x7   : > { %180 = sbr.rel (%p177_p3) target bundleno = 1596 (0x63c), region = 32  ;;  %868 = vmatprep.subr.bf16.mxu0 (!%p177_p3), %v988_v0  ;;  %870 = vmatprep.mubr.msk.bf16.mxu0 (!%p177_p3), %vm989_vm0, %v988_v0  ;;  %s991_s27 = smov (!%p177_p3), 64   ;;  %vm318_vm3 = vcmask (!%p177_p3), 1043456   ;;  %vm486_vm4 = vcmask (!%p177_p3), 519168   ;;  %vm722_vm5 = vcmask (!%p177_p3), 1043968  }
   0x8   : > { %874 = vmatprep.subr.bf16.mxu1 (!%p177_p3), %v988_v0  ;;  %876 = vmatprep.mubr.msk.bf16.mxu1 (!%p177_p3), %vm989_vm0, %v988_v0  ;;  %s992_s28 = smov (!%p177_p3), 32  }
   0xe   : > { %s1144_s12 = smov (!%p215_p4, %s978_s12), 1 }
   0xf   : > { %s916_s16 = smul.u32 12, %s1144_s12  ;;  %s232_s25 = scalar_lea.vmem %s1137_s2, %s1144_s12 }
  0x10   : > { %v1055_v5 = vld [vmem:[%s232_s25] ss:$0 sm:$0xff]  ;;  %s835_s29 = sshll.u32 %s1144_s12, 2 }
  0x11   : > { %s219_s19 = scalar_lea.vmem %s1135_s0, %s916_s16  ;;  %s776_s22 = scalar_lea.vmem %s1136_s1, %s916_s16 }
  0x12   : > { %v242_v1 = vld [vmem:[%s219_s19] sm:$0xff]  ;;  %v836_v3 = vld [vmem:[%s776_s22 + $0x8] sm:$0xf]  ;;  %s239_s5 = scalar_lea.vmem %s1138_s3, %s835_s29 }
  0x13   : > { %v257_v2 = vsel %vm252_vm1, %v242_v1, 0  ;;  %v251_v4 = vmul.bf16 1043676725, %v836_v3  ;;  %v842_v12 = vcombine.low %v242_v1, %v242_v1  ;;  %v1065_v19 = vcombine.high %v242_v1, %v242_v1 }
  0x14   : > { %869 = vmatpush3.bf16.xpose.msra.mxu0 %v257_v2 }
  0x15   : > { %886 = vmatprep.subr.bf16.mxu0 %v988_v0  ;;  %370 = vrot.lane.b32.xlu1 %v842_v12, %s990_s26  ;;  %v841_v13 = vcombine.low %v251_v4, %v251_v4  ;;  %v320_v20 = vsel %vm318_vm3, %v1065_v19, 0 }
  0x16   : > { %875 = vmatpush3.bf16.msra.mxu1 %v320_v20 }
  0x17   : > { %880 = vmatprep.subr.bf16.mxu1 %v988_v0 }
  0x19   : > { %366 = vrot.lane.b32.xlu1 %v841_v13, %s990_s26 }
  0x1b   : > { %871 = vmatmul.mubr.msk.bf16.vlgmr.msra.gmra.mrb[0].mxu0 %vm252_vm1, %v251_v4 }
  0x1c   : > { %888 = vmatprep.mubr.msk.bf16.mxu0 %vm989_vm0, %v988_v0 }
  0x1d   : > { %488 = vrot.lane.b32.xlu1 %v841_v13, %s991_s27 }
  0x21   : > { %601 = vrot.lane.b32.xlu1 %v842_v12, %s992_s28 }
  0x25   : > { %599 = vrot.lane.b32.xlu1 %v841_v13, %s992_s28 }
  0x87   : > { %v371_v23 = vpop.permute.xlu1 %370 }
  0x88   : > { %v376_v25 = vsel %vm252_vm1, %v371_v23, 0 }
  0x8b   : > { %v367_v27 = vpop.permute.xlu1 %366 }
  0x8f   : > { %v489_v29 = vpop.permute.xlu1 %488 }
  0x93   : > { %v602_v31 = vpop.permute.xlu1 %601 }
  0x94   : > { %v607_v32 = vsel %vm252_vm1, %v602_v31, 0 }
  0x97   : > { %v600_v33 = vpop.permute.xlu1 %599 }
  0xee   : > { %v293_v6 = vpop.f32.mrb[0].mxu0 }
  0xef   : > { %v294_v7 = vadd.f32 %v1055_v5, %v293_v6  ;;  %v872_v8 = vpop.f32.mrb[1].mxu0 }
  0xf0   : > { %v296_v9 = vpop.f32.mrb[2].mxu0 }
  0xf1   : > { %v873_v10 = vpop.f32.mrb[3].mxu0  ;;  %v300_v11 = vsel %vm299_vm2, %v294_v7, -inf }
  0xf2   : > { %301 = vmax.xlane.f32.xlu0 %v300_v11 }
 0x17f   : > { %v302_v14 = vpop.xlane.xlu0 %301 }
 0x180   : > { %v303_v15 = vsub.f32 %v294_v7, %v302_v14 }
 0x182   : > { %v304_v16 = vmul.f32 1.442695, %v303_v15 }
 0x184   : > { %948 = vpow2.f32 %v304_v16 }
 0x18e   : > { %v949_v17 = vpop.eup %948 }
 0x18f   : > { %v306_v18 = vsel %vm299_vm2, %v949_v17, 0.0 }
 0x190   : > { %307 = vadd.xlane.f32.xlu0 %v306_v18 }
 0x1a6   : > { %490 = vrot.lane.b32.xlu0 %v842_v12, %s991_s27 }
 0x21d   : > { %v308_v21 = vpop.xlane.xlu0 %307 }
 0x21e   : > { %950 = vrcp.f32 %v308_v21 }
 0x221   : > { %v491_v28 = vpop.permute.xlu0 %490 }
 0x222   : > { %v496_v30 = vsel %vm252_vm1, %v491_v28, 0 }
 0x228   : > { %v951_v22 = vpop.eup %950 }
 0x229   : > { %v310_v24 = vmul.f32 %v951_v22, %v949_v17 }
 0x22b   : > { %v311_v26 = vpack.c.bf16 %v310_v24, %v310_v24 }
 0x22d   : > { %877 = vmatmul.mubr.msk.bf16.vlgmr.msra.gmra.mrb[0].mxu1 %vm299_vm2, %v311_v26 }
 0x22e   : > { %881 = vmatpush3.bf16.xpose.msra.mxu1 %v376_v25  ;;  %882 = vmatprep.mubr.msk.bf16.mxu1 %vm989_vm0, %v988_v0 }
 0x22f   : > { %892 = vmatprep.subr.bf16.mxu1 %v988_v0 }
 0x235   : > { %883 = vmatmul.mubr.msk.bf16.vlgmr.msra.gmra.mrb[4].mxu1 %vm252_vm1, %v367_v27 }
 0x236   : > { %893 = vmatpush3.bf16.xpose.msra.mxu1 %v496_v30  ;;  %894 = vmatprep.mubr.msk.bf16.mxu1 %vm989_vm0, %v988_v0 }
 0x237   : > { %904 = vmatprep.subr.bf16.mxu1 %v988_v0 }
 0x23d   : > { %895 = vmatmul.mubr.msk.bf16.vlgmr.msra.gmra.mrb[8].mxu1 %vm252_vm1, %v489_v29 }
 0x23e   : > { %905 = vmatpush3.bf16.xpose.msra.mxu1 %v607_v32  ;;  %906 = vmatprep.mubr.msk.bf16.mxu1 %vm989_vm0, %v988_v0 }
 0x245   : > { %907 = vmatmul.mubr.msk.bf16.vlgmr.msra.gmra.mrb[12].mxu1 %vm252_vm1, %v600_v33 }
 0x300   : > { %v1086_v34 = vpop.f32.mrb[0].mxu1 }
 0x301   : > { %v878_v35 = vpop.f32.mrb[1].mxu1 }
 0x302   : > { %v359_v36 = vpop.f32.mrb[2].mxu1 }
 0x303   : > { %v879_v37 = vpop.f32.mrb[3].mxu1 }
 0x308   : > { %v412_v38 = vpop.f32.mrb[4].mxu1 }
 0x309   : > { %v413_v39 = vadd.f32 %v1055_v5, %v412_v38  ;;  %v884_v40 = vpop.f32.mrb[5].mxu1 }
 0x30a   : > { %v415_v41 = vpop.f32.mrb[6].mxu1  ;;  %v362_v40 = vpack.c.bf16 %v1086_v34, %v1086_v34 }
 0x30b   : > { %v885_v42 = vpop.f32.mrb[7].mxu1  ;;  %v418_v43 = vsel %vm299_vm2, %v413_v39, -inf }
 0x30c   : > { %419 = vmax.xlane.f32.xlu1 %v418_v43 }
 0x310   : > { %v532_v44 = vpop.f32.mrb[8].mxu1 }
 0x311   : > { %v533_v45 = vadd.f32 %v1055_v5, %v532_v44  ;;  %v896_v46 = vpop.f32.mrb[9].mxu1 }
 0x312   : > { %v535_v47 = vpop.f32.mrb[10].mxu1 }
 0x313   : > { %v538_v48 = vsel %vm299_vm2, %v533_v45, -inf  ;;  %v897_v49 = vpop.f32.mrb[11].mxu1 }
 0x314   : > { %539 = vmax.xlane.f32.xlu0 %v538_v48 }
 0x318   : > { %v643_v50 = vpop.f32.mrb[12].mxu1 }
 0x319   : > { %v644_v51 = vadd.f32 %v1055_v5, %v643_v50  ;;  %v908_v52 = vpop.f32.mrb[13].mxu1 }
 0x31a   : > { %v646_v53 = vpop.f32.mrb[14].mxu1 }
 0x31b   : > { %v649_v54 = vsel %vm299_vm2, %v644_v51, -inf  ;;  %v909_v55 = vpop.f32.mrb[15].mxu1 }
 0x31c   : > { %650 = vmax.xlane.f32.xlu1 %v649_v54 }
 0x399   : > { %v420_v56 = vpop.xlane.xlu1 %419 }
 0x39a   : > { %v421_v57 = vsub.f32 %v413_v39, %v420_v56 }
 0x39c   : > { %v422_v58 = vmul.f32 1.442695, %v421_v57 }
 0x39e   : > { %952 = vpow2.f32 %v422_v58 }
 0x3a1   : > { %v540_v59 = vpop.xlane.xlu0 %539 }
 0x3a2   : > { %v541_v60 = vsub.f32 %v533_v45, %v540_v59 }
 0x3a4   : > { %v542_v61 = vmul.f32 1.442695, %v541_v60 }
 0x3a6   : > { %954 = vpow2.f32 %v542_v61 }
 0x3a8   : > { %v953_v62 = vpop.eup %952 }
 0x3a9   : > { %v424_v63 = vsel %vm299_vm2, %v953_v62, 0.0  ;;  %v651_v3 = vpop.xlane.xlu1 %650 }
 0x3aa   : > { %425 = vadd.xlane.f32.xlu1 %v424_v63  ;;  %v652_v4 = vsub.f32 %v644_v51, %v651_v3 }
 0x3ac   : > { %v653_v5 = vmul.f32 1.442695, %v652_v4 }
 0x3ae   : > { %956 = vpow2.f32 %v653_v5 }
 0x3b0   : > { %v955_v1 = vpop.eup %954 }
 0x3b1   : > { %v544_v2 = vsel %vm299_vm2, %v955_v1, 0.0 }
 0x3b2   : > { %545 = vadd.xlane.f32.xlu0 %v544_v2 }
 0x3b8   : > { %v957_v6 = vpop.eup %956 }
 0x3b9   : > { %v655_v7 = vsel %vm299_vm2, %v957_v6, 0.0 }
 0x3bb   : > { %550 = vrot.lane.b32.xlu1 %v1065_v19, %s991_s27 }
 0x3c8   : > { %430 = vrot.lane.b32.xlu0 %v1065_v19, %s990_s26 }
 0x3df   : > { %656 = vadd.xlane.f32.xlu1 %v655_v7 }
 0x3f0   : > { %661 = vrot.lane.b32.xlu1 %v1065_v19, %s992_s28 }
 0x437   : > { %v426_v8 = vpop.xlane.xlu1 %425 }
 0x438   : > { %958 = vrcp.f32 %v426_v8 }
 0x43b   : > { %v551_v14 = vpop.permute.xlu1 %550 }
 0x43c   : > { %v556_v16 = vsel %vm318_vm3, %v551_v14, 0 }
 0x43f   : > { %v546_v9 = vpop.xlane.xlu0 %545 }
 0x440   : > { %960 = vrcp.f32 %v546_v9 }
 0x442   : > { %v959_v10 = vpop.eup %958 }
 0x443   : > { %v428_v11 = vmul.f32 %v959_v10, %v953_v62  ;;  %v431_v12 = vpop.permute.xlu0 %430 }
 0x444   : > { %v436_v13 = vsel %vm318_vm3, %v431_v12, 0 }
 0x445   : > { %887 = vmatpush3.bf16.msra.mxu0 %v436_v13  ;;  %v429_v15 = vpack.c.bf16 %v428_v11, %v428_v11 }
 0x446   : > { %898 = vmatprep.subr.bf16.mxu0 %v988_v0 }
 0x448   : > { %889 = vmatmul.mubr.msk.bf16.vlgmr.msra.gmra.mrb[4].mxu0 %vm299_vm2, %v429_v15 }
 0x449   : > { %899 = vmatpush3.bf16.msra.mxu0 %v556_v16  ;;  %900 = vmatprep.mubr.msk.bf16.mxu0 %vm989_vm0, %v988_v0 }
 0x44a   : > { %v961_v17 = vpop.eup %960  ;;  %910 = vmatprep.subr.bf16.mxu0 %v988_v0 }
 0x44b   : > { %v548_v18 = vmul.f32 %v961_v17, %v955_v1 }
 0x44d   : > { %v549_v19 = vpack.c.bf16 %v548_v18, %v548_v18 }
 0x450   : > { %901 = vmatmul.mubr.msk.bf16.vlgmr.msra.gmra.mrb[8].mxu0 %vm299_vm2, %v549_v19 }
 0x451   : > { %912 = vmatprep.mubr.msk.bf16.mxu0 %vm989_vm0, %v988_v0 }
 0x46c   : > { %v657_v20 = vpop.xlane.xlu1 %656 }
 0x46d   : > { %962 = vrcp.f32 %v657_v20 }
 0x470   : > { %v662_v21 = vpop.permute.xlu1 %661 }
 0x471   : > { %v667_v22 = vsel %vm318_vm3, %v662_v21, 0 }
 0x472   : > { %911 = vmatpush3.bf16.msra.mxu0 %v667_v22 }
 0x477   : > { %v963_v23 = vpop.eup %962 }
 0x478   : > { %v659_v24 = vmul.f32 %v963_v23, %v957_v6 }
 0x47a   : > { %v660_v25 = vpack.c.bf16 %v659_v24, %v659_v24 }
 0x47c   : > { %913 = vmatmul.mubr.msk.bf16.vlgmr.msra.gmra.mrb[12].mxu0 %vm299_vm2, %v660_v25 }
 0x51b   : > { %v472_v26 = vpop.f32.mrb[4].mxu0 }
 0x51c   : > { %v478_v27 = vpack.c.bf16 %v472_v26, %v472_v26  ;;  %v890_v28 = vpop.f32.mrb[5].mxu0 }
 0x51d   : > { %v475_v29 = vpop.f32.mrb[6].mxu0 }
 0x51e   : > { %480 = vrot.lane.b32.xlu1 %v478_v27, %s992_s28  ;;  %v891_v30 = vpop.f32.mrb[7].mxu0 }
 0x523   : > { %v592_v0 = vpop.f32.mrb[8].mxu0 }
 0x524   : > { %v902_v31 = vpop.f32.mrb[9].mxu0  ;;  %v598_v43 = vpack.c.bf16 %v592_v0, %v592_v0 }
 0x525   : > { %v595_v32 = vpop.f32.mrb[10].mxu0 }
 0x526   : > { %v903_v33 = vpop.f32.mrb[11].mxu0 }
 0x54f   : > { %v703_v35 = vpop.f32.mrb[12].mxu0 }
 0x550   : > { %v709_v36 = vpack.c.bf16 %v703_v35, %v703_v35  ;;  %v914_v37 = vpop.f32.mrb[13].mxu0 }
 0x551   : > { %v706_v38 = vpop.f32.mrb[14].mxu0 }
 0x552   : > { %711 = vrot.lane.b32.xlu0 %v709_v36, %s992_s28  ;;  %v915_v39 = vpop.f32.mrb[15].mxu0 }
 0x590   : > { %v481_v41 = vpop.permute.xlu1 %480 }
 0x591   : > { %v484_v42 = vsel %vm252_vm1, %v362_v40, %v481_v41 }
 0x592   : > { %487 = vst.msk [vmem:[%s239_s5] sm:$0xf] %vm486_vm4, %v484_v42 }
 0x5c4   : > { %v712_v44 = vpop.permute.xlu0 %711 }
 0x5c5   : > { %v715_v45 = vsel %vm252_vm1, %v598_v43, %v712_v44 }
 0x5c6   : > { %v849_v46 = vcombine.low %v715_v45, %v715_v45 }
 0x5c8   : > { %719 = vrot.lane.b32.xlu0 %v849_v46, %s991_s27 }
 0x63a   : > { %v720_v47 = vpop.permute.xlu0 %719 }
 0x63b   : > { %723 = vst.msk [vmem:[%s239_s5] sm:$0xf] %vm722_vm5, %v720_v47 }
 0x63c PF: > { %s13_s14 = sadd.s32 1, %s986_s14   ;;  %s1139_s12 = smov %s982_s13 }
 0x63d   : > { %p10_p5 = scmp.ge.s32.totalorder %s13_s14, 4   ;;  %s1140_s13 = smov %s1142_s15 }
 0x63f   :  { %12 = sbr.rel (!%p10_p5) target bundleno = 2 (0x2), region = 68 }

// kernel: _lambda_.7
= control target key start
LH: loop header
LB: loop body
LE: loop exit
PB: predicated region body
PF: predicated region fallthrough
CT: control target
= control target key end

     0   :  { %v493_v7 = vmov 0.0   ;;  %v494_v34 = vmov 0   ;;  %vm495_vm0 = vmmov 0   ;;  %v123_v57 = vlaneseq  ;;  %s663_s0 = inlined_call_operand.vmem [shape: f32[16,128], index: 0, kind: input, shape index: {}]   ;;  %s664_s1 = inlined_call_operand.vmem [shape: f32[16,128], index: 1, kind: input, shape index: {}]   ;;  %s665_s4 = inlined_call_operand.vmem [shape: bf16[128,384], index: 4, kind: input, shape index: {}]   ;;  %s666_s2 = inlined_call_operand.vmem [shape: f32[1,128], index: 2, kind: input, shape index: {}]   ;;  %s667_s3 = inlined_call_operand.vmem [shape: f32[1,128], index: 3, kind: input, shape index: {}]   ;;  %s668_s6 = inlined_call_operand.vmem [shape: bf16[16,128], index: 6, kind: output, shape index: {0}]   ;;  %s669_s5 = inlined_call_operand.vmem [shape: f32[1,384], index: 5, kind: input, shape index: {}]   ;;  %s670_s7 = inlined_call_operand.vmem [shape: bf16[16,384], index: 7, kind: output, shape index: {1}]  }
   0x1   :  { %v30_v0 = vld [vmem:[%s663_s0] sm:$0xff]  ;;  %v31_v2 = vld [vmem:[%s663_s0 + $0x8] sm:$0xff]  ;;  %434 = vmatprep.subr.bf16.mxu1 %v493_v7  ;;  %v467_v22 = vld [vmem:[%s665_s4 + $0x30] ss:$12 sps:$4 sm:$0xff]   ;;  %298 = vmatprep.mubr.bf16.mxu0 %v494_v34 }
   0x2   :  { %v32_v1 = vld [vmem:[%s664_s1] sm:$0xff]  ;;  %v33_v4 = vld [vmem:[%s664_s1 + $0x8] sm:$0xff]  ;;  %v472_v26 = vld [vmem:[%s665_s4 + $0x50] ss:$12 sps:$4 sm:$0xff]   ;;  %450 = vmatprep.mubr.msk.bf16.mxu1 %vm495_vm0, %v493_v7  ;;  %v124_v58 = vshrl.u32 %v123_v57, 7 }
   0x3   :  { %v34_v3 = vadd.f32 %v32_v1, %v30_v0  ;;  %v35_v5 = vadd.f32 %v33_v4, %v31_v2  ;;  %v457_v6 = vld [vmem:[%s665_s4 + $0x4] ss:$12 sps:$4 sm:$0xff]   ;;  %v459_v8 = vld [vmem:[%s665_s4] ss:$12 sps:$4 sm:$0xff]   ;;  %v460_v9 = vld [vmem:[%s665_s4 + $0x8] ss:$12 sps:$4 sm:$0xff]  }
   0x4   :  { %266 = vmatprep.subr.bf16.mxu0 %v457_v6  ;;  %v461_v10 = vld [vmem:[%s665_s4 + $0x1c] ss:$12 sps:$4 sm:$0xff]   ;;  %435 = vmatpush3.bf16.msra.mxu1 %v460_v9  ;;  %v463_v19 = vld [vmem:[%s665_s4 + $0x18] ss:$12 sps:$4 sm:$0xff]   ;;  %v464_v20 = vld [vmem:[%s665_s4 + $0x20] ss:$12 sps:$4 sm:$0xff]  }
   0x5   :  { %36 = vadd.xlane.f32.xlu0 %v34_v3  ;;  %267 = vmatpush1.bf16.msra.mxu0 %v459_v8  ;;  %v465_v21 = vld [vmem:[%s665_s4 + $0x34] ss:$12 sps:$4 sm:$0xff]   ;;  %v468_v23 = vld [vmem:[%s665_s4 + $0x38] ss:$12 sps:$4 sm:$0xff]   ;;  %v477_v30 = vld [vmem:[%s665_s4 + $0x7c] ss:$12 sps:$4 sm:$0xff]  }
   0x6   :  { %268 = vmatprep.subr.bf16.mxu0 %v461_v10  ;;  %436 = vmatprep.subr.bf16.mxu1 %v493_v7  ;;  %v469_v24 = vld [vmem:[%s665_s4 + $0x4c] ss:$12 sps:$4 sm:$0xff]   ;;  %v471_v25 = vld [vmem:[%s665_s4 + $0x48] ss:$12 sps:$4 sm:$0xff]   ;;  %v473_v27 = vld [vmem:[%s665_s4 + $0x64] ss:$12 sps:$4 sm:$0xff]  }
   0x7   :  { %v475_v28 = vld [vmem:[%s665_s4 + $0x60] ss:$12 sps:$4 sm:$0xff]   ;;  %v476_v29 = vld [vmem:[%s665_s4 + $0x68] ss:$12 sps:$4 sm:$0xff]   ;;  %v479_v31 = vld [vmem:[%s665_s4 + $0x78] ss:$12 sps:$4 sm:$0xff]  }
   0x8   :  { %437 = vmatpush3.bf16.msra.mxu1 %v464_v20  ;;  %v480_v32 = vld [vmem:[%s665_s4 + $0x80] ss:$12 sps:$4 sm:$0xff]   ;;  %v483_v35 = vld [vmem:[%s665_s4 + $0x90] ss:$12 sps:$4 sm:$0xff]   ;;  %v484_v36 = vld [vmem:[%s665_s4 + $0x98] ss:$12 sps:$4 sm:$0xff]  }
   0x9   :  { %38 = vadd.xlane.f32.xlu0 %v35_v5  ;;  %269 = vmatpush1.bf16.msra.mxu0 %v463_v19  ;;  %v481_v33 = vld [vmem:[%s665_s4 + $0x94] ss:$12 sps:$4 sm:$0xff]   ;;  %v485_v37 = vld [vmem:[%s665_s4 + $0xac] ss:$12 sps:$4 sm:$0xff]   ;;  %v488_v39 = vld [vmem:[%s665_s4 + $0xb0] ss:$12 sps:$4 sm:$0xff]  }
   0xa   :  { %438 = vmatprep.subr.bf16.mxu1 %v493_v7  ;;  %270 = vmatprep.subr.bf16.mxu0 %v465_v21  ;;  %v487_v38 = vld [vmem:[%s665_s4 + $0xa8] ss:$12 sps:$4 sm:$0xff]   ;;  %v382_v48 = vld [vmem:[%s666_s2] ss:$0 sm:$0xff]  ;;  %v125_v59 = vsub.s32 0, %v124_v58  ;;  %v133_v60 = vsub.s32 2, %v124_v58 }
   0xb   :  { %v383_v52 = vld [vmem:[%s667_s3] ss:$0 sm:$0xff]  ;;  %v129_v62 = vsub.s32 1, %v124_v58 }
   0xc   :  { %439 = vmatpush3.bf16.msra.mxu1 %v468_v23  ;;  %v121_v61 = vld [vmem:[%s669_s5] sm:$0x7] }
   0xd   :  { %271 = vmatpush1.bf16.msra.mxu0 %v467_v22  ;;  %440 = vmatprep.subr.bf16.mxu1 %v493_v7  ;;  %v126_v63 = vrot.slane %v121_v61, %v125_v59  ;;  %v134_v0 = vrot.slane %v121_v61, %v133_v60  ;;  %v130_v1 = vrot.slane %v121_v61, %v129_v62 }
   0xe   :  { %272 = vmatprep.subr.bf16.mxu0 %v469_v24 }
  0x10   :  { %441 = vmatpush3.bf16.msra.mxu1 %v472_v26 }
  0x11   :  { %273 = vmatpush1.bf16.msra.mxu0 %v471_v25  ;;  %442 = vmatprep.subr.bf16.mxu1 %v493_v7 }
  0x12   :  { %274 = vmatprep.subr.bf16.mxu0 %v473_v27 }
  0x14   :  { %443 = vmatpush3.bf16.msra.mxu1 %v476_v29 }
  0x15   :  { %275 = vmatpush1.bf16.msra.mxu0 %v475_v28  ;;  %444 = vmatprep.subr.bf16.mxu1 %v493_v7 }
  0x16   :  { %276 = vmatprep.subr.bf16.mxu0 %v477_v30 }
  0x18   :  { %445 = vmatpush3.bf16.msra.mxu1 %v480_v32 }
  0x19   :  { %277 = vmatpush1.bf16.msra.mxu0 %v479_v31  ;;  %446 = vmatprep.subr.bf16.mxu1 %v493_v7 }
  0x1a   :  { %278 = vmatprep.subr.bf16.mxu0 %v481_v33 }
  0x1c   :  { %447 = vmatpush3.bf16.msra.mxu1 %v484_v36 }
  0x1d   :  { %279 = vmatpush1.bf16.msra.mxu0 %v483_v35  ;;  %448 = vmatprep.subr.bf16.mxu1 %v493_v7 }
  0x1e   :  { %280 = vmatprep.subr.bf16.mxu0 %v485_v37 }
  0x20   :  { %449 = vmatpush3.bf16.msra.mxu1 %v488_v39 }
  0x21   :  { %281 = vmatpush1.bf16.msra.mxu0 %v487_v38 }
  0x92   :  { %v37_v11 = vpop.xlane.xlu0 %36 }
  0x93   :  { %v41_v12 = vmul.f32 0.0078125, %v37_v11 }
  0x95   :  { %v562_v13 = vsub.f32 %v34_v3, %v41_v12 }
  0x96   :  { %v39_v14 = vpop.xlane.xlu0 %38 }
  0x97   :  { %v42_v15 = vmul.f32 0.0078125, %v39_v14  ;;  %v45_v16 = vmul.f32 %v562_v13, %v562_v13 }
  0x99   :  { %v566_v17 = vsub.f32 %v35_v5, %v42_v15  ;;  %47 = vadd.xlane.f32.xlu1 %v45_v16 }
  0x9b   :  { %v46_v18 = vmul.f32 %v566_v17, %v566_v17 }
  0x9d   :  { %49 = vadd.xlane.f32.xlu1 %v46_v18 }
 0x126   :  { %v48_v40 = vpop.xlane.xlu1 %47 }
 0x127   :  { %v51_v41 = vmul.f32 0.0078125, %v48_v40 }
 0x129   :  { %v53_v42 = vadd.f32 1e-12, %v51_v41 }
 0x12a   :  { %v50_v43 = vpop.xlane.xlu1 %49 }
 0x12b   :  { %489 = vrsqrt.f32 %v53_v42  ;;  %v52_v44 = vmul.f32 0.0078125, %v50_v43 }
 0x12d   :  { %v54_v45 = vadd.f32 1e-12, %v52_v44 }
 0x12f   :  { %491 = vrsqrt.f32 %v54_v45 }
 0x135   :  { %v490_v46 = vpop.eup %489 }
 0x136   :  { %v57_v47 = vmul.f32 %v490_v46, %v562_v13 }
 0x138   :  { %v66_v51 = vmul.f32 %v382_v48, %v57_v47 }
 0x139   :  { %v492_v49 = vpop.eup %491 }
 0x13a   :  { %v58_v50 = vmul.f32 %v492_v49, %v566_v17  ;;  %v75_v54 = vadd.f32 %v383_v52, %v66_v51 }
 0x13c   :  { %v67_v53 = vmul.f32 %v382_v48, %v58_v50 }
 0x13e   :  { %v76_v55 = vadd.f32 %v383_v52, %v67_v53 }
 0x140   :  { %v77_v56 = vpack.c.bf16 %v76_v55, %v75_v54 }
 0x142   :  { %424 = vst [vmem:[%s668_s6] sm:$0xff] %v77_v56   ;;  %299 = vmatmul.mubr.bf16.vlgmr.msra.gmra.mrb[0].mxu0 %v77_v56  ;;  %451 = vmatmul.mubr.bf16.vlgmr.msra.gmra.mrb[0].mxu1 %v77_v56 }
 0x215   :  { %v300_v2 = vpop.f32.mrb[0].mxu0  ;;  %v343_v3 = vpop.f32.mrb[0].mxu1 }
 0x216   :  { %v301_v4 = vadd.f32 %v300_v2, %v126_v63  ;;  %v344_v5 = vadd.f32 %v343_v3, %v134_v0  ;;  %v302_v6 = vpop.f32.mrb[1].mxu0  ;;  %v452_v7 = vpop.f32.mrb[1].mxu1 }
 0x217   :  { %v303_v8 = vadd.f32 %v302_v6, %v130_v1  ;;  %v304_v9 = vpop.f32.mrb[2].mxu0  ;;  %v346_v10 = vpop.f32.mrb[2].mxu1 }
 0x218   :  { %v417_v11 = vpack.c.bf16 %v344_v5, %v344_v5  ;;  %v305_v12 = vadd.f32 %v304_v9, %v126_v63  ;;  %v347_v13 = vadd.f32 %v346_v10, %v134_v0  ;;  %v306_v14 = vpop.f32.mrb[3].mxu0  ;;  %v453_v15 = vpop.f32.mrb[3].mxu1 }
 0x219   :  { %v416_v16 = vpack.c.bf16 %v303_v8, %v301_v4  ;;  %v307_v17 = vadd.f32 %v306_v14, %v130_v1 }
 0x21a   :  { %371 = vst [vmem:[%s670_s7 + $0x8] sm:$0xf] %v417_v11  ;;  %v419_v18 = vpack.c.bf16 %v347_v13, %v347_v13 }
 0x21b   :  { %370 = vst [vmem:[%s670_s7] sm:$0xff] %v416_v16  ;;  %v418_v19 = vpack.c.bf16 %v307_v17, %v305_v12 }
 0x21c   :  { %373 = vst [vmem:[%s670_s7 + $0x14] sm:$0xf] %v419_v18 }
 0x21d   :  { %372 = vst [vmem:[%s670_s7 + $0xc] sm:$0xff] %v418_v19 }

// kernel: _lambda_.12
= control target key start
LH: loop header
LB: loop body
LE: loop exit
PB: predicated region body
PF: predicated region fallthrough
CT: control target
= control target key end

     0   :  { %v303_v8 = vmov 0.0   ;;  %vm304_vm0 = vmmov 0   ;;  %s390_s0 = inlined_call_operand.vmem [shape: bf16[16,128], index: 0, kind: input, shape index: {}]   ;;  %s391_s1 = inlined_call_operand.vmem [shape: bf16[16,128], index: 1, kind: input, shape index: {}]   ;;  %s392_s4 = inlined_call_operand.vmem [shape: bf16[128,128], index: 4, kind: input, shape index: {}]   ;;  %s393_s2 = inlined_call_operand.vmem [shape: f32[1,128], index: 2, kind: input, shape index: {}]   ;;  %s394_s3 = inlined_call_operand.vmem [shape: f32[1,128], index: 3, kind: input, shape index: {}]   ;;  %s395_s6 = inlined_call_operand.vmem [shape: bf16[16,128], index: 6, kind: output, shape index: {0}]   ;;  %s396_s5 = inlined_call_operand.vmem [shape: f32[1,128], index: 5, kind: input, shape index: {}]   ;;  %s397_s7 = inlined_call_operand.vmem [shape: bf16[16,128], index: 7, kind: output, shape index: {1}]  }
   0x1   :  { %v243_v0 = vld [vmem:[%s390_s0] sm:$0xff]   ;;  %269 = vmatprep.subr.bf16.mxu0 %v303_v8  ;;  %v292_v18 = vld [vmem:[%s392_s4 + $0x8] sm:$0xff]   ;;  %v293_v19 = vld [vmem:[%s392_s4 + $0x10] sm:$0xff]   ;;  %285 = vmatprep.mubr.msk.bf16.mxu0 %vm304_vm0, %v303_v8 }
   0x2   :  { %v247_v1 = vld [vmem:[%s391_s1] sm:$0xff]   ;;  %v244_v2 = vunpack.c.l.bf16 %v243_v0  ;;  %v245_v4 = vunpack.c.h.bf16 %v243_v0  ;;  %v294_v20 = vld [vmem:[%s392_s4 + $0x18] sm:$0xff]   ;;  %v296_v22 = vld [vmem:[%s392_s4 + $0x28] sm:$0xff]  }
   0x3   :  { %v248_v3 = vunpack.c.l.bf16 %v247_v1  ;;  %v249_v5 = vunpack.c.h.bf16 %v247_v1  ;;  %v291_v9 = vld [vmem:[%s392_s4] sm:$0xff]   ;;  %v297_v23 = vld [vmem:[%s392_s4 + $0x30] sm:$0xff]   ;;  %v298_v24 = vld [vmem:[%s392_s4 + $0x38] sm:$0xff]  }
   0x4   :  { %270 = vmatpush3.bf16.msra.mxu0 %v291_v9  ;;  %v295_v21 = vld [vmem:[%s392_s4 + $0x20] sm:$0xff]  }
   0x5   :  { %v38_v6 = vadd.f32 %v248_v3, %v244_v2  ;;  %v39_v7 = vadd.f32 %v249_v5, %v245_v4  ;;  %271 = vmatprep.subr.bf16.mxu0 %v303_v8  ;;  %v223_v33 = vld [vmem:[%s393_s2] ss:$0 sm:$0xff] }
   0x6   :  { %v224_v37 = vld [vmem:[%s394_s3] ss:$0 sm:$0xff] }
   0x7   :  { %40 = vadd.xlane.f32.xlu0 %v38_v6  ;;  %v227_v42 = vld [vmem:[%s396_s5] ss:$0 sm:$0xff] }
   0x8   :  { %272 = vmatpush3.bf16.msra.mxu0 %v292_v18 }
   0x9   :  { %273 = vmatprep.subr.bf16.mxu0 %v303_v8 }
   0xb   :  { %42 = vadd.xlane.f32.xlu0 %v39_v7 }
   0xc   :  { %274 = vmatpush3.bf16.msra.mxu0 %v293_v19 }
   0xd   :  { %275 = vmatprep.subr.bf16.mxu0 %v303_v8 }
  0x10   :  { %276 = vmatpush3.bf16.msra.mxu0 %v294_v20 }
  0x11   :  { %277 = vmatprep.subr.bf16.mxu0 %v303_v8 }
  0x14   :  { %278 = vmatpush3.bf16.msra.mxu0 %v295_v21 }
  0x15   :  { %279 = vmatprep.subr.bf16.mxu0 %v303_v8 }
  0x18   :  { %280 = vmatpush3.bf16.msra.mxu0 %v296_v22 }
  0x19   :  { %281 = vmatprep.subr.bf16.mxu0 %v303_v8 }
  0x1c   :  { %282 = vmatpush3.bf16.msra.mxu0 %v297_v23 }
  0x1d   :  { %283 = vmatprep.subr.bf16.mxu0 %v303_v8 }
  0x20   :  { %284 = vmatpush3.bf16.msra.mxu0 %v298_v24 }
  0x94   :  { %v41_v10 = vpop.xlane.xlu0 %40 }
  0x95   :  { %v45_v11 = vmul.f32 0.0078125, %v41_v10 }
  0x97   :  { %v47_v12 = vsub.f32 %v38_v6, %v45_v11 }
  0x98   :  { %v43_v13 = vpop.xlane.xlu0 %42 }
  0x99   :  { %v46_v14 = vmul.f32 0.0078125, %v43_v13  ;;  %v49_v15 = vmul.f32 %v47_v12, %v47_v12 }
  0x9b   :  { %v48_v16 = vsub.f32 %v39_v7, %v46_v14  ;;  %51 = vadd.xlane.f32.xlu1 %v49_v15 }
  0x9d   :  { %v50_v17 = vmul.f32 %v48_v16, %v48_v16 }
  0x9f   :  { %53 = vadd.xlane.f32.xlu1 %v50_v17 }
 0x128   :  { %v52_v25 = vpop.xlane.xlu1 %51 }
 0x129   :  { %v55_v26 = vmul.f32 0.0078125, %v52_v25 }
 0x12b   :  { %v57_v27 = vadd.f32 1e-12, %v55_v26 }
 0x12c   :  { %v54_v28 = vpop.xlane.xlu1 %53 }
 0x12d   :  { %299 = vrsqrt.f32 %v57_v27  ;;  %v56_v29 = vmul.f32 0.0078125, %v54_v28 }
 0x12f   :  { %v58_v30 = vadd.f32 1e-12, %v56_v29 }
 0x131   :  { %301 = vrsqrt.f32 %v58_v30 }
 0x137   :  { %v300_v31 = vpop.eup %299 }
 0x138   :  { %v61_v32 = vmul.f32 %v300_v31, %v47_v12 }
 0x13a   :  { %v70_v36 = vmul.f32 %v223_v33, %v61_v32 }
 0x13b   :  { %v302_v34 = vpop.eup %301 }
 0x13c   :  { %v62_v35 = vmul.f32 %v302_v34, %v48_v16  ;;  %v79_v39 = vadd.f32 %v224_v37, %v70_v36 }
 0x13e   :  { %v71_v38 = vmul.f32 %v223_v33, %v62_v35 }
 0x140   :  { %v80_v40 = vadd.f32 %v224_v37, %v71_v38 }
 0x142   :  { %v81_v41 = vpack.c.bf16 %v80_v40, %v79_v39 }
 0x144   :  { %254 = vst [vmem:[%s395_s6] sm:$0xff] %v81_v41   ;;  %286 = vmatmul.mubr.bf16.vlgmr.msra.gmra.mrb[0].mxu0 %v81_v41 }
 0x217   :  { %v198_v43 = vpop.f32.mrb[0].mxu0 }
 0x218   :  { %v287_v44 = vpop.f32.mrb[1].mxu0  ;;  %v199_v46 = vadd.f32 %v227_v42, %v198_v43 }
 0x219   :  { %v201_v45 = vpop.f32.mrb[2].mxu0 }
 0x21a   :  { %v202_v47 = vadd.f32 %v227_v42, %v201_v45  ;;  %v288_v48 = vpop.f32.mrb[3].mxu0 }
 0x21c   :  { %v258_v49 = vpack.c.bf16 %v202_v47, %v199_v46 }
 0x21e   :  { %259 = vst [vmem:[%s397_s7] sm:$0xff] %v258_v49  }

// kernel: _lambda_.11
= control target key start
LH: loop header
LB: loop body
LE: loop exit
PB: predicated region body
PF: predicated region fallthrough
CT: control target
= control target key end

     0   :  { %s385_s1 = inlined_call_operand.vmem [shape: bf16[256,128], index: 1, kind: input, shape index: {}]   ;;  %s386_s0 = inlined_call_operand.vmem [shape: bf16[16,256], index: 0, kind: input, shape index: {}]   ;;  %s387_s2 = inlined_call_operand.vmem [shape: f32[1,128], index: 2, kind: input, shape index: {}]   ;;  %s388_s3 = inlined_call_operand.vmem [shape: bf16[16,128], index: 3, kind: output, shape index: {}]  }
   0x1   :  { %v286_v0 = vld [vmem:[%s385_s1 + $0x40] sm:$0xff]   ;;  %v288_v2 = vld [vmem:[%s385_s1 + $0x48] sm:$0xff]   ;;  %v290_v4 = vld [vmem:[%s385_s1 + $0x50] sm:$0xff]  }
   0x2   :  { %v287_v1 = vld [vmem:[%s385_s1] sm:$0xff]   ;;  %264 = vmatprep.subr.bf16.mxu0 %v286_v0  ;;  %v289_v3 = vld [vmem:[%s385_s1 + $0x8] sm:$0xff]   ;;  %v291_v5 = vld [vmem:[%s385_s1 + $0x10] sm:$0xff]  }
   0x3   :  { %265 = vmatpush3.bf16.msra.mxu0 %v287_v1  ;;  %v292_v6 = vld [vmem:[%s385_s1 + $0x58] sm:$0xff]   ;;  %v294_v8 = vld [vmem:[%s385_s1 + $0x60] sm:$0xff]   ;;  %v296_v10 = vld [vmem:[%s385_s1 + $0x68] sm:$0xff]  }
   0x4   :  { %266 = vmatprep.subr.bf16.mxu0 %v288_v2  ;;  %v293_v7 = vld [vmem:[%s385_s1 + $0x18] sm:$0xff]   ;;  %v295_v9 = vld [vmem:[%s385_s1 + $0x20] sm:$0xff]   ;;  %v297_v12 = vld [vmem:[%s385_s1 + $0x28] sm:$0xff]  }
   0x5   :  { %v304_v11 = vld [vmem:[%s386_s0 + $0x4] ss:$8 sps:$4 sm:$0xff]   ;;  %v298_v13 = vld [vmem:[%s385_s1 + $0x70] sm:$0xff]   ;;  %v300_v15 = vld [vmem:[%s385_s1 + $0x78] sm:$0xff]  }
   0x6   :  { %195 = vmatprep.mubr.bf16.mxu0 %v304_v11  ;;  %v299_v14 = vld [vmem:[%s385_s1 + $0x30] sm:$0xff]   ;;  %v301_v16 = vld [vmem:[%s385_s1 + $0x38] sm:$0xff]   ;;  %v302_v17 = vld [vmem:[%s386_s0] ss:$8 sps:$4 sm:$0xff]  }
   0x7   :  { %267 = vmatpush3.bf16.msra.mxu0 %v289_v3  ;;  %v254_v22 = vld [vmem:[%s387_s2] ss:$0 sm:$0xff] }
   0x8   :  { %268 = vmatprep.subr.bf16.mxu0 %v290_v4 }
   0xb   :  { %269 = vmatpush3.bf16.msra.mxu0 %v291_v5 }
   0xc   :  { %270 = vmatprep.subr.bf16.mxu0 %v292_v6 }
   0xf   :  { %271 = vmatpush3.bf16.msra.mxu0 %v293_v7 }
  0x10   :  { %272 = vmatprep.subr.bf16.mxu0 %v294_v8 }
  0x13   :  { %273 = vmatpush3.bf16.msra.mxu0 %v295_v9 }
  0x14   :  { %274 = vmatprep.subr.bf16.mxu0 %v296_v10 }
  0x17   :  { %275 = vmatpush3.bf16.msra.mxu0 %v297_v12 }
  0x18   :  { %276 = vmatprep.subr.bf16.mxu0 %v298_v13 }
  0x1b   :  { %277 = vmatpush3.bf16.msra.mxu0 %v299_v14 }
  0x1c   :  { %278 = vmatprep.subr.bf16.mxu0 %v300_v15 }
  0x1f   :  { %279 = vmatpush3.bf16.msra.mxu0 %v301_v16 }
  0x22   :  { %196 = vmatmul.mubr.bf16.vlgmr.msra.gmra.mrb[0].mxu0 %v302_v17 }
  0xf5   :  { %v280_v18 = vpop.f32.mrb[0].mxu0 }
  0xf6   :  { %v281_v19 = vpop.f32.mrb[1].mxu0 }
  0xf7   :  { %v282_v20 = vadd.f32 %v281_v19, %v280_v18  ;;  %v283_v21 = vpop.f32.mrb[2].mxu0 }
  0xf8   :  { %v284_v23 = vpop.f32.mrb[3].mxu0 }
  0xf9   :  { %v285_v24 = vadd.f32 %v284_v23, %v283_v21  ;;  %v220_v25 = vadd.f32 %v282_v20, %v254_v22 }
  0xfb   :  { %v221_v26 = vadd.f32 %v285_v24, %v254_v22 }
  0xfd   :  { %v262_v27 = vpack.c.bf16 %v221_v26, %v220_v25 }
  0xff   :  { %263 = vst [vmem:[%s388_s3] sm:$0xff] %v262_v27  }

// kernel: _lambda_.13
= control target key start
LH: loop header
LB: loop body
LE: loop exit
PB: predicated region body
PF: predicated region fallthrough
CT: control target
= control target key end

     0   :  { %v1328_v1 = vmov 0.0   ;;  %vm1329_vm0 = vmmov 0   ;;  %vm35_vm1 = vcmask 254976   ;;  %s1611_s0 = inlined_call_operand.vmem [shape: bf16[8,2,128], index: 0, kind: input, shape index: {}]   ;;  %s1612_s1 = inlined_call_operand.vmem [shape: bf16[2,128], index: 1, kind: input, shape index: {}]   ;;  %s1613_s2 = inlined_call_operand.vmem [shape: bf16[128,128], index: 2, kind: input, shape index: {}]   ;;  %s1614_s3 = inlined_call_operand.vmem [shape: f32[1,128], index: 3, kind: input, shape index: {}]   ;;  %s1615_s4 = inlined_call_operand.vmem [shape: bf16[32,128], index: 4, kind: input, shape index: {}]   ;;  %s1616_s5 = inlined_call_operand.vmem [shape: bf16[32,128], index: 5, kind: input, shape index: {}]   ;;  %s1617_s6 = inlined_call_operand.vmem [shape: f32[64,3], index: 6, kind: input, shape index: {}]   ;;  %s1618_s7 = inlined_call_operand.vmem [shape: f32[1,3], index: 7, kind: input, shape index: {}]   ;;  %s1619_s8 = inlined_call_operand.hbm [shape: f32[2,3], index: 8, kind: output, shape index: {}]  }
   0x1   :  { %v1385_v0 = vld [vmem:[%s1615_s4] sm:$0xff]   ;;  %1083 = vmatprep.subr.bf16.mxu1 %v1328_v1  ;;  %1115 = vmatprep.subr.bf16.mxu0 %v1328_v1  ;;  %v1393_v2 = vld [vmem:[%s1615_s4 + $0x8] sm:$0xff]   ;;  %36 = vst.msk [vmem:[#allocation2] sm:$0x3] %vm35_vm1, %v1328_v1  ;;  %37 = vst.msk [vmem:[#allocation3] sm:$0x3] %vm35_vm1, %v1328_v1 }
   0x2   :  { %1084 = vmatpush3.bf16.msra.mxu1 %v1385_v0  ;;  %1087 = vmatprep.mubr.msk.bf16.mxu1 %vm1329_vm0, %v1328_v1 }
   0x3   :  { %1085 = vmatprep.subr.bf16.mxu1 %v1328_v1  ;;  %1116 = vmatpush3.bf16.msra.mxu0 %v1385_v0 }
   0x4   :  { %1117 = vmatprep.subr.bf16.mxu0 %v1328_v1  ;;  %1119 = vmatprep.mubr.msk.bf16.mxu0 %vm1329_vm0, %v1328_v1 }
   0x6   :  { %1086 = vmatpush3.bf16.msra.mxu1 %v1393_v2 }
   0x7   :  { %1091 = vmatprep.subr.bf16.mxu1 %v1328_v1  ;;  %1118 = vmatpush3.bf16.msra.mxu0 %v1393_v2 }
   0x8   :  { %1131 = vmatprep.subr.bf16.mxu0 %v1328_v1 }
   0x9   :  { %13 = vsyncpa [#allocation5], 0  ;;  %v42_v3 = vld [vmem:[#allocation2] sm:$0x3]  ;;  %vm59_vm2 = vcmask 261120   ;;  %s1330_s10 = smov 64  }
   0xa   :  { %v46_v4 = vpack.c.bf16 %v42_v3, %v42_v3  ;;  %v44_v5 = vld [vmem:[%s1611_s0] sm:$0x1]  ;;  %v1002_v13 = vld.sshfl [vmem:[#allocation3] sm:$0x3 pattern:$0x76325410] }
   0xb   :  { %v45_v6 = vunpack.c.l.bf16 %v44_v5  ;;  %s1331_s11 = smov 32   ;;  %v1003_v29 = vld [vmem:[%s1611_s0 + $0x1] sm:$0x1]  ;;  %v1006_v51 = vld [vmem:[%s1611_s0 + $0x2] sm:$0x1]  ;;  %vm908_vm3 = vcmask 523264  }
   0xc   :  { %1088 = vmatmul.mubr.msk.bf16.vlgmr.msra.gmra.mrb[0].mxu1 %vm59_vm2, %v46_v4  ;;  %v141_v30 = vunpack.c.l.bf16 %v1003_v29  ;;  %v216_v52 = vunpack.c.l.bf16 %v1006_v51  ;;  %s1336_s20 = smov [#allocation4]   ;;  %vm982_vm4 = vcmask 17408  }
   0xd   :  { %1092 = vmatpush3.bf16.msra.mxu1 %v1385_v0  ;;  %1095 = vmatprep.mubr.msk.bf16.mxu1 %vm1329_vm0, %v1328_v1 }
   0xe   :  { %1093 = vmatprep.subr.bf16.mxu1 %v1328_v1 }
  0x11   :  { %1094 = vmatpush3.bf16.msra.mxu1 %v1393_v2 }
  0x12   :  { %1099 = vmatprep.subr.bf16.mxu1 %v1328_v1 }
  0xdf   :  { %v97_v7 = vpop.f32.mrb[0].mxu1 }
  0xe0   :  { %v103_v8 = vadd.f32 %v97_v7, %v45_v6  ;;  %v1089_v9 = vpop.f32.mrb[1].mxu1 }
  0xe1   :  { %v100_v10 = vpop.f32.mrb[2].mxu1 }
  0xe2   :  { %1232 = vtanh.f32 %v103_v8  ;;  %v1090_v11 = vpop.f32.mrb[3].mxu1  ;;  %v1001_v14 = vmul.f32 -1.442695, %v103_v8 }
  0xe4   :  { %1234 = vpow2.f32 %v1001_v14 }
  0xec   :  { %v1233_v12 = vpop.eup %1232 }
  0xed   :  { %124 = vrot.lane.b32.xlu0 %v1233_v12, %s1330_s10  ;;  %v1009_v12 = vld [vmem:[%s1611_s0 + $0x3] sm:$0x1] }
  0xee   :  { %v1235_v15 = vpop.eup %1234 }
  0xef   :  { %v107_v16 = vadd.f32 1.0, %v1235_v15 }
  0xf1   :  { %119 = vrot.lane.b32.xlu0 %v1002_v13, %s1331_s11  ;;  %1236 = vrcp.f32 %v107_v16  ;;  %v291_v13 = vunpack.c.l.bf16 %v1009_v12 }
  0xfb   :  { %v1237_v17 = vpop.eup %1236 }
 0x15f   :  { %v125_v18 = vpop.permute.xlu0 %124 }
 0x160   :  { %v127_v19 = vmul.f32 %v1237_v17, %v125_v18 }
 0x162   :  { %129 = vrot.lane.b32.xlu1 %v127_v19, %s1331_s11 }
 0x163   :  { %v120_v20 = vpop.permute.xlu0 %119 }
 0x164   :  { %v122_v21 = vmul.f32 %v1237_v17, %v120_v20 }
 0x1d4   :  { %v130_v22 = vpop.permute.xlu1 %129 }
 0x1d5   :  { %v132_v23 = vadd.f32 %v130_v22, %v122_v21 }
 0x1d7   :  { %1238 = vtanh.f32 %v132_v23 }
 0x1e1   :  { %v1239_v24 = vpop.eup %1238 }
 0x1e2   :  { %135 = vrot.lane.b32.xlu1 %v1239_v24, %s1330_s10 }
 0x254   :  { %v136_v25 = vpop.permute.xlu1 %135 }
 0x255   :  { %v138_v26 = vmul.f32 %v1237_v17, %v136_v25 }
 0x257   :  { %v142_v27 = vpack.c.bf16 %v138_v26, %v138_v26 }
 0x259   :  { %144 = vrot.lane.b32.xlu0 %v142_v27, %s1331_s11 }
 0x2cb   :  { %v145_v28 = vpop.permute.xlu0 %144 }
 0x2cc   :  { %1096 = vmatmul.mubr.msk.bf16.vlgmr.msra.gmra.mrb[4].mxu1 %vm59_vm2, %v145_v28 }
 0x2cd   :  { %1100 = vmatpush3.bf16.msra.mxu1 %v1385_v0  ;;  %1103 = vmatprep.mubr.msk.bf16.mxu1 %vm1329_vm0, %v1328_v1 }
 0x2ce   :  { %1101 = vmatprep.subr.bf16.mxu1 %v1328_v1 }
 0x2d1   :  { %1102 = vmatpush3.bf16.msra.mxu1 %v1393_v2 }
 0x2d2   :  { %1107 = vmatprep.subr.bf16.mxu1 %v1328_v1 }
 0x39f   :  { %v183_v31 = vpop.f32.mrb[4].mxu1 }
 0x3a0   :  { %v189_v32 = vadd.f32 %v183_v31, %v141_v30  ;;  %v1097_v33 = vpop.f32.mrb[5].mxu1 }
 0x3a1   :  { %v186_v34 = vpop.f32.mrb[6].mxu1 }
 0x3a2   :  { %1240 = vtanh.f32 %v189_v32  ;;  %v1098_v35 = vpop.f32.mrb[7].mxu1  ;;  %v1005_v37 = vmul.f32 -1.442695, %v189_v32  ;;  %v1012_v34 = vld [vmem:[%s1611_s0 + $0x4] sm:$0x1] }
 0x3a3   :  { %v366_v35 = vunpack.c.l.bf16 %v1012_v34  ;;  %v1332_v34 = vmov 0  }
 0x3a4   :  { %1242 = vpow2.f32 %v1005_v37 }
 0x3ac   :  { %v1241_v36 = vpop.eup %1240 }
 0x3ad   :  { %199 = vrot.lane.b32.xlu1 %v1241_v36, %s1330_s10 }
 0x3ae   :  { %v1243_v38 = vpop.eup %1242 }
 0x3af   :  { %v193_v39 = vadd.f32 1.0, %v1243_v38 }
 0x3b1   :  { %1244 = vrcp.f32 %v193_v39 }
 0x3bb   :  { %v1245_v40 = vpop.eup %1244 }
 0x3bc   :  { %v197_v43 = vmul.f32 %v1245_v40, %v132_v23 }
 0x41f   :  { %v200_v41 = vpop.permute.xlu1 %199 }
 0x420   :  { %v202_v42 = vmul.f32 %v1245_v40, %v200_v41 }
 0x422   :  { %204 = vrot.lane.b32.xlu0 %v202_v42, %s1331_s11 }
 0x494   :  { %v205_v44 = vpop.permute.xlu0 %204 }
 0x495   :  { %v207_v45 = vadd.f32 %v205_v44, %v197_v43 }
 0x497   :  { %1246 = vtanh.f32 %v207_v45 }
 0x4a1   :  { %v1247_v46 = vpop.eup %1246 }
 0x4a2   :  { %210 = vrot.lane.b32.xlu1 %v1247_v46, %s1330_s10 }
 0x514   :  { %v211_v47 = vpop.permute.xlu1 %210 }
 0x515   :  { %v213_v48 = vmul.f32 %v1245_v40, %v211_v47 }
 0x517   :  { %v217_v49 = vpack.c.bf16 %v213_v48, %v213_v48 }
 0x519   :  { %219 = vrot.lane.b32.xlu0 %v217_v49, %s1331_s11 }
 0x58b   :  { %v220_v50 = vpop.permute.xlu0 %219 }
 0x58c   :  { %1104 = vmatmul.mubr.msk.bf16.vlgmr.msra.gmra.mrb[8].mxu1 %vm59_vm2, %v220_v50 }
 0x58d   :  { %1108 = vmatpush3.bf16.msra.mxu1 %v1385_v0  ;;  %1111 = vmatprep.mubr.msk.bf16.mxu1 %vm1329_vm0, %v1328_v1 }
 0x58e   :  { %1109 = vmatprep.subr.bf16.mxu1 %v1328_v1 }
 0x591   :  { %1110 = vmatpush3.bf16.msra.mxu1 %v1393_v2 }
 0x592   :  { %1123 = vmatprep.subr.bf16.mxu1 %v1328_v1 }
 0x65f   :  { %v258_v53 = vpop.f32.mrb[8].mxu1 }
 0x660   :  { %v264_v54 = vadd.f32 %v258_v53, %v216_v52  ;;  %v1105_v55 = vpop.f32.mrb[9].mxu1 }
 0x661   :  { %v261_v56 = vpop.f32.mrb[10].mxu1 }
 0x662   :  { %1248 = vtanh.f32 %v264_v54  ;;  %v1106_v57 = vpop.f32.mrb[11].mxu1  ;;  %v1008_v59 = vmul.f32 -1.442695, %v264_v54  ;;  %v1015_v56 = vld [vmem:[%s1611_s0 + $0x5] sm:$0x1] }
 0x663   :  { %v441_v57 = vunpack.c.l.bf16 %v1015_v56 }
 0x664   :  { %1250 = vpow2.f32 %v1008_v59 }
 0x66c   :  { %v1249_v58 = vpop.eup %1248 }
 0x66d   :  { %274 = vrot.lane.b32.xlu1 %v1249_v58, %s1330_s10 }
 0x66e   :  { %v1251_v60 = vpop.eup %1250 }
 0x66f   :  { %v268_v61 = vadd.f32 1.0, %v1251_v60 }
 0x671   :  { %1252 = vrcp.f32 %v268_v61 }
 0x67b   :  { %v1253_v62 = vpop.eup %1252 }
 0x67c   :  { %v272_v4 = vmul.f32 %v1253_v62, %v207_v45 }
 0x6df   :  { %v275_v63 = vpop.permute.xlu1 %274 }
 0x6e0   :  { %v277_v3 = vmul.f32 %v1253_v62, %v275_v63 }
 0x6e2   :  { %279 = vrot.lane.b32.xlu0 %v277_v3, %s1331_s11 }
 0x754   :  { %v280_v5 = vpop.permute.xlu0 %279 }
 0x755   :  { %v282_v6 = vadd.f32 %v280_v5, %v272_v4 }
 0x757   :  { %1254 = vtanh.f32 %v282_v6 }
 0x761   :  { %v1255_v7 = vpop.eup %1254 }
 0x762   :  { %285 = vrot.lane.b32.xlu1 %v1255_v7, %s1330_s10 }
 0x7d4   :  { %v286_v8 = vpop.permute.xlu1 %285 }
 0x7d5   :  { %v288_v9 = vmul.f32 %v1253_v62, %v286_v8 }
 0x7d7   :  { %v292_v10 = vpack.c.bf16 %v288_v9, %v288_v9 }
 0x7d9   :  { %294 = vrot.lane.b32.xlu0 %v292_v10, %s1331_s11 }
 0x84b   :  { %v295_v11 = vpop.permute.xlu0 %294 }
 0x84c   :  { %1112 = vmatmul.mubr.msk.bf16.vlgmr.msra.gmra.mrb[12].mxu1 %vm59_vm2, %v295_v11 }
 0x84d   :  { %1124 = vmatpush3.bf16.msra.mxu1 %v1385_v0  ;;  %1127 = vmatprep.mubr.msk.bf16.mxu1 %vm1329_vm0, %v1328_v1 }
 0x84e   :  { %1125 = vmatprep.subr.bf16.mxu1 %v1328_v1 }
 0x851   :  { %1126 = vmatpush3.bf16.msra.mxu1 %v1393_v2 }
 0x852   :  { %1139 = vmatprep.subr.bf16.mxu1 %v1328_v1 }
 0x91f   :  { %v333_v14 = vpop.f32.mrb[12].mxu1 }
 0x920   :  { %v339_v15 = vadd.f32 %v333_v14, %v291_v13  ;;  %v1113_v16 = vpop.f32.mrb[13].mxu1 }
 0x921   :  { %v336_v17 = vpop.f32.mrb[14].mxu1  ;;  %v1223_v16 = vld [vmem:[%s1613_s2 + $0x8] sm:$0xff]  }
 0x922   :  { %1256 = vtanh.f32 %v339_v15  ;;  %v1114_v18 = vpop.f32.mrb[15].mxu1  ;;  %v1011_v20 = vmul.f32 -1.442695, %v339_v15  ;;  %v1222_v15 = vld [vmem:[%s1613_s2] sm:$0xff]   ;;  %v1224_v17 = vld [vmem:[%s1613_s2 + $0x10] sm:$0xff]  }
 0x923   :  { %v1225_v18 = vld [vmem:[%s1613_s2 + $0x18] sm:$0xff]  }
 0x924   :  { %1258 = vpow2.f32 %v1011_v20 }
 0x92c   :  { %v1257_v19 = vpop.eup %1256 }
 0x92d   :  { %349 = vrot.lane.b32.xlu1 %v1257_v19, %s1330_s10  ;;  %v1018_v19 = vld [vmem:[%s1611_s0 + $0x6] sm:$0x1] }
 0x92e   :  { %v1259_v21 = vpop.eup %1258  ;;  %v516_v20 = vunpack.c.l.bf16 %v1018_v19 }
 0x92f   :  { %v343_v22 = vadd.f32 1.0, %v1259_v21 }
 0x931   :  { %1260 = vrcp.f32 %v343_v22  ;;  %v1226_v22 = vld [vmem:[%s1613_s2 + $0x20] sm:$0xff]  }
 0x93b   :  { %v1261_v23 = vpop.eup %1260 }
 0x93c   :  { %v347_v26 = vmul.f32 %v1261_v23, %v282_v6 }
 0x99f   :  { %v350_v24 = vpop.permute.xlu1 %349 }
 0x9a0   :  { %v352_v25 = vmul.f32 %v1261_v23, %v350_v24 }
 0x9a2   :  { %354 = vrot.lane.b32.xlu0 %v352_v25, %s1331_s11 }
 0xa14   :  { %v355_v27 = vpop.permute.xlu0 %354 }
 0xa15   :  { %v357_v28 = vadd.f32 %v355_v27, %v347_v26  ;;  %v1227_v27 = vld [vmem:[%s1613_s2 + $0x28] sm:$0xff]  }
 0xa17   :  { %1262 = vtanh.f32 %v357_v28 }
 0xa21   :  { %v1263_v29 = vpop.eup %1262 }
 0xa22   :  { %360 = vrot.lane.b32.xlu1 %v1263_v29, %s1330_s10  ;;  %v1229_v29 = vld [vmem:[%s1613_s2 + $0x38] sm:$0xff]  }
 0xa94   :  { %v361_v30 = vpop.permute.xlu1 %360 }
 0xa95   :  { %v363_v31 = vmul.f32 %v1261_v23, %v361_v30 }
 0xa97   :  { %v367_v32 = vpack.c.bf16 %v363_v31, %v363_v31  ;;  %v692_v31 = vld [vmem:[%s1612_s1] sm:$0x1] }
 0xa99   :  { %369 = vrot.lane.b32.xlu0 %v367_v32, %s1331_s11  ;;  %v1230_v32 = vld [vmem:[%s1616_s5] sm:$0xff]  }
 0xb0b   :  { %v370_v33 = vpop.permute.xlu0 %369 }
 0xb0c   :  { %1120 = vmatmul.mubr.msk.bf16.vlgmr.msra.gmra.mrb[0].mxu0 %vm59_vm2, %v370_v33  ;;  %v1231_v33 = vld [vmem:[%s1616_s5 + $0x8] sm:$0xff]  }
 0xb0d   :  { %1132 = vmatpush3.bf16.msra.mxu0 %v1385_v0  ;;  %1135 = vmatprep.mubr.msk.bf16.mxu0 %vm1329_vm0, %v1328_v1 }
 0xb0e   :  { %1133 = vmatprep.subr.bf16.mxu0 %v1328_v1 }
 0xb11   :  { %1134 = vmatpush3.bf16.msra.mxu0 %v1393_v2 }
 0xb12   :  { %1147 = vmatprep.subr.bf16.mxu0 %v1328_v1 }
 0xbdf   :  { %v408_v36 = vpop.f32.mrb[0].mxu0 }
 0xbe0   :  { %v414_v37 = vadd.f32 %v408_v36, %v366_v35  ;;  %v1121_v38 = vpop.f32.mrb[1].mxu0 }
 0xbe1   :  { %v411_v39 = vpop.f32.mrb[2].mxu0 }
 0xbe2   :  { %1264 = vtanh.f32 %v414_v37  ;;  %v1122_v40 = vpop.f32.mrb[3].mxu0  ;;  %v1014_v42 = vmul.f32 -1.442695, %v414_v37 }
 0xbe4   :  { %1266 = vpow2.f32 %v1014_v42 }
 0xbec   :  { %v1265_v41 = vpop.eup %1264 }
 0xbed   :  { %424 = vrot.lane.b32.xlu1 %v1265_v41, %s1330_s10 }
 0xbee   :  { %v1267_v43 = vpop.eup %1266 }
 0xbef   :  { %v418_v44 = vadd.f32 1.0, %v1267_v43 }
 0xbf1   :  { %1268 = vrcp.f32 %v418_v44 }
 0xbfb   :  { %v1269_v45 = vpop.eup %1268 }
 0xbfc   :  { %v422_v48 = vmul.f32 %v1269_v45, %v357_v28  ;;  %v1228_v28 = vld [vmem:[%s1613_s2 + $0x30] sm:$0xff]  }
 0xc5f   :  { %v425_v46 = vpop.permute.xlu1 %424 }
 0xc60   :  { %v427_v47 = vmul.f32 %v1269_v45, %v425_v46 }
 0xc62   :  { %429 = vrot.lane.b32.xlu0 %v427_v47, %s1331_s11 }
 0xcd4   :  { %v430_v49 = vpop.permute.xlu0 %429 }
 0xcd5   :  { %v432_v50 = vadd.f32 %v430_v49, %v422_v48  ;;  %v1024_v49 = vld [vmem:[%s1614_s3] ss:$0 sm:$0xff] }
 0xcd7   :  { %1270 = vtanh.f32 %v432_v50 }
 0xce1   :  { %v1271_v51 = vpop.eup %1270 }
 0xce2   :  { %435 = vrot.lane.b32.xlu1 %v1271_v51, %s1330_s10 }
 0xd54   :  { %v436_v52 = vpop.permute.xlu1 %435 }
 0xd55   :  { %v438_v53 = vmul.f32 %v1269_v45, %v436_v52 }
 0xd57   :  { %v442_v54 = vpack.c.bf16 %v438_v53, %v438_v53 }
 0xd59   :  { %444 = vrot.lane.b32.xlu0 %v442_v54, %s1331_s11 }
 0xdcb   :  { %v445_v55 = vpop.permute.xlu0 %444 }
 0xdcc   :  { %1128 = vmatmul.mubr.msk.bf16.vlgmr.msra.gmra.mrb[16].mxu1 %vm59_vm2, %v445_v55 }
 0xdcd   :  { %1140 = vmatpush3.bf16.msra.mxu1 %v1385_v0  ;;  %1143 = vmatprep.mubr.msk.bf16.mxu1 %vm1329_vm0, %v1328_v1 }
 0xdce   :  { %1141 = vmatprep.subr.bf16.mxu1 %v1328_v1 }
 0xdd1   :  { %1142 = vmatpush3.bf16.msra.mxu1 %v1393_v2 }
 0xe9f   :  { %v483_v58 = vpop.f32.mrb[16].mxu1 }
 0xea0   :  { %v489_v59 = vadd.f32 %v483_v58, %v441_v57  ;;  %v1129_v60 = vpop.f32.mrb[17].mxu1 }
 0xea1   :  { %v486_v61 = vpop.f32.mrb[18].mxu1 }
 0xea2   :  { %1272 = vtanh.f32 %v489_v59  ;;  %v1130_v62 = vpop.f32.mrb[19].mxu1  ;;  %v1017_v0 = vmul.f32 -1.442695, %v489_v59 }
 0xea4   :  { %1274 = vpow2.f32 %v1017_v0 }
 0xeac   :  { %v1273_v63 = vpop.eup %1272 }
 0xead   :  { %499 = vrot.lane.b32.xlu1 %v1273_v63, %s1330_s10 }
 0xeae   :  { %v1275_v3 = vpop.eup %1274 }
 0xeaf   :  { %v493_v4 = vadd.f32 1.0, %v1275_v3 }
 0xeb1   :  { %1276 = vrcp.f32 %v493_v4  ;;  %v1021_v4 = vld [vmem:[%s1611_s0 + $0x7] sm:$0x1] }
 0xebb   :  { %v1277_v2 = vpop.eup %1276 }
 0xebc   :  { %v497_v7 = vmul.f32 %v1277_v2, %v432_v50 }
 0xf1f   :  { %v500_v5 = vpop.permute.xlu1 %499 }
 0xf20   :  { %v502_v6 = vmul.f32 %v1277_v2, %v500_v5 }
 0xf22   :  { %504 = vrot.lane.b32.xlu0 %v502_v6, %s1331_s11 }
 0xf94   :  { %v505_v8 = vpop.permute.xlu0 %504 }
 0xf95   :  { %v1492_v9 = vadd.f32 %v505_v8, %v497_v7 }
 0xf97   :  { %1278 = vtanh.f32 %v1492_v9 }
 0xfa1   :  { %v1279_v10 = vpop.eup %1278 }
 0xfa2   :  { %510 = vrot.lane.b32.xlu1 %v1279_v10, %s1330_s10 }
0x1014   :  { %v511_v11 = vpop.permute.xlu1 %510 }
0x1015   :  { %v513_v12 = vmul.f32 %v1277_v2, %v511_v11  ;;  %v591_v2 = vunpack.c.l.bf16 %v1021_v4 }
0x1017   :  { %v517_v13 = vpack.c.bf16 %v513_v12, %v513_v12 }
0x1019   :  { %519 = vrot.lane.b32.xlu0 %v517_v13, %s1331_s11 }
0x108b   :  { %v520_v14 = vpop.permute.xlu0 %519 }
0x108c   :  { %1136 = vmatmul.mubr.msk.bf16.vlgmr.msra.gmra.mrb[4].mxu0 %vm59_vm2, %v520_v14 }
0x108d   :  { %1163 = vmatprep.mubr.msk.bf16.mxu0 %vm1329_vm0, %v1328_v1  ;;  %1148 = vmatpush3.bf16.msra.mxu0 %v1222_v15 }
0x108e   :  { %1149 = vmatprep.subr.bf16.mxu0 %v1328_v1 }
0x1091   :  { %1150 = vmatpush3.bf16.msra.mxu0 %v1223_v16 }
0x1092   :  { %1151 = vmatprep.subr.bf16.mxu0 %v1328_v1 }
0x1095   :  { %1152 = vmatpush3.bf16.msra.mxu0 %v1224_v17 }
0x1096   :  { %1153 = vmatprep.subr.bf16.mxu0 %v1328_v1 }
0x1099   :  { %1154 = vmatpush3.bf16.msra.mxu0 %v1225_v18 }
0x109a   :  { %1155 = vmatprep.subr.bf16.mxu0 %v1328_v1 }
0x109d   :  { %1156 = vmatpush3.bf16.msra.mxu0 %v1226_v22  ;;  %v894_v22 = vld [vmem:[%s1617_s6 + $0x8] sm:$0xff] }
0x109e   :  { %1157 = vmatprep.subr.bf16.mxu0 %v1328_v1 }
0x10a1   :  { %1158 = vmatpush3.bf16.msra.mxu0 %v1227_v27 }
0x10a2   :  { %1159 = vmatprep.subr.bf16.mxu0 %v1328_v1 }
0x10a5   :  { %1160 = vmatpush3.bf16.msra.mxu0 %v1228_v28 }
0x10a6   :  { %1161 = vmatprep.subr.bf16.mxu0 %v1328_v1 }
0x10a9   :  { %1162 = vmatpush3.bf16.msra.mxu0 %v1229_v29  ;;  %v897_v29 = vld [vmem:[%s1617_s6 + $0x20] sm:$0xff] }
0x10aa   :  { %1167 = vmatprep.subr.bf16.mxu0 %v1328_v1 }
0x10ac   :  { %1164 = vmatmul.mubr.bf16.vlgmr.msra.gmra.mrb[8].mxu0 %v692_v31 }
0x10ad   :  { %1168 = vmatpush3.bf16.msra.mxu0 %v1230_v32  ;;  %1171 = vmatprep.mubr.msk.bf16.mxu0 %vm1329_vm0, %v1328_v1  ;;  %v899_v32 = vld [vmem:[%s1617_s6 + $0x30] sm:$0xff] }
0x10ae   :  { %1169 = vmatprep.subr.bf16.mxu0 %v1328_v1 }
0x10b1   :  { %1170 = vmatpush3.bf16.msra.mxu0 %v1231_v33  ;;  %v900_v33 = vld [vmem:[%s1617_s6 + $0x38] sm:$0xff] }
0x10b8   :  { %1172 = vmatmul.mubr.bf16.vlgmr.msra.gmra.mrb[8].mxu0 %v1332_v34  ;;  %v1204_v34 = vpack.c.bf16 %v900_v33, %v899_v32 }
0x115f   :  { %v558_v21 = vpop.f32.mrb[4].mxu0 }
0x1160   :  { %v564_v23 = vadd.f32 %v558_v21, %v516_v20  ;;  %v1137_v24 = vpop.f32.mrb[5].mxu0  ;;  %v893_v21 = vld [vmem:[%s1617_s6] sm:$0xff] }
0x1161   :  { %v561_v25 = vpop.f32.mrb[6].mxu0  ;;  %v1333_v24 = vmov 0.0|0.0  }
0x1162   :  { %1280 = vtanh.f32 %v564_v23  ;;  %v1138_v26 = vpop.f32.mrb[7].mxu0  ;;  %v1020_v35 = vmul.f32 -1.442695, %v564_v23  ;;  %v895_v23 = vld [vmem:[%s1617_s6 + $0x10] sm:$0xff]  ;;  %1194 = vmatprep.subr.bf16.mxu1 %v1333_v24  ;;  %v1195_v25 = vpack.c.bf16 %v894_v22, %v893_v21 }
0x1163   :  { %v896_v26 = vld [vmem:[%s1617_s6 + $0x18] sm:$0xff] }
0x1164   :  { %1282 = vpow2.f32 %v1020_v35  ;;  %v1198_v27 = vpack.c.bf16 %v896_v26, %v895_v23  ;;  %v1334_v35 = vmov 1983009808  }
0x116c   :  { %v1281_v30 = vpop.eup %1280 }
0x116d   :  { %574 = vrot.lane.b32.xlu1 %v1281_v30, %s1330_s10  ;;  %v898_v30 = vld [vmem:[%s1617_s6 + $0x28] sm:$0xff] }
0x116e   :  { %v1283_v36 = vpop.eup %1282  ;;  %v1201_v31 = vpack.c.bf16 %v898_v30, %v897_v29 }
0x116f   :  { %v568_v37 = vadd.f32 1.0, %v1283_v36  ;;  %v666_v36 = vunpack.c.l.s4 %v1334_v35 }
0x1171   :  { %1284 = vrcp.f32 %v568_v37  ;;  %v668_v37 = vlaneseq }
0x117b   :  { %v1285_v38 = vpop.eup %1284 }
0x117c   :  { %v572_v45 = vmul.f32 %v1285_v38, %v1492_v9 }
0x118b   :  { %v857_v41 = vpop.f32.mrb[8].mxu0 }
0x118c   :  { %v1173_v42 = vpop.f32.mrb[9].mxu0  ;;  %v1206_v50 = vadd.f32 %v1024_v49, %v857_v41  ;;  %v1036_v49 = vld [vmem:[%s1618_s7] ss:$0 sm:$0xff] }
0x118d   :  { %v860_v43 = vpop.f32.mrb[10].mxu0 }
0x118e   :  { %v1174_v44 = vpop.f32.mrb[11].mxu0  ;;  %v1035_v55 = vmul.f32 -1.442695, %v1206_v50 }
0x11df   :  { %v575_v39 = vpop.permute.xlu1 %574 }
0x11e0   :  { %v577_v40 = vmul.f32 %v1285_v38, %v575_v39  ;;  %v669_v39 = vshrl.u32 %v668_v37, 7 }
0x11e2   :  { %579 = vrot.lane.b32.xlu0 %v577_v40, %s1331_s11 }
0x1254   :  { %v580_v46 = vpop.permute.xlu0 %579 }
0x1255   :  { %v582_v47 = vadd.f32 %v580_v46, %v572_v45 }
0x1257   :  { %1286 = vtanh.f32 %v582_v47 }
0x1258   :  { %1288 = vtanh.f32 %v1206_v50 }
0x1259   :  { %1290 = vpow2.f32 %v1035_v55 }
0x1261   :  { %v1287_v48 = vpop.eup %1286 }
0x1262   :  { %585 = vrot.lane.b32.xlu1 %v1287_v48, %s1330_s10  ;;  %v1289_v54 = vpop.eup %1288 }
0x1263   :  { %v1291_v56 = vpop.eup %1290 }
0x1264   :  { %v867_v57 = vadd.f32 1.0, %v1291_v56 }
0x1266   :  { %1292 = vrcp.f32 %v867_v57 }
0x1270   :  { %v1293_v59 = vpop.eup %1292 }
0x1271   :  { %v871_v62 = vmul.f32 0.0, %v1293_v59 }
0x12d4   :  { %v586_v51 = vpop.permute.xlu1 %585 }
0x12d5   :  { %v588_v52 = vmul.f32 %v1285_v38, %v586_v51  ;;  %v667_v38 = vunpack.c.0.s8 %v666_v36 }
0x12d7   :  { %v592_v53 = vpack.c.bf16 %v588_v52, %v588_v52  ;;  %v670_v41 = vsub.s32 %v667_v38, %v669_v39 }
0x12d9   :  { %594 = vrot.lane.b32.xlu0 %v592_v53, %s1331_s11 }
0x12dd   :  { %873 = vrot.lane.b32.xlu0 %v1289_v54, %s1330_s10 }
0x134b   :  { %v595_v58 = vpop.permute.xlu0 %594 }
0x134c   :  { %1144 = vmatmul.mubr.msk.bf16.vlgmr.msra.gmra.mrb[20].mxu1 %vm59_vm2, %v595_v58 }
0x134d   :  { %1191 = vmatprep.mubr.msk.f32.mxu1 %vm1329_vm0, %v1328_v1  ;;  %1196 = vmatpush3.bf16.msra.mxu1 %v1195_v25 }
0x134e   :  { %1197 = vmatprep.subr.bf16.mxu1 %v1333_v24 }
0x134f   :  { %v874_v60 = vpop.permute.xlu0 %873 }
0x1350   :  { %v876_v61 = vmul.f32 %v1293_v59, %v874_v60 }
0x1351   :  { %1199 = vmatpush3.bf16.msra.mxu1 %v1198_v27 }
0x1352   :  { %878 = vrot.lane.b32.xlu0 %v876_v61, %s1331_s11  ;;  %1200 = vmatprep.subr.bf16.mxu1 %v1333_v24 }
0x1355   :  { %1202 = vmatpush3.bf16.msra.mxu1 %v1201_v31 }
0x1356   :  { %1203 = vmatprep.subr.bf16.mxu1 %v1333_v24 }
0x1359   :  { %1205 = vmatpush3.bf16.msra.mxu1 %v1204_v34 }
0x13c4   :  { %v879_v63 = vpop.permute.xlu0 %878 }
0x13c5   :  { %v881_v0 = vadd.f32 %v879_v63, %v871_v62 }
0x13c7   :  { %1294 = vtanh.f32 %v881_v0 }
0x13d1   :  { %v1295_v3 = vpop.eup %1294 }
0x13d2   :  { %884 = vrot.lane.b32.xlu0 %v1295_v3, %s1330_s10 }
0x141f   :  { %v633_v5 = vpop.f32.mrb[20].mxu1 }
0x1420   :  { %v639_v6 = vadd.f32 %v633_v5, %v591_v2  ;;  %v1145_v7 = vpop.f32.mrb[21].mxu1 }
0x1421   :  { %v636_v1 = vpop.f32.mrb[22].mxu1 }
0x1422   :  { %1296 = vtanh.f32 %v639_v6  ;;  %v1146_v8 = vpop.f32.mrb[23].mxu1  ;;  %v1023_v12 = vmul.f32 -1.442695, %v639_v6 }
0x1424   :  { %1298 = vpow2.f32 %v1023_v12 }
0x142c   :  { %v1297_v9 = vpop.eup %1296 }
0x142d   :  { %649 = vrot.lane.b32.xlu1 %v1297_v9, %s1330_s10 }
0x142e   :  { %v1299_v13 = vpop.eup %1298 }
0x142f   :  { %v643_v14 = vadd.f32 1.0, %v1299_v13 }
0x1431   :  { %1300 = vrcp.f32 %v643_v14 }
0x143b   :  { %v1301_v15 = vpop.eup %1300 }
0x143c   :  { %v647_v18 = vmul.f32 %v1301_v15, %v582_v47 }
0x1444   :  { %v885_v10 = vpop.permute.xlu0 %884 }
0x1445   :  { %v887_v11 = vmul.f32 %v1293_v59, %v885_v10 }
0x1447   :  { %889 = vrot.lane.b32.xlu0 %v887_v11, %s1330_s10 }
0x149f   :  { %v650_v16 = vpop.permute.xlu1 %649 }
0x14a0   :  { %v652_v17 = vmul.f32 %v1301_v15, %v650_v16 }
0x14a2   :  { %654 = vrot.lane.b32.xlu1 %v652_v17, %s1331_s11 }
0x14b9   :  { %v890_v45 = vpop.permute.xlu0 %889 }
0x1514   :  { %v655_v19 = vpop.permute.xlu1 %654 }
0x1515   :  { %v657_v20 = vadd.f32 %v655_v19, %v647_v18 }
0x1517   :  { %1302 = vtanh.f32 %v657_v20  ;;  %v684_v44 = vrot.slane %v657_v20, %v670_v41 }
0x1521   :  { %v1303_v28 = vpop.eup %1302 }
0x1522   :  { %660 = vrot.lane.b32.xlu1 %v1303_v28, %s1330_s10  ;;  %s1335_s10 = smov 96  }
0x1594   :  { %v661_v40 = vpop.permute.xlu1 %660 }
0x1595   :  { %v663_v42 = vmul.f32 %v1301_v15, %v661_v40 }
0x1597   :  { %v671_v43 = vrot.slane %v663_v42, %v670_v41 }
0x1599   :  { %672 = vrot.lane.b32.xlu1 %v671_v43, %s1331_s11  ;;  %s990_s11 = sshll.u32 %s1336_s20, 4  ;;  %s991_s11 = int_to_ptr.vmem [resolvable:$true] %s990_s11 }
0x159a   :  { %s1304_s21 = scalar_lea.vmem %s991_s11, 32  ;;  %p1309_p1 = scmp.lt.s32.totalorder %s991_s11, %s991_s11 }
0x159b   :  { %p1305_p0 = scmp.ne.s32.totalorder %s991_s11, %s1304_s21  ;;  %p1310_p2 = scmp.lt.s32.totalorder %s1304_s21, %s1304_s21 }
0x159d   :  { %685 = vrot.lane.b32.xlu1 %v684_v44, %s1335_s10  ;;  %p1311_p3 = por %p1310_p2, %p1309_p1 }
0x159f   :  { %p1312_p4 = pnand %p1311_p3, %p1305_p0 }
0x160b   :  { %v673_v46 = vpop.permute.xlu1 %672 }
0x160c   :  { %676 = vst.msk [vmem:[#allocation2] sm:$0x3] %vm35_vm1, %v673_v46  ;;  %v892_v47 = vsel %vm59_vm2, %v673_v46, %v890_v45 }
0x160d   :  { %1192 = vmatmul.mubr.msk.f32.vlgmr.msra.gmra.mrb[24].mxu1 %vm908_vm3, %v892_v47 }
0x160f   :  { %v686_v48 = vpop.permute.xlu1 %685 }
0x1610   :  { %688 = vst.msk [vmem:[#allocation3] sm:$0x3] %vm35_vm1, %v686_v48 }
0x16e0   :  { %v978_v50 = vpop.f32.mrb[24].mxu1 }
0x16e1   :  { %v979_v51 = vadd.f32 %v1036_v49, %v978_v50  ;;  %v1193_v52 = vpop.f32.mrb[25].mxu1 }
0x16e3   :  { %983 = vst.msk [vmem:[#allocation4] sm:$0x3] %vm982_vm4, %v979_v51 }
0x16e4   :  { %1315 = shalt.err (!%p1312_p4)
}
0x16e5   :  { %s1316_s2 = scalar_lea.hbm %s1619_s8, 32 }
0x16e6   :  { %p1317_p5 = scmp.ne.s32.totalorder %s1619_s8, %s1316_s2  ;;  %p1320_p6 = scmp.lt.u32.totalorder %s1316_s2, %s1619_s8 }
0x16e8   :  { %p1322_p7 = pnand %p1320_p6, %p1317_p5 }
0x16ea   :  { %1325 = shalt.err (!%p1322_p7)
}
0x16eb   :  { %993 = dma.vmem_to_hbm [thread:$0]  %s991_s11, 32, %s1619_s8, [#allocation5]  }
0x16ec   :  { %1326 = dma.done.wait [#allocation5], 32  }
0x16ed   :  { %1327 = vsyncadd [#allocation5], 4294967264 }
0x16ee   :  { %997 = vsyncpa [#allocation5], 1 }

</bundles_post_ra>
